<compile_context>
chip_gen: v5e
topology: v5e:2x2
jax: 0.10.0
libtpu: 0.0.40
codegen_flags: <defaults>
</compile_context>

<pallas_src>
import jax
import jax.numpy as jnp
from jax.experimental import pallas as pl
from jax.experimental.pallas import tpu as pltpu

MXU_DTYPE = jnp.bfloat16   # conv/deconv matmul operand dtype (accumulation is f32)
LANE = 128                 # TPU lane width
MAX_TILE_M = 1024          # lane-axis tile cap (keeps blocks modest on v5e/v7x)


# ---------------------------- small helpers ----------------------------

def _round_up(x, m):
    return -(-x // m) * m


def _lane_tiles(m):
    """(padded lane extent, tile): both multiples of 128, tile divides extent."""
    mp = _round_up(max(m, LANE), LANE)
    tile = min(mp, MAX_TILE_M)
    mp = _round_up(mp, tile)
    return mp, tile


def _pad_last_to(a, lp):
    l = a.shape[-1]
    if lp == l:
        return a
    pad = [(0, 0)] * (a.ndim - 1) + [(0, lp - l)]
    return jnp.pad(a, pad)


def _interleave4(out4, n, c, hp, wp):
    """(4, C, N*Hp*Wp) window-slot slabs -> (N, C, 2Hp, 2Wp)."""
    y = out4.reshape(2, 2, c, n, hp, wp)       # (dh, dw, C, N, Hp, Wp)
    y = y.transpose(3, 2, 4, 0, 5, 1)          # (N, C, Hp, dh, Wp, dw)
    return y.reshape(n, c, 2 * hp, 2 * wp)


def _im2col(x, k):
    """x: (N, Cin, H, W) -> cols (Cin*K*K, N*Ho*Wo), rows ordered (c, ki, kj)."""
    n, cin, h, w = x.shape
    ho, wo = h - k + 1, w - k + 1
    per = []
    for ki in range(k):
        for kj in range(k):
            per.append(x[:, :, ki:ki + ho, kj:kj + wo])     # (N, Cin, Ho, Wo)
    s = jnp.stack(per, axis=2)                              # (N, Cin, KK, Ho, Wo)
    s = s.transpose(1, 2, 0, 3, 4)                          # (Cin, KK, N, Ho, Wo)
    return s.reshape(cin * k * k, n * ho * wo), (ho, wo)


# ---------------------------- Pallas kernels ----------------------------

def _conv_pool_relu_kernel(cols_ref, w_ref, b_ref, out_ref, idx_ref):
    # cols_ref: (4, CKK, TM)  window-position-major im2col patches (bf16)
    # w_ref:    (Cout, CKK)   bf16;  b_ref: (Cout, 1) f32
    # out_ref:  (Cout, TM) f32 = relu(maxpool2x2(conv)+bias)
    # idx_ref:  (Cout, TM) int32 window slot (0..3) of the max (pre-relu).
    w = w_ref[...]
    y0 = jnp.dot(w, cols_ref[0], preferred_element_type=jnp.float32)
    y1 = jnp.dot(w, cols_ref[1], preferred_element_type=jnp.float32)
    y2 = jnp.dot(w, cols_ref[2], preferred_element_type=jnp.float32)
    y3 = jnp.dot(w, cols_ref[3], preferred_element_type=jnp.float32)
    m = jnp.maximum(jnp.maximum(y0, y1), jnp.maximum(y2, y3))
    idx_ref[...] = jnp.where(y0 == m, 0,
                   jnp.where(y1 == m, 1,
                   jnp.where(y2 == m, 2, 3))).astype(jnp.int32)
    # bias is per-channel constant -> adding after the max preserves max & argmax
    out_ref[...] = jnp.maximum(m + b_ref[...], 0.0)


def _fc_chain_kernel(x_ref, w1_ref, b1_ref, w2_ref, b2_ref,
                     w3_ref, b3_ref, w4_ref, b4_ref, o_ref):
    # fc1 -> relu -> fc2 -> relu -> dfc2 -> dfc1 ; intermediates stay in VMEM.
    x = x_ref[...]
    h = jnp.dot(x, w1_ref[...], preferred_element_type=jnp.float32) + b1_ref[...]
    h = jnp.maximum(h, 0.0)
    h = jnp.dot(h, w2_ref[...], preferred_element_type=jnp.float32) + b2_ref[...]
    h = jnp.maximum(h, 0.0)
    h = jnp.dot(h, w3_ref[...], preferred_element_type=jnp.float32) + b3_ref[...]
    o_ref[...] = jnp.dot(h, w4_ref[...], preferred_element_type=jnp.float32) + b4_ref[...]


def _unpool_kernel(v_ref, i_ref, o_ref):
    # v_ref/i_ref: (C, L); o_ref: (4, C, L). Single bulk store of all 4 slabs.
    v = v_ref[...]
    idx = i_ref[...]
    o_ref[...] = jnp.stack([jnp.where(idx == k, v, 0.0) for k in range(4)], axis=0)


def _mm_bias_relu_kernel(cols_ref, w_ref, b_ref, o_ref):
    # (Cout, CKK) @ (CKK, TM) + bias, ReLU; lane-dense (Cout, TM) output.
    y = jnp.dot(w_ref[...], cols_ref[...], preferred_element_type=jnp.float32)
    o_ref[...] = jnp.maximum(y + b_ref[...], 0.0)


def _mm_bias_relu_unpool_kernel(cols_ref, w_ref, b_ref, i_ref, o_ref):
    # deconv matmul + bias + relu, fused with the following 2x2 max-unpool
    # scatter: o_ref is (4, Cout, TM) window-slot slabs (single bulk store).
    y = jnp.dot(w_ref[...], cols_ref[...], preferred_element_type=jnp.float32)
    y = jnp.maximum(y + b_ref[...], 0.0)
    idx = i_ref[...]
    o_ref[...] = jnp.stack([jnp.where(idx == k, y, 0.0) for k in range(4)], axis=0)


# ---------------------------- Pallas wrappers ----------------------------

def conv_pool_relu_pallas(x, w, b):
    """Fused valid conv (stride 1) + 2x2 maxpool(return_indices) + ReLU.

    x: (N, Cin, H, W) f32; w: (Cout, Cin, K, K); b: (Cout,).
    Returns pooled (N, Cout, Hp, Wp) f32 and idx (Cout, N*Hp*Wp) int32 in 0..3.
    """
    n, cin, h, wd = x.shape
    cout, _, k, _ = w.shape
    ho, wo = h - k + 1, wd - k + 1
    hp, wp = ho // 2, wo // 2
    l = n * hp * wp
    ckk = cin * k * k

    # Window-position-major im2col (XLA layout glue; cast to bf16 for the MXU).
    # TODO(synk): building the patches in-kernel (overlapping BlockSpecs) would
    # remove this XLA glue entirely; kept wrapper-side for lowering robustness.
    cols = []
    for dh in range(2):
        for dw in range(2):
            per = []
            for ki in range(k):
                for kj in range(k):
                    per.append(x[:, :,
                                 ki + dh: ki + dh + 2 * hp - 1: 2,
                                 kj + dw: kj + dw + 2 * wp - 1: 2])  # (N,Cin,Hp,Wp)
            s = jnp.stack(per, axis=2)             # (N, Cin, KK, Hp, Wp)
            s = s.transpose(1, 2, 0, 3, 4)         # (Cin, KK, N, Hp, Wp)
            cols.append(s.reshape(ckk, l))
    cols4 = jnp.stack(cols, axis=0).astype(MXU_DTYPE)          # (4, CKK, L)

    lp, tile = _lane_tiles(l)
    cols4 = _pad_last_to(cols4, lp)
    w2d = w.reshape(cout, ckk).astype(MXU_DTYPE)
    b2d = b.reshape(cout, 1).astype(jnp.float32)

    pooled, idx = pl.pallas_call(
        _conv_pool_relu_kernel,
        out_shape=(jax.ShapeDtypeStruct((cout, lp), jnp.float32),
                   jax.ShapeDtypeStruct((cout, lp), jnp.int32)),
        grid=(lp // tile,),
        in_specs=[
            pl.BlockSpec((4, ckk, tile), lambda i: (0, 0, i)),
            pl.BlockSpec((cout, ckk), lambda i: (0, 0)),
            pl.BlockSpec((cout, 1), lambda i: (0, 0)),
        ],
        out_specs=(
            pl.BlockSpec((cout, tile), lambda i: (0, i)),
            pl.BlockSpec((cout, tile), lambda i: (0, i)),
        ),
        compiler_params=pltpu.CompilerParams(dimension_semantics=("parallel",)),
    )(cols4, w2d, b2d)

    pooled = pooled[:, :l].reshape(cout, n, hp, wp).transpose(1, 0, 2, 3)
    return pooled, idx[:, :l]


def fc_chain_pallas(x, w1, b1, w2, b2, w3, b3, w4, b4):
    """fc1->relu->fc2->relu->dfc2->dfc1 in one pallas_call. x: (N, 320) f32."""
    n, din = x.shape
    dout = w4.shape[1]
    np_ = _round_up(max(n, 8), 8)
    tn = min(np_, 512)
    np_ = _round_up(np_, tn)
    xp = x if np_ == n else jnp.pad(x, ((0, np_ - n), (0, 0)))

    def _full(a):
        return pl.BlockSpec(a.shape, lambda i: (0, 0))

    out = pl.pallas_call(
        _fc_chain_kernel,
        out_shape=jax.ShapeDtypeStruct((np_, dout), jnp.float32),
        grid=(np_ // tn,),
        in_specs=[pl.BlockSpec((tn, din), lambda i: (i, 0)),
                  _full(w1), _full(b1), _full(w2), _full(b2),
                  _full(w3), _full(b3), _full(w4), _full(b4)],
        out_specs=pl.BlockSpec((tn, dout), lambda i: (i, 0)),
        compiler_params=pltpu.CompilerParams(dimension_semantics=("parallel",)),
    )(xp, w1, b1, w2, b2, w3, b3, w4, b4)
    return out[:n]


def max_unpool_pallas(v, idx):
    """v, idx: (C, L) -> (4, C, L) window-slot slabs (interleave in wrapper)."""
    c, l = v.shape
    return pl.pallas_call(
        _unpool_kernel,
        out_shape=jax.ShapeDtypeStruct((4, c, l), jnp.float32),
        grid=(1,),
        in_specs=[pl.BlockSpec((c, l), lambda i: (0, 0)),
                  pl.BlockSpec((c, l), lambda i: (0, 0))],
        out_specs=pl.BlockSpec((4, c, l), lambda i: (0, 0, 0)),
    )(v, idx)


def deconv_relu_unpool_pallas(x, w, b, idx_next):
    """ConvTranspose2d (stride 1) + ReLU fused with the following 2x2 unpool.

    x: (N, Cin, H, W); w: (Cin, Cout, K, K); b: (Cout,);
    idx_next: (Cout, N*Ho*Wo) window-slot indices from the matching encoder pool.
    Returns (N, Cout, 2*Ho, 2*Wo).
    """
    n, cin, _, _ = x.shape
    _, cout, k, _ = w.shape
    xp = jnp.pad(x, ((0, 0), (0, 0), (k - 1, k - 1), (k - 1, k - 1)))
    w_eq = jnp.flip(w, axis=(2, 3)).transpose(1, 0, 2, 3).reshape(cout, cin * k * k)
    cols, (ho, wo) = _im2col(xp, k)
    m = n * ho * wo
    mp, tile = _lane_tiles(m)
    cols = _pad_last_to(cols.astype(MXU_DTYPE), mp)
    idxp = _pad_last_to(idx_next, mp)
    ckk = cin * k * k

    out4 = pl.pallas_call(
        _mm_bias_relu_unpool_kernel,
        out_shape=jax.ShapeDtypeStruct((4, cout, mp), jnp.float32),
        grid=(mp // tile,),
        in_specs=[
            pl.BlockSpec((ckk, tile), lambda i: (0, i)),
            pl.BlockSpec((cout, ckk), lambda i: (0, 0)),
            pl.BlockSpec((cout, 1), lambda i: (0, 0)),
            pl.BlockSpec((cout, tile), lambda i: (0, i)),
        ],
        out_specs=pl.BlockSpec((4, cout, tile), lambda i: (0, 0, i)),
        compiler_params=pltpu.CompilerParams(dimension_semantics=("parallel",)),
    )(cols, w_eq.astype(MXU_DTYPE), b.reshape(cout, 1).astype(jnp.float32), idxp)

    return _interleave4(out4[:, :, :m], n, cout, ho, wo)


def deconv_relu_pallas(x, w, b):
    """ConvTranspose2d (stride 1) + ReLU. Returns (N, Cout, Ho, Wo)."""
    n, cin, _, _ = x.shape
    _, cout, k, _ = w.shape
    xp = jnp.pad(x, ((0, 0), (0, 0), (k - 1, k - 1), (k - 1, k - 1)))
    w_eq = jnp.flip(w, axis=(2, 3)).transpose(1, 0, 2, 3).reshape(cout, cin * k * k)
    cols, (ho, wo) = _im2col(xp, k)
    m = n * ho * wo
    mp, tile = _lane_tiles(m)
    cols = _pad_last_to(cols.astype(MXU_DTYPE), mp)
    ckk = cin * k * k

    y = pl.pallas_call(
        _mm_bias_relu_kernel,
        out_shape=jax.ShapeDtypeStruct((cout, mp), jnp.float32),
        grid=(mp // tile,),
        in_specs=[
            pl.BlockSpec((ckk, tile), lambda i: (0, i)),
            pl.BlockSpec((cout, ckk), lambda i: (0, 0)),
            pl.BlockSpec((cout, 1), lambda i: (0, 0)),
        ],
        out_specs=pl.BlockSpec((cout, tile), lambda i: (0, i)),
        compiler_params=pltpu.CompilerParams(dimension_semantics=("parallel",)),
    )(cols, w_eq.astype(MXU_DTYPE), b.reshape(cout, 1).astype(jnp.float32))

    return y[:, :m].reshape(cout, n, ho, wo).transpose(1, 0, 2, 3)


# ---------------------------- parameters & forward ----------------------------

def init_params(key):
    def u(k, shape, fan_in):
        bound = 1.0 / (fan_in ** 0.5)
        return jax.random.uniform(k, shape, jnp.float32, -bound, bound)

    ks = jax.random.split(key, 16)
    p = {}
    p["conv1_w"] = u(ks[0], (10, 1, 5, 5), 1 * 25)
    p["conv1_b"] = u(ks[1], (10,), 1 * 25)
    p["conv2_w"] = u(ks[2], (20, 10, 5, 5), 10 * 25)
    p["conv2_b"] = u(ks[3], (20,), 10 * 25)
    p["fc1_w"] = u(ks[4], (50, 320), 320)
    p["fc1_b"] = u(ks[5], (50,), 320)
    p["fc2_w"] = u(ks[6], (10, 50), 50)
    p["fc2_b"] = u(ks[7], (10,), 50)
    p["dfc2_w"] = u(ks[8], (50, 10), 10)
    p["dfc2_b"] = u(ks[9], (50,), 10)
    p["dfc1_w"] = u(ks[10], (320, 50), 50)
    p["dfc1_b"] = u(ks[11], (320,), 50)
    p["dconv2_w"] = u(ks[12], (20, 10, 5, 5), 10 * 25)   # (Cin, Cout, K, K)
    p["dconv2_b"] = u(ks[13], (10,), 10 * 25)
    p["dconv1_w"] = u(ks[14], (10, 1, 5, 5), 1 * 25)     # (Cin, Cout, K, K)
    p["dconv1_b"] = u(ks[15], (1,), 1 * 25)
    return p


def net_forward(p, x):
    """Mirrors Net.forward with supervised=False. x: (N, 1, 28, 28) float32."""
    n = x.shape[0]
    # ---------------- encoder ----------------
    x, idx1 = conv_pool_relu_pallas(x, p["conv1_w"], p["conv1_b"])   # (N,10,12,12)
    # TODO(synk): nn.Dropout2d treated as identity (eval/inference semantics).
    x, idx2 = conv_pool_relu_pallas(x, p["conv2_w"], p["conv2_b"])   # (N,20,4,4)
    x = x.reshape(n, 320)                                            # view(-1, 320)
    # fused fc1 -> relu -> fc2 -> relu -> dfc2 -> dfc1 (supervised=False path)
    x = fc_chain_pallas(
        x,
        p["fc1_w"].T, p["fc1_b"].reshape(1, -1),
        p["fc2_w"].T, p["fc2_b"].reshape(1, -1),
        p["dfc2_w"].T, p["dfc2_b"].reshape(1, -1),
        p["dfc1_w"].T, p["dfc1_b"].reshape(1, -1),
    )                                                                # (N, 320)
    # ---------------- decoder ----------------
    # max_unpool2d(idx2): (N,20,4,4) -> (N,20,8,8)
    v = x.reshape(n, 20, 4, 4).transpose(1, 0, 2, 3).reshape(20, n * 16)
    x = _interleave4(max_unpool_pallas(v, idx2), n, 20, 4, 4)        # (N,20,8,8)
    # dconv2 + relu, fused with max_unpool2d(idx1): -> (N,10,24,24)
    x = deconv_relu_unpool_pallas(x, p["dconv2_w"], p["dconv2_b"], idx1)
    # dconv1 + relu: -> (N,1,28,28)
    x = deconv_relu_pallas(x, p["dconv1_w"], p["dconv1_b"])
    return x


if __name__ == "__main__":
    key = jax.random.PRNGKey(0)
    kp, kx = jax.random.split(key)
    params = init_params(kp)
    # 28x28 input is required for the view(-1, 320) to be shape-consistent.
    x = jax.random.normal(kx, (2, 1, 28, 28), jnp.float32)
    y = jax.jit(net_forward)(params, x)
    y = jax.block_until_ready(y)
    assert y.shape == (2, 1, 28, 28), y.shape
    assert bool(jnp.all(jnp.isfinite(y)))
    print("KERNEL_OK")
</pallas_src>

<mosaic_0001>
module attributes {stable_mosaic.version = 11 : i64} {
  func.func @_conv_pool_relu_kernel(%arg0: i32, %arg1: memref<4x25x384xbf16, #tpu.memory_space<vmem>>, %arg2: memref<10x25xbf16, #tpu.memory_space<vmem>>, %arg3: memref<10x1xf32, #tpu.memory_space<vmem>>, %arg4: memref<10x384xf32, #tpu.memory_space<vmem>>, %arg5: memref<10x384xi32, #tpu.memory_space<vmem>>) attributes {dimension_semantics = [#tpu.dimension_semantics<parallel>], iteration_bounds = array<i64: 1>, scalar_prefetch = 0 : i64, scratch_operands = 0 : i64, tpu.core_type = #tpu.core_type<tc>, window_params = [{transform_indices = @transform_0, window_bounds = array<i64: 4, 25, 384>}, {pipeline_mode = #tpu.pipeline_mode<synchronous>, transform_indices = @transform_1, window_bounds = array<i64: 10, 25>}, {pipeline_mode = #tpu.pipeline_mode<synchronous>, transform_indices = @transform_2, window_bounds = array<i64: 10, 1>}, {transform_indices = @transform_3, window_bounds = array<i64: 10, 384>}, {transform_indices = @transform_4, window_bounds = array<i64: 10, 384>}]} {
    %c0 = arith.constant 0 : index
    %c0_0 = arith.constant 0 : index
    %0 = vector.load %arg2[%c0, %c0_0] : memref<10x25xbf16, #tpu.memory_space<vmem>>, vector<10x25xbf16>
    %c0_1 = arith.constant 0 : index
    %c0_2 = arith.constant 0 : index
    %c0_3 = arith.constant 0 : index
    %1 = vector.load %arg1[%c0_1, %c0_2, %c0_3] : memref<4x25x384xbf16, #tpu.memory_space<vmem>>, vector<1x25x384xbf16>
    %2 = vector.shape_cast %1 : vector<1x25x384xbf16> to vector<25x384xbf16>
    %cst = arith.constant dense<0.000000e+00> : vector<10x384xf32>
    %3 = tpu.matmul %0, %2, %cst {dimension_numbers = #tpu.dot_dimension_numbers<[1], [0], [0], [1], [0, 0, 1, 1], [], []>} : vector<10x25xbf16>, vector<25x384xbf16>, vector<10x384xf32> -> vector<10x384xf32>
    %c1 = arith.constant 1 : index
    %c0_4 = arith.constant 0 : index
    %c0_5 = arith.constant 0 : index
    %4 = vector.load %arg1[%c1, %c0_4, %c0_5] : memref<4x25x384xbf16, #tpu.memory_space<vmem>>, vector<1x25x384xbf16>
    %5 = vector.shape_cast %4 : vector<1x25x384xbf16> to vector<25x384xbf16>
    %cst_6 = arith.constant dense<0.000000e+00> : vector<10x384xf32>
    %6 = tpu.matmul %0, %5, %cst_6 {dimension_numbers = #tpu.dot_dimension_numbers<[1], [0], [0], [1], [0, 0, 1, 1], [], []>} : vector<10x25xbf16>, vector<25x384xbf16>, vector<10x384xf32> -> vector<10x384xf32>
    %c2 = arith.constant 2 : index
    %c0_7 = arith.constant 0 : index
    %c0_8 = arith.constant 0 : index
    %7 = vector.load %arg1[%c2, %c0_7, %c0_8] : memref<4x25x384xbf16, #tpu.memory_space<vmem>>, vector<1x25x384xbf16>
    %8 = vector.shape_cast %7 : vector<1x25x384xbf16> to vector<25x384xbf16>
    %cst_9 = arith.constant dense<0.000000e+00> : vector<10x384xf32>
    %9 = tpu.matmul %0, %8, %cst_9 {dimension_numbers = #tpu.dot_dimension_numbers<[1], [0], [0], [1], [0, 0, 1, 1], [], []>} : vector<10x25xbf16>, vector<25x384xbf16>, vector<10x384xf32> -> vector<10x384xf32>
    %c3 = arith.constant 3 : index
    %c0_10 = arith.constant 0 : index
    %c0_11 = arith.constant 0 : index
    %10 = vector.load %arg1[%c3, %c0_10, %c0_11] : memref<4x25x384xbf16, #tpu.memory_space<vmem>>, vector<1x25x384xbf16>
    %11 = vector.shape_cast %10 : vector<1x25x384xbf16> to vector<25x384xbf16>
    %cst_12 = arith.constant dense<0.000000e+00> : vector<10x384xf32>
    %12 = tpu.matmul %0, %11, %cst_12 {dimension_numbers = #tpu.dot_dimension_numbers<[1], [0], [0], [1], [0, 0, 1, 1], [], []>} : vector<10x25xbf16>, vector<25x384xbf16>, vector<10x384xf32> -> vector<10x384xf32>
    %13 = arith.maximumf %3, %6 : vector<10x384xf32>
    %14 = arith.maximumf %9, %12 : vector<10x384xf32>
    %15 = arith.maximumf %13, %14 : vector<10x384xf32>
    %16 = arith.cmpf oeq, %3, %15 : vector<10x384xf32>
    %17 = arith.cmpf oeq, %6, %15 : vector<10x384xf32>
    %18 = arith.cmpf oeq, %9, %15 : vector<10x384xf32>
    %c2_i32 = arith.constant 2 : i32
    %c3_i32 = arith.constant 3 : i32
    %19 = vector.broadcast %c2_i32 : i32 to vector<10x384xi32>
    %20 = vector.broadcast %c3_i32 : i32 to vector<10x384xi32>
    %21 = arith.select %18, %19, %20 : vector<10x384xi1>, vector<10x384xi32>
    %c1_i32 = arith.constant 1 : i32
    %22 = vector.broadcast %c1_i32 : i32 to vector<10x384xi32>
    %23 = arith.select %17, %22, %21 : vector<10x384xi1>, vector<10x384xi32>
    %c0_i32 = arith.constant 0 : i32
    %24 = vector.broadcast %c0_i32 : i32 to vector<10x384xi32>
    %25 = arith.select %16, %24, %23 : vector<10x384xi1>, vector<10x384xi32>
    %c0_13 = arith.constant 0 : index
    %c0_14 = arith.constant 0 : index
    %26 = vector.load %arg5[%c0_13, %c0_14] : memref<10x384xi32, #tpu.memory_space<vmem>>, vector<10x384xi32>
    tpu.vector_store %arg5[%c0_13, %c0_14], %25 {strides = array<i32>} : memref<10x384xi32, #tpu.memory_space<vmem>>, vector<10x384xi32>,
    %c0_15 = arith.constant 0 : index
    %c0_16 = arith.constant 0 : index
    %27 = vector.load %arg3[%c0_15, %c0_16] : memref<10x1xf32, #tpu.memory_space<vmem>>, vector<10x1xf32>
    %28 = vector.broadcast %27 : vector<10x1xf32> to vector<10x384xf32>
    %29 = arith.addf %15, %28 : vector<10x384xf32>
    %cst_17 = arith.constant 0.000000e+00 : f32
    %30 = vector.broadcast %cst_17 : f32 to vector<10x384xf32>
    %31 = arith.maximumf %29, %30 : vector<10x384xf32>
    %c0_18 = arith.constant 0 : index
    %c0_19 = arith.constant 0 : index
    %32 = vector.load %arg4[%c0_18, %c0_19] : memref<10x384xf32, #tpu.memory_space<vmem>>, vector<10x384xf32>
    tpu.vector_store %arg4[%c0_18, %c0_19], %31 {strides = array<i32>} : memref<10x384xf32, #tpu.memory_space<vmem>>, vector<10x384xf32>,
    return
  }
  func.func @transform_0(%arg0: i32) -> (i32, i32, i32) {
    %c0_i32 = arith.constant 0 : i32
    %c0_i32_0 = arith.constant 0 : i32
    %c0_i32_1 = arith.constant 0 : i32
    return %c0_i32, %c0_i32_0, %arg0 : i32, i32, i32
  }
  func.func @transform_1(%arg0: i32) -> (i32, i32) {
    %c0_i32 = arith.constant 0 : i32
    %c0_i32_0 = arith.constant 0 : i32
    %c0_i32_1 = arith.constant 0 : i32
    return %c0_i32, %c0_i32_0 : i32, i32
  }
  func.func @transform_2(%arg0: i32) -> (i32, i32) {
    %c0_i32 = arith.constant 0 : i32
    %c0_i32_0 = arith.constant 0 : i32
    %c0_i32_1 = arith.constant 0 : i32
    return %c0_i32, %c0_i32_0 : i32, i32
  }
  func.func @transform_3(%arg0: i32) -> (i32, i32) {
    %c0_i32 = arith.constant 0 : i32
    %c0_i32_0 = arith.constant 0 : i32
    return %c0_i32, %arg0 : i32, i32
  }
  func.func @transform_4(%arg0: i32) -> (i32, i32) {
    %c0_i32 = arith.constant 0 : i32
    %c0_i32_0 = arith.constant 0 : i32
    return %c0_i32, %arg0 : i32, i32
  }
}

module attributes {stable_mosaic.version = 11 : i64} {
  func.func @_conv_pool_relu_kernel(%arg0: i32, %arg1: memref<4x250x128xbf16, #tpu.memory_space<vmem>>, %arg2: memref<20x250xbf16, #tpu.memory_space<vmem>>, %arg3: memref<20x1xf32, #tpu.memory_space<vmem>>, %arg4: memref<20x128xf32, #tpu.memory_space<vmem>>, %arg5: memref<20x128xi32, #tpu.memory_space<vmem>>) attributes {dimension_semantics = [#tpu.dimension_semantics<parallel>], iteration_bounds = array<i64: 1>, scalar_prefetch = 0 : i64, scratch_operands = 0 : i64, tpu.core_type = #tpu.core_type<tc>, window_params = [{transform_indices = @transform_0, window_bounds = array<i64: 4, 250, 128>}, {pipeline_mode = #tpu.pipeline_mode<synchronous>, transform_indices = @transform_1, window_bounds = array<i64: 20, 250>}, {pipeline_mode = #tpu.pipeline_mode<synchronous>, transform_indices = @transform_2, window_bounds = array<i64: 20, 1>}, {transform_indices = @transform_3, window_bounds = array<i64: 20, 128>}, {transform_indices = @transform_4, window_bounds = array<i64: 20, 128>}]} {
    %c0 = arith.constant 0 : index
    %c0_0 = arith.constant 0 : index
    %0 = vector.load %arg2[%c0, %c0_0] : memref<20x250xbf16, #tpu.memory_space<vmem>>, vector<20x250xbf16>
    %c0_1 = arith.constant 0 : index
    %c0_2 = arith.constant 0 : index
    %c0_3 = arith.constant 0 : index
    %1 = vector.load %arg1[%c0_1, %c0_2, %c0_3] : memref<4x250x128xbf16, #tpu.memory_space<vmem>>, vector<1x250x128xbf16>
    %2 = vector.shape_cast %1 : vector<1x250x128xbf16> to vector<250x128xbf16>
    %cst = arith.constant dense<0.000000e+00> : vector<20x128xf32>
    %3 = tpu.matmul %0, %2, %cst {dimension_numbers = #tpu.dot_dimension_numbers<[1], [0], [0], [1], [0, 0, 1, 1], [], []>} : vector<20x250xbf16>, vector<250x128xbf16>, vector<20x128xf32> -> vector<20x128xf32>
    %c1 = arith.constant 1 : index
    %c0_4 = arith.constant 0 : index
    %c0_5 = arith.constant 0 : index
    %4 = vector.load %arg1[%c1, %c0_4, %c0_5] : memref<4x250x128xbf16, #tpu.memory_space<vmem>>, vector<1x250x128xbf16>
    %5 = vector.shape_cast %4 : vector<1x250x128xbf16> to vector<250x128xbf16>
    %cst_6 = arith.constant dense<0.000000e+00> : vector<20x128xf32>
    %6 = tpu.matmul %0, %5, %cst_6 {dimension_numbers = #tpu.dot_dimension_numbers<[1], [0], [0], [1], [0, 0, 1, 1], [], []>} : vector<20x250xbf16>, vector<250x128xbf16>, vector<20x128xf32> -> vector<20x128xf32>
    %c2 = arith.constant 2 : index
    %c0_7 = arith.constant 0 : index
    %c0_8 = arith.constant 0 : index
    %7 = vector.load %arg1[%c2, %c0_7, %c0_8] : memref<4x250x128xbf16, #tpu.memory_space<vmem>>, vector<1x250x128xbf16>
    %8 = vector.shape_cast %7 : vector<1x250x128xbf16> to vector<250x128xbf16>
    %cst_9 = arith.constant dense<0.000000e+00> : vector<20x128xf32>
    %9 = tpu.matmul %0, %8, %cst_9 {dimension_numbers = #tpu.dot_dimension_numbers<[1], [0], [0], [1], [0, 0, 1, 1], [], []>} : vector<20x250xbf16>, vector<250x128xbf16>, vector<20x128xf32> -> vector<20x128xf32>
    %c3 = arith.constant 3 : index
    %c0_10 = arith.constant 0 : index
    %c0_11 = arith.constant 0 : index
    %10 = vector.load %arg1[%c3, %c0_10, %c0_11] : memref<4x250x128xbf16, #tpu.memory_space<vmem>>, vector<1x250x128xbf16>
    %11 = vector.shape_cast %10 : vector<1x250x128xbf16> to vector<250x128xbf16>
    %cst_12 = arith.constant dense<0.000000e+00> : vector<20x128xf32>
    %12 = tpu.matmul %0, %11, %cst_12 {dimension_numbers = #tpu.dot_dimension_numbers<[1], [0], [0], [1], [0, 0, 1, 1], [], []>} : vector<20x250xbf16>, vector<250x128xbf16>, vector<20x128xf32> -> vector<20x128xf32>
    %13 = arith.maximumf %3, %6 : vector<20x128xf32>
    %14 = arith.maximumf %9, %12 : vector<20x128xf32>
    %15 = arith.maximumf %13, %14 : vector<20x128xf32>
    %16 = arith.cmpf oeq, %3, %15 : vector<20x128xf32>
    %17 = arith.cmpf oeq, %6, %15 : vector<20x128xf32>
    %18 = arith.cmpf oeq, %9, %15 : vector<20x128xf32>
    %c2_i32 = arith.constant 2 : i32
    %c3_i32 = arith.constant 3 : i32
    %19 = vector.broadcast %c2_i32 : i32 to vector<20x128xi32>
    %20 = vector.broadcast %c3_i32 : i32 to vector<20x128xi32>
    %21 = arith.select %18, %19, %20 : vector<20x128xi1>, vector<20x128xi32>
    %c1_i32 = arith.constant 1 : i32
    %22 = vector.broadcast %c1_i32 : i32 to vector<20x128xi32>
    %23 = arith.select %17, %22, %21 : vector<20x128xi1>, vector<20x128xi32>
    %c0_i32 = arith.constant 0 : i32
    %24 = vector.broadcast %c0_i32 : i32 to vector<20x128xi32>
    %25 = arith.select %16, %24, %23 : vector<20x128xi1>, vector<20x128xi32>
    %c0_13 = arith.constant 0 : index
    %c0_14 = arith.constant 0 : index
    %26 = vector.load %arg5[%c0_13, %c0_14] : memref<20x128xi32, #tpu.memory_space<vmem>>, vector<20x128xi32>
    tpu.vector_store %arg5[%c0_13, %c0_14], %25 {strides = array<i32>} : memref<20x128xi32, #tpu.memory_space<vmem>>, vector<20x128xi32>,
    %c0_15 = arith.constant 0 : index
    %c0_16 = arith.constant 0 : index
    %27 = vector.load %arg3[%c0_15, %c0_16] : memref<20x1xf32, #tpu.memory_space<vmem>>, vector<20x1xf32>
    %28 = vector.broadcast %27 : vector<20x1xf32> to vector<20x128xf32>
    %29 = arith.addf %15, %28 : vector<20x128xf32>
    %cst_17 = arith.constant 0.000000e+00 : f32
    %30 = vector.broadcast %cst_17 : f32 to vector<20x128xf32>
    %31 = arith.maximumf %29, %30 : vector<20x128xf32>
    %c0_18 = arith.constant 0 : index
    %c0_19 = arith.constant 0 : index
    %32 = vector.load %arg4[%c0_18, %c0_19] : memref<20x128xf32, #tpu.memory_space<vmem>>, vector<20x128xf32>
    tpu.vector_store %arg4[%c0_18, %c0_19], %31 {strides = array<i32>} : memref<20x128xf32, #tpu.memory_space<vmem>>, vector<20x128xf32>,
    return
  }
  func.func @transform_0(%arg0: i32) -> (i32, i32, i32) {
    %c0_i32 = arith.constant 0 : i32
    %c0_i32_0 = arith.constant 0 : i32
    %c0_i32_1 = arith.constant 0 : i32
    return %c0_i32, %c0_i32_0, %arg0 : i32, i32, i32
  }
  func.func @transform_1(%arg0: i32) -> (i32, i32) {
    %c0_i32 = arith.constant 0 : i32
    %c0_i32_0 = arith.constant 0 : i32
    %c0_i32_1 = arith.constant 0 : i32
    return %c0_i32, %c0_i32_0 : i32, i32
  }
  func.func @transform_2(%arg0: i32) -> (i32, i32) {
    %c0_i32 = arith.constant 0 : i32
    %c0_i32_0 = arith.constant 0 : i32
    %c0_i32_1 = arith.constant 0 : i32
    return %c0_i32, %c0_i32_0 : i32, i32
  }
  func.func @transform_3(%arg0: i32) -> (i32, i32) {
    %c0_i32 = arith.constant 0 : i32
    %c0_i32_0 = arith.constant 0 : i32
    return %c0_i32, %arg0 : i32, i32
  }
  func.func @transform_4(%arg0: i32) -> (i32, i32) {
    %c0_i32 = arith.constant 0 : i32
    %c0_i32_0 = arith.constant 0 : i32
    return %c0_i32, %arg0 : i32, i32
  }
}

module attributes {stable_mosaic.version = 11 : i64} {
  func.func @_fc_chain_kernel(%arg0: i32, %arg1: memref<8x320xf32, #tpu.memory_space<vmem>>, %arg2: memref<320x50xf32, #tpu.memory_space<vmem>>, %arg3: memref<1x50xf32, #tpu.memory_space<vmem>>, %arg4: memref<50x10xf32, #tpu.memory_space<vmem>>, %arg5: memref<1x10xf32, #tpu.memory_space<vmem>>, %arg6: memref<10x50xf32, #tpu.memory_space<vmem>>, %arg7: memref<1x50xf32, #tpu.memory_space<vmem>>, %arg8: memref<50x320xf32, #tpu.memory_space<vmem>>, %arg9: memref<1x320xf32, #tpu.memory_space<vmem>>, %arg10: memref<8x320xf32, #tpu.memory_space<vmem>>) attributes {dimension_semantics = [#tpu.dimension_semantics<parallel>], iteration_bounds = array<i64: 1>, scalar_prefetch = 0 : i64, scratch_operands = 0 : i64, tpu.core_type = #tpu.core_type<tc>, window_params = [{transform_indices = @transform_0, window_bounds = array<i64: 8, 320>}, {pipeline_mode = #tpu.pipeline_mode<synchronous>, transform_indices = @transform_1, window_bounds = array<i64: 320, 50>}, {pipeline_mode = #tpu.pipeline_mode<synchronous>, transform_indices = @transform_2, window_bounds = array<i64: 1, 50>}, {pipeline_mode = #tpu.pipeline_mode<synchronous>, transform_indices = @transform_3, window_bounds = array<i64: 50, 10>}, {pipeline_mode = #tpu.pipeline_mode<synchronous>, transform_indices = @transform_4, window_bounds = array<i64: 1, 10>}, {pipeline_mode = #tpu.pipeline_mode<synchronous>, transform_indices = @transform_5, window_bounds = array<i64: 10, 50>}, {pipeline_mode = #tpu.pipeline_mode<synchronous>, transform_indices = @transform_6, window_bounds = array<i64: 1, 50>}, {pipeline_mode = #tpu.pipeline_mode<synchronous>, transform_indices = @transform_7, window_bounds = array<i64: 50, 320>}, {pipeline_mode = #tpu.pipeline_mode<synchronous>, transform_indices = @transform_8, window_bounds = array<i64: 1, 320>}, {transform_indices = @transform_9, window_bounds = array<i64: 8, 320>}]} {
    %c0 = arith.constant 0 : index
    %c0_0 = arith.constant 0 : index
    %0 = vector.load %arg1[%c0, %c0_0] : memref<8x320xf32, #tpu.memory_space<vmem>>, vector<8x320xf32>
    %c0_1 = arith.constant 0 : index
    %c0_2 = arith.constant 0 : index
    %1 = vector.load %arg2[%c0_1, %c0_2] : memref<320x50xf32, #tpu.memory_space<vmem>>, vector<320x50xf32>
    %cst = arith.constant dense<0.000000e+00> : vector<8x50xf32>
    %2 = tpu.matmul %0, %1, %cst {dimension_numbers = #tpu.dot_dimension_numbers<[1], [0], [0], [1], [0, 0, 1, 1], [], []>} : vector<8x320xf32>, vector<320x50xf32>, vector<8x50xf32> -> vector<8x50xf32>
    %c0_3 = arith.constant 0 : index
    %c0_4 = arith.constant 0 : index
    %3 = vector.load %arg3[%c0_3, %c0_4] : memref<1x50xf32, #tpu.memory_space<vmem>>, vector<1x50xf32>
    %4 = vector.broadcast %3 : vector<1x50xf32> to vector<8x50xf32>
    %5 = arith.addf %2, %4 : vector<8x50xf32>
    %cst_5 = arith.constant 0.000000e+00 : f32
    %6 = vector.broadcast %cst_5 : f32 to vector<8x50xf32>
    %7 = arith.maximumf %5, %6 : vector<8x50xf32>
    %c0_6 = arith.constant 0 : index
    %c0_7 = arith.constant 0 : index
    %8 = vector.load %arg4[%c0_6, %c0_7] : memref<50x10xf32, #tpu.memory_space<vmem>>, vector<50x10xf32>
    %cst_8 = arith.constant dense<0.000000e+00> : vector<8x10xf32>
    %9 = tpu.matmul %7, %8, %cst_8 {dimension_numbers = #tpu.dot_dimension_numbers<[1], [0], [0], [1], [0, 0, 1, 1], [], []>} : vector<8x50xf32>, vector<50x10xf32>, vector<8x10xf32> -> vector<8x10xf32>
    %c0_9 = arith.constant 0 : index
    %c0_10 = arith.constant 0 : index
    %10 = vector.load %arg5[%c0_9, %c0_10] : memref<1x10xf32, #tpu.memory_space<vmem>>, vector<1x10xf32>
    %11 = vector.broadcast %10 : vector<1x10xf32> to vector<8x10xf32>
    %12 = arith.addf %9, %11 : vector<8x10xf32>
    %cst_11 = arith.constant 0.000000e+00 : f32
    %13 = vector.broadcast %cst_11 : f32 to vector<8x10xf32>
    %14 = arith.maximumf %12, %13 : vector<8x10xf32>
    %c0_12 = arith.constant 0 : index
    %c0_13 = arith.constant 0 : index
    %15 = vector.load %arg6[%c0_12, %c0_13] : memref<10x50xf32, #tpu.memory_space<vmem>>, vector<10x50xf32>
    %cst_14 = arith.constant dense<0.000000e+00> : vector<8x50xf32>
    %16 = tpu.matmul %14, %15, %cst_14 {dimension_numbers = #tpu.dot_dimension_numbers<[1], [0], [0], [1], [0, 0, 1, 1], [], []>} : vector<8x10xf32>, vector<10x50xf32>, vector<8x50xf32> -> vector<8x50xf32>
    %c0_15 = arith.constant 0 : index
    %c0_16 = arith.constant 0 : index
    %17 = vector.load %arg7[%c0_15, %c0_16] : memref<1x50xf32, #tpu.memory_space<vmem>>, vector<1x50xf32>
    %18 = vector.broadcast %17 : vector<1x50xf32> to vector<8x50xf32>
    %19 = arith.addf %16, %18 : vector<8x50xf32>
    %c0_17 = arith.constant 0 : index
    %c0_18 = arith.constant 0 : index
    %20 = vector.load %arg8[%c0_17, %c0_18] : memref<50x320xf32, #tpu.memory_space<vmem>>, vector<50x320xf32>
    %cst_19 = arith.constant dense<0.000000e+00> : vector<8x320xf32>
    %21 = tpu.matmul %19, %20, %cst_19 {dimension_numbers = #tpu.dot_dimension_numbers<[1], [0], [0], [1], [0, 0, 1, 1], [], []>} : vector<8x50xf32>, vector<50x320xf32>, vector<8x320xf32> -> vector<8x320xf32>
    %c0_20 = arith.constant 0 : index
    %c0_21 = arith.constant 0 : index
    %22 = vector.load %arg9[%c0_20, %c0_21] : memref<1x320xf32, #tpu.memory_space<vmem>>, vector<1x320xf32>
    %23 = vector.broadcast %22 : vector<1x320xf32> to vector<8x320xf32>
    %24 = arith.addf %21, %23 : vector<8x320xf32>
    %c0_22 = arith.constant 0 : index
    %c0_23 = arith.constant 0 : index
    %25 = vector.load %arg10[%c0_22, %c0_23] : memref<8x320xf32, #tpu.memory_space<vmem>>, vector<8x320xf32>
    tpu.vector_store %arg10[%c0_22, %c0_23], %24 {strides = array<i32>} : memref<8x320xf32, #tpu.memory_space<vmem>>, vector<8x320xf32>,
    return
  }
  func.func @transform_0(%arg0: i32) -> (i32, i32) {
    %c0_i32 = arith.constant 0 : i32
    %c0_i32_0 = arith.constant 0 : i32
    return %arg0, %c0_i32 : i32, i32
  }
  func.func @transform_1(%arg0: i32) -> (i32, i32) {
    %c0_i32 = arith.constant 0 : i32
    %c0_i32_0 = arith.constant 0 : i32
    %c0_i32_1 = arith.constant 0 : i32
    return %c0_i32, %c0_i32_0 : i32, i32
  }
  func.func @transform_2(%arg0: i32) -> (i32, i32) {
    %c0_i32 = arith.constant 0 : i32
    %c0_i32_0 = arith.constant 0 : i32
    %c0_i32_1 = arith.constant 0 : i32
    return %c0_i32, %c0_i32_0 : i32, i32
  }
  func.func @transform_3(%arg0: i32) -> (i32, i32) {
    %c0_i32 = arith.constant 0 : i32
    %c0_i32_0 = arith.constant 0 : i32
    %c0_i32_1 = arith.constant 0 : i32
    return %c0_i32, %c0_i32_0 : i32, i32
  }
  func.func @transform_4(%arg0: i32) -> (i32, i32) {
    %c0_i32 = arith.constant 0 : i32
    %c0_i32_0 = arith.constant 0 : i32
    %c0_i32_1 = arith.constant 0 : i32
    return %c0_i32, %c0_i32_0 : i32, i32
  }
  func.func @transform_5(%arg0: i32) -> (i32, i32) {
    %c0_i32 = arith.constant 0 : i32
    %c0_i32_0 = arith.constant 0 : i32
    %c0_i32_1 = arith.constant 0 : i32
    return %c0_i32, %c0_i32_0 : i32, i32
  }
  func.func @transform_6(%arg0: i32) -> (i32, i32) {
    %c0_i32 = arith.constant 0 : i32
    %c0_i32_0 = arith.constant 0 : i32
    %c0_i32_1 = arith.constant 0 : i32
    return %c0_i32, %c0_i32_0 : i32, i32
  }
  func.func @transform_7(%arg0: i32) -> (i32, i32) {
    %c0_i32 = arith.constant 0 : i32
    %c0_i32_0 = arith.constant 0 : i32
    %c0_i32_1 = arith.constant 0 : i32
    return %c0_i32, %c0_i32_0 : i32, i32
  }
  func.func @transform_8(%arg0: i32) -> (i32, i32) {
    %c0_i32 = arith.constant 0 : i32
    %c0_i32_0 = arith.constant 0 : i32
    %c0_i32_1 = arith.constant 0 : i32
    return %c0_i32, %c0_i32_0 : i32, i32
  }
  func.func @transform_9(%arg0: i32) -> (i32, i32) {
    %c0_i32 = arith.constant 0 : i32
    %c0_i32_0 = arith.constant 0 : i32
    return %arg0, %c0_i32 : i32, i32
  }
}

module attributes {stable_mosaic.version = 11 : i64} {
  func.func @_unpool_kernel(%arg0: i32, %arg1: memref<20x32xf32, #tpu.memory_space<vmem>>, %arg2: memref<20x32xi32, #tpu.memory_space<vmem>>, %arg3: memref<4x20x32xf32, #tpu.memory_space<vmem>>) attributes {dimension_semantics = [#tpu.dimension_semantics<arbitrary>], iteration_bounds = array<i64: 1>, scalar_prefetch = 0 : i64, scratch_operands = 0 : i64, tpu.core_type = #tpu.core_type<tc>, window_params = [{pipeline_mode = #tpu.pipeline_mode<synchronous>, transform_indices = @transform_0, window_bounds = array<i64: 20, 32>}, {pipeline_mode = #tpu.pipeline_mode<synchronous>, transform_indices = @transform_1, window_bounds = array<i64: 20, 32>}, {pipeline_mode = #tpu.pipeline_mode<synchronous>, transform_indices = @transform_2, window_bounds = array<i64: 4, 20, 32>}]} {
    %c0 = arith.constant 0 : index
    %c0_0 = arith.constant 0 : index
    %0 = vector.load %arg1[%c0, %c0_0] : memref<20x32xf32, #tpu.memory_space<vmem>>, vector<20x32xf32>
    %c0_1 = arith.constant 0 : index
    %c0_2 = arith.constant 0 : index
    %1 = vector.load %arg2[%c0_1, %c0_2] : memref<20x32xi32, #tpu.memory_space<vmem>>, vector<20x32xi32>
    %c0_i32 = arith.constant 0 : i32
    %2 = vector.broadcast %c0_i32 : i32 to vector<20x32xi32>
    %3 = arith.cmpi eq, %1, %2 : vector<20x32xi32>
    %cst = arith.constant 0.000000e+00 : f32
    %4 = vector.broadcast %cst : f32 to vector<20x32xf32>
    %5 = arith.select %3, %0, %4 : vector<20x32xi1>, vector<20x32xf32>
    %c1_i32 = arith.constant 1 : i32
    %6 = vector.broadcast %c1_i32 : i32 to vector<20x32xi32>
    %7 = arith.cmpi eq, %1, %6 : vector<20x32xi32>
    %cst_3 = arith.constant 0.000000e+00 : f32
    %8 = vector.broadcast %cst_3 : f32 to vector<20x32xf32>
    %9 = arith.select %7, %0, %8 : vector<20x32xi1>, vector<20x32xf32>
    %c2_i32 = arith.constant 2 : i32
    %10 = vector.broadcast %c2_i32 : i32 to vector<20x32xi32>
    %11 = arith.cmpi eq, %1, %10 : vector<20x32xi32>
    %cst_4 = arith.constant 0.000000e+00 : f32
    %12 = vector.broadcast %cst_4 : f32 to vector<20x32xf32>
    %13 = arith.select %11, %0, %12 : vector<20x32xi1>, vector<20x32xf32>
    %c3_i32 = arith.constant 3 : i32
    %14 = vector.broadcast %c3_i32 : i32 to vector<20x32xi32>
    %15 = arith.cmpi eq, %1, %14 : vector<20x32xi32>
    %cst_5 = arith.constant 0.000000e+00 : f32
    %16 = vector.broadcast %cst_5 : f32 to vector<20x32xf32>
    %17 = arith.select %15, %0, %16 : vector<20x32xi1>, vector<20x32xf32>
    %18 = vector.shape_cast %5 : vector<20x32xf32> to vector<1x20x32xf32>
    %19 = vector.shape_cast %9 : vector<20x32xf32> to vector<1x20x32xf32>
    %20 = vector.shape_cast %13 : vector<20x32xf32> to vector<1x20x32xf32>
    %21 = vector.shape_cast %17 : vector<20x32xf32> to vector<1x20x32xf32>
    %22 = tpu.concatenate %18, %19, %20, %21 in 0 : vector<1x20x32xf32>, vector<1x20x32xf32>, vector<1x20x32xf32>, vector<1x20x32xf32> -> vector<4x20x32xf32>
    %c0_6 = arith.constant 0 : index
    %c0_7 = arith.constant 0 : index
    %c0_8 = arith.constant 0 : index
    %23 = vector.load %arg3[%c0_6, %c0_7, %c0_8] : memref<4x20x32xf32, #tpu.memory_space<vmem>>, vector<4x20x32xf32>
    tpu.vector_store %arg3[%c0_6, %c0_7, %c0_8], %22 {strides = array<i32>} : memref<4x20x32xf32, #tpu.memory_space<vmem>>, vector<4x20x32xf32>,
    return
  }
  func.func @transform_0(%arg0: i32) -> (i32, i32) {
    %c0_i32 = arith.constant 0 : i32
    %c0_i32_0 = arith.constant 0 : i32
    %c0_i32_1 = arith.constant 0 : i32
    return %c0_i32, %c0_i32_0 : i32, i32
  }
  func.func @transform_1(%arg0: i32) -> (i32, i32) {
    %c0_i32 = arith.constant 0 : i32
    %c0_i32_0 = arith.constant 0 : i32
    %c0_i32_1 = arith.constant 0 : i32
    return %c0_i32, %c0_i32_0 : i32, i32
  }
  func.func @transform_2(%arg0: i32) -> (i32, i32, i32) {
    %c0_i32 = arith.constant 0 : i32
    %c0_i32_0 = arith.constant 0 : i32
    %c0_i32_1 = arith.constant 0 : i32
    %c0_i32_2 = arith.constant 0 : i32
    return %c0_i32, %c0_i32_0, %c0_i32_1 : i32, i32, i32
  }
}

module attributes {stable_mosaic.version = 11 : i64} {
  func.func @_mm_bias_relu_unpool_kernel(%arg0: i32, %arg1: memref<500x384xbf16, #tpu.memory_space<vmem>>, %arg2: memref<10x500xbf16, #tpu.memory_space<vmem>>, %arg3: memref<10x1xf32, #tpu.memory_space<vmem>>, %arg4: memref<10x384xi32, #tpu.memory_space<vmem>>, %arg5: memref<4x10x384xf32, #tpu.memory_space<vmem>>) attributes {dimension_semantics = [#tpu.dimension_semantics<parallel>], iteration_bounds = array<i64: 1>, scalar_prefetch = 0 : i64, scratch_operands = 0 : i64, tpu.core_type = #tpu.core_type<tc>, window_params = [{transform_indices = @transform_0, window_bounds = array<i64: 500, 384>}, {pipeline_mode = #tpu.pipeline_mode<synchronous>, transform_indices = @transform_1, window_bounds = array<i64: 10, 500>}, {pipeline_mode = #tpu.pipeline_mode<synchronous>, transform_indices = @transform_2, window_bounds = array<i64: 10, 1>}, {transform_indices = @transform_3, window_bounds = array<i64: 10, 384>}, {transform_indices = @transform_4, window_bounds = array<i64: 4, 10, 384>}]} {
    %c0 = arith.constant 0 : index
    %c0_0 = arith.constant 0 : index
    %0 = vector.load %arg2[%c0, %c0_0] : memref<10x500xbf16, #tpu.memory_space<vmem>>, vector<10x500xbf16>
    %c0_1 = arith.constant 0 : index
    %c0_2 = arith.constant 0 : index
    %1 = vector.load %arg1[%c0_1, %c0_2] : memref<500x384xbf16, #tpu.memory_space<vmem>>, vector<500x384xbf16>
    %cst = arith.constant dense<0.000000e+00> : vector<10x384xf32>
    %2 = tpu.matmul %0, %1, %cst {dimension_numbers = #tpu.dot_dimension_numbers<[1], [0], [0], [1], [0, 0, 1, 1], [], []>} : vector<10x500xbf16>, vector<500x384xbf16>, vector<10x384xf32> -> vector<10x384xf32>
    %c0_3 = arith.constant 0 : index
    %c0_4 = arith.constant 0 : index
    %3 = vector.load %arg3[%c0_3, %c0_4] : memref<10x1xf32, #tpu.memory_space<vmem>>, vector<10x1xf32>
    %4 = vector.broadcast %3 : vector<10x1xf32> to vector<10x384xf32>
    %5 = arith.addf %2, %4 : vector<10x384xf32>
    %cst_5 = arith.constant 0.000000e+00 : f32
    %6 = vector.broadcast %cst_5 : f32 to vector<10x384xf32>
    %7 = arith.maximumf %5, %6 : vector<10x384xf32>
    %c0_6 = arith.constant 0 : index
    %c0_7 = arith.constant 0 : index
    %8 = vector.load %arg4[%c0_6, %c0_7] : memref<10x384xi32, #tpu.memory_space<vmem>>, vector<10x384xi32>
    %c0_i32 = arith.constant 0 : i32
    %9 = vector.broadcast %c0_i32 : i32 to vector<10x384xi32>
    %10 = arith.cmpi eq, %8, %9 : vector<10x384xi32>
    %cst_8 = arith.constant 0.000000e+00 : f32
    %11 = vector.broadcast %cst_8 : f32 to vector<10x384xf32>
    %12 = arith.select %10, %7, %11 : vector<10x384xi1>, vector<10x384xf32>
    %c1_i32 = arith.constant 1 : i32
    %13 = vector.broadcast %c1_i32 : i32 to vector<10x384xi32>
    %14 = arith.cmpi eq, %8, %13 : vector<10x384xi32>
    %cst_9 = arith.constant 0.000000e+00 : f32
    %15 = vector.broadcast %cst_9 : f32 to vector<10x384xf32>
    %16 = arith.select %14, %7, %15 : vector<10x384xi1>, vector<10x384xf32>
    %c2_i32 = arith.constant 2 : i32
    %17 = vector.broadcast %c2_i32 : i32 to vector<10x384xi32>
    %18 = arith.cmpi eq, %8, %17 : vector<10x384xi32>
    %cst_10 = arith.constant 0.000000e+00 : f32
    %19 = vector.broadcast %cst_10 : f32 to vector<10x384xf32>
    %20 = arith.select %18, %7, %19 : vector<10x384xi1>, vector<10x384xf32>
    %c3_i32 = arith.constant 3 : i32
    %21 = vector.broadcast %c3_i32 : i32 to vector<10x384xi32>
    %22 = arith.cmpi eq, %8, %21 : vector<10x384xi32>
    %cst_11 = arith.constant 0.000000e+00 : f32
    %23 = vector.broadcast %cst_11 : f32 to vector<10x384xf32>
    %24 = arith.select %22, %7, %23 : vector<10x384xi1>, vector<10x384xf32>
    %25 = vector.shape_cast %12 : vector<10x384xf32> to vector<1x10x384xf32>
    %26 = vector.shape_cast %16 : vector<10x384xf32> to vector<1x10x384xf32>
    %27 = vector.shape_cast %20 : vector<10x384xf32> to vector<1x10x384xf32>
    %28 = vector.shape_cast %24 : vector<10x384xf32> to vector<1x10x384xf32>
    %29 = tpu.concatenate %25, %26, %27, %28 in 0 : vector<1x10x384xf32>, vector<1x10x384xf32>, vector<1x10x384xf32>, vector<1x10x384xf32> -> vector<4x10x384xf32>
    %c0_12 = arith.constant 0 : index
    %c0_13 = arith.constant 0 : index
    %c0_14 = arith.constant 0 : index
    %30 = vector.load %arg5[%c0_12, %c0_13, %c0_14] : memref<4x10x384xf32, #tpu.memory_space<vmem>>, vector<4x10x384xf32>
    tpu.vector_store %arg5[%c0_12, %c0_13, %c0_14], %29 {strides = array<i32>} : memref<4x10x384xf32, #tpu.memory_space<vmem>>, vector<4x10x384xf32>,
    return
  }
  func.func @transform_0(%arg0: i32) -> (i32, i32) {
    %c0_i32 = arith.constant 0 : i32
    %c0_i32_0 = arith.constant 0 : i32
    return %c0_i32, %arg0 : i32, i32
  }
  func.func @transform_1(%arg0: i32) -> (i32, i32) {
    %c0_i32 = arith.constant 0 : i32
    %c0_i32_0 = arith.constant 0 : i32
    %c0_i32_1 = arith.constant 0 : i32
    return %c0_i32, %c0_i32_0 : i32, i32
  }
  func.func @transform_2(%arg0: i32) -> (i32, i32) {
    %c0_i32 = arith.constant 0 : i32
    %c0_i32_0 = arith.constant 0 : i32
    %c0_i32_1 = arith.constant 0 : i32
    return %c0_i32, %c0_i32_0 : i32, i32
  }
  func.func @transform_3(%arg0: i32) -> (i32, i32) {
    %c0_i32 = arith.constant 0 : i32
    %c0_i32_0 = arith.constant 0 : i32
    return %c0_i32, %arg0 : i32, i32
  }
  func.func @transform_4(%arg0: i32) -> (i32, i32, i32) {
    %c0_i32 = arith.constant 0 : i32
    %c0_i32_0 = arith.constant 0 : i32
    %c0_i32_1 = arith.constant 0 : i32
    return %c0_i32, %c0_i32_0, %arg0 : i32, i32, i32
  }
}

module attributes {stable_mosaic.version = 11 : i64} {
  func.func @_mm_bias_relu_kernel(%arg0: i32, %arg1: memref<250x1024xbf16, #tpu.memory_space<vmem>>, %arg2: memref<1x250xbf16, #tpu.memory_space<vmem>>, %arg3: memref<1x1xf32, #tpu.memory_space<vmem>>, %arg4: memref<1x1024xf32, #tpu.memory_space<vmem>>) attributes {dimension_semantics = [#tpu.dimension_semantics<parallel>], iteration_bounds = array<i64: 2>, scalar_prefetch = 0 : i64, scratch_operands = 0 : i64, tpu.core_type = #tpu.core_type<tc>, window_params = [{transform_indices = @transform_0, window_bounds = array<i64: 250, 1024>}, {pipeline_mode = #tpu.pipeline_mode<synchronous>, transform_indices = @transform_1, window_bounds = array<i64: 1, 250>}, {pipeline_mode = #tpu.pipeline_mode<synchronous>, transform_indices = @transform_2, window_bounds = array<i64: 1, 1>}, {transform_indices = @transform_3, window_bounds = array<i64: 1, 1024>}]} {
    %c0 = arith.constant 0 : index
    %c0_0 = arith.constant 0 : index
    %0 = vector.load %arg2[%c0, %c0_0] : memref<1x250xbf16, #tpu.memory_space<vmem>>, vector<1x250xbf16>
    %c0_1 = arith.constant 0 : index
    %c0_2 = arith.constant 0 : index
    %1 = vector.load %arg1[%c0_1, %c0_2] : memref<250x1024xbf16, #tpu.memory_space<vmem>>, vector<250x1024xbf16>
    %cst = arith.constant dense<0.000000e+00> : vector<1x1024xf32>
    %2 = tpu.matmul %0, %1, %cst {dimension_numbers = #tpu.dot_dimension_numbers<[1], [0], [0], [1], [0, 0, 1, 1], [], []>} : vector<1x250xbf16>, vector<250x1024xbf16>, vector<1x1024xf32> -> vector<1x1024xf32>
    %c0_3 = arith.constant 0 : index
    %c0_4 = arith.constant 0 : index
    %3 = vector.load %arg3[%c0_3, %c0_4] : memref<1x1xf32, #tpu.memory_space<vmem>>, vector<1x1xf32>
    %4 = vector.broadcast %3 : vector<1x1xf32> to vector<1x1024xf32>
    %5 = arith.addf %2, %4 : vector<1x1024xf32>
    %cst_5 = arith.constant 0.000000e+00 : f32
    %6 = vector.broadcast %cst_5 : f32 to vector<1x1024xf32>
    %7 = arith.maximumf %5, %6 : vector<1x1024xf32>
    %c0_6 = arith.constant 0 : index
    %c0_7 = arith.constant 0 : index
    %8 = vector.load %arg4[%c0_6, %c0_7] : memref<1x1024xf32, #tpu.memory_space<vmem>>, vector<1x1024xf32>
    tpu.vector_store %arg4[%c0_6, %c0_7], %7 {strides = array<i32>} : memref<1x1024xf32, #tpu.memory_space<vmem>>, vector<1x1024xf32>,
    return
  }
  func.func @transform_0(%arg0: i32) -> (i32, i32) {
    %c0_i32 = arith.constant 0 : i32
    %c0_i32_0 = arith.constant 0 : i32
    return %c0_i32, %arg0 : i32, i32
  }
  func.func @transform_1(%arg0: i32) -> (i32, i32) {
    %c0_i32 = arith.constant 0 : i32
    %c0_i32_0 = arith.constant 0 : i32
    %c0_i32_1 = arith.constant 0 : i32
    return %c0_i32, %c0_i32_0 : i32, i32
  }
  func.func @transform_2(%arg0: i32) -> (i32, i32) {
    %c0_i32 = arith.constant 0 : i32
    %c0_i32_0 = arith.constant 0 : i32
    %c0_i32_1 = arith.constant 0 : i32
    return %c0_i32, %c0_i32_0 : i32, i32
  }
  func.func @transform_3(%arg0: i32) -> (i32, i32) {
    %c0_i32 = arith.constant 0 : i32
    %c0_i32_0 = arith.constant 0 : i32
    return %c0_i32, %arg0 : i32, i32
  }
}

</mosaic_0001>

<bundles_post_ra>
// kernel: net_forward.6
= control target key start
LH: loop header
LB: loop body
LE: loop exit
PB: predicated region body
PF: predicated region fallthrough
CT: control target
= control target key end

     0   :  { %vm65_vm0 = vcmask 1043456   ;;  %vm66_vm1 = vcmask 1044480   ;;  %v650_v2 = vmov 65535   ;;  %vm61_vm2 = vcmask 203776   ;;  %s950_s0 = inlined_call_operand.vmem [shape: bf16[4,25,384], index: 0, kind: input, shape index: {}]   ;;  %s951_s1 = inlined_call_operand.vmem [shape: bf16[10,25], index: 1, kind: input, shape index: {}]   ;;  %s952_s2 = inlined_call_operand.vmem [shape: f32[10,1], index: 2, kind: input, shape index: {}]   ;;  %s953_s4 = inlined_call_operand.vmem [shape: s32[10,384], index: 4, kind: output, shape index: {1}]   ;;  %s954_s3 = inlined_call_operand.vmem [shape: f32[10,384], index: 3, kind: output, shape index: {0}]  }
   0x1   :  { %v503_v0 = vld [vmem:[%s950_s0 + $0x18] sm:$0xf]  ;;  %v626_v1 = vld [vmem:[%s950_s0 + $0x20] sm:$0x10]  ;;  %v67_v3 = vsel %vm65_vm0, 4294967295, %v650_v2 }
   0x2   :  { %v504_v4 = vor.u32 %v626_v1, %v503_v0  ;;  %v684_v5 = vsel %vm66_vm1, %v67_v3, 0  ;;  %v625_v6 = vld [vmem:[%s950_s0 + $0x1c] sm:$0xf]  ;;  %v505_v7 = vld [vmem:[%s950_s0 + $0x24] sm:$0x10] }
   0x3   :  { %v508_v8 = vor.u32 %v625_v6, %v505_v7  ;;  %v511_v9 = vld [vmem:[%s950_s0 + $0x20] sm:$0xf]  ;;  %v627_v10 = vld [vmem:[%s950_s0 + $0x28] sm:$0x10]  ;;  %v538_v11 = vld [vmem:[%s950_s0 + $0x48] sm:$0xf] }
   0x4   :  { %v70_v12 = vand.u32 %v504_v4, %v684_v5  ;;  %v512_v13 = vor.u32 %v627_v10, %v511_v9  ;;  %v632_v14 = vld [vmem:[%s950_s0 + $0x50] sm:$0x10]  ;;  %v491_v15 = vld [vmem:[%s950_s0] sm:$0xf]  ;;  %v623_v16 = vld [vmem:[%s950_s0 + $0x8] sm:$0xf0] }
   0x5   :  { %v73_v17 = vand.u32 %v508_v8, %v684_v5  ;;  %v539_v18 = vor.u32 %v632_v14, %v538_v11  ;;  %v622_v19 = vld [vmem:[%s950_s0 + $0x4] sm:$0xf]  ;;  %v493_v20 = vld [vmem:[%s950_s0 + $0xc] sm:$0xf0]  ;;  %v499_v21 = vld [vmem:[%s950_s0 + $0x8] sm:$0xf]  ;;  %v492_v23 = vor.u32 %v623_v16, %v491_v15 }
   0x6   :  { %84 = vmatpush.bf16.msra.mxu0 %v70_v12  ;;  %v76_v22 = vand.u32 %v512_v13, %v684_v5  ;;  %v624_v24 = vld [vmem:[%s950_s0 + $0x10] sm:$0xf0]  ;;  %v526_v25 = vld [vmem:[%s950_s0 + $0x30] sm:$0xf]  ;;  %v629_v26 = vld [vmem:[%s950_s0 + $0x38] sm:$0xf0]  ;;  %v496_v28 = vor.u32 %v622_v19, %v493_v20 }
   0x7   :  { %98 = vmatpush.bf16.msra.mxu1 %v73_v17  ;;  %v159_v27 = vand.u32 %v539_v18, %v684_v5  ;;  %v487_v29 = vld [vmem:[%s951_s1] sm:$0xf]  ;;  %v621_v30 = vld [vmem:[%s951_s1] sm:$0x10]  ;;  %v573_v31 = vld [vmem:[%s950_s0 + $0x78] sm:$0xf]  ;;  %v500_v32 = vor.u32 %v624_v24, %v499_v21  ;;  %v527_v36 = vor.u32 %v629_v26, %v526_v25 }
   0x8   :  { %112 = vmatpush.bf16.msra.mxu2 %v76_v22  ;;  %v638_v33 = vld [vmem:[%s950_s0 + $0x80] sm:$0x10]  ;;  %v637_v34 = vld [vmem:[%s950_s0 + $0x7c] sm:$0xf]  ;;  %v575_v35 = vld [vmem:[%s950_s0 + $0x84] sm:$0x10]  ;;  %v750_v37 = vor.u32 %v621_v30, %v487_v29 }
   0x9   :  { %173 = vmatpush.bf16.msra.mxu3 %v159_v27  ;;  %v574_v38 = vor.u32 %v638_v33, %v573_v31  ;;  %v578_v39 = vor.u32 %v637_v34, %v575_v35  ;;  %v631_v40 = vld [vmem:[%s950_s0 + $0x4c] sm:$0xf]  ;;  %v540_v41 = vld [vmem:[%s950_s0 + $0x54] sm:$0x10]  ;;  %v546_v42 = vld [vmem:[%s950_s0 + $0x50] sm:$0xf] }
   0xa   :  { %85 = vmatpush.bf16.msra.mxu0 %v492_v23  ;;  %v543_v43 = vor.u32 %v631_v40, %v540_v41  ;;  %v633_v44 = vld [vmem:[%s950_s0 + $0x58] sm:$0x10]  ;;  %v561_v45 = vld [vmem:[%s950_s0 + $0x60] sm:$0xf]  ;;  %v635_v46 = vld [vmem:[%s950_s0 + $0x68] sm:$0xf0] }
   0xb   :  { %99 = vmatpush.bf16.msra.mxu1 %v496_v28  ;;  %v248_v47 = vand.u32 %v574_v38, %v684_v5  ;;  %v251_v48 = vand.u32 %v578_v39, %v684_v5  ;;  %v547_v49 = vor.u32 %v633_v44, %v546_v42  ;;  %v634_v50 = vld [vmem:[%s950_s0 + $0x64] sm:$0xf]  ;;  %v563_v51 = vld [vmem:[%s950_s0 + $0x6c] sm:$0xf0]  ;;  %v628_v52 = vld [vmem:[%s950_s0 + $0x34] sm:$0xf]  ;;  %v562_v61 = vor.u32 %v635_v46, %v561_v45 }
   0xc   :  { %113 = vmatpush.bf16.msra.mxu2 %v500_v32  ;;  %v162_v53 = vand.u32 %v543_v43, %v684_v5  ;;  %v528_v54 = vld [vmem:[%s950_s0 + $0x3c] sm:$0xf0]  ;;  %v534_v55 = vld [vmem:[%s950_s0 + $0x38] sm:$0xf]  ;;  %v630_v56 = vld [vmem:[%s950_s0 + $0x40] sm:$0xf0]  ;;  %v566_v2 = vor.u32 %v634_v50, %v563_v51 }
   0xd   :  { %174 = vmatpush.bf16.msra.mxu3 %v527_v36  ;;  %513 = vmatmul.msk.bf16.vlgmr.msra.gmra.mxu0 %vm61_vm2, %v750_v37  ;;  %v165_v57 = vand.u32 %v547_v49, %v684_v5  ;;  %v643_v58 = vld [vmem:[%s950_s0 + $0xac] sm:$0xf]  ;;  %v610_v59 = vld [vmem:[%s950_s0 + $0xb4] sm:$0x10]  ;;  %v616_v60 = vld [vmem:[%s950_s0 + $0xb0] sm:$0xf]  ;;  %v531_v8 = vor.u32 %v628_v52, %v528_v54  ;;  %v535_v13 = vor.u32 %v630_v56, %v534_v55 }
   0xe   :  { %514 = vmatmul.msk.bf16.vlgmr.msra.gmra.mxu1 %vm61_vm2, %v750_v37  ;;  %v613_v62 = vor.u32 %v643_v58, %v610_v59  ;;  %v645_v63 = vld [vmem:[%s950_s0 + $0xb8] sm:$0x10]  ;;  %v581_v0 = vld [vmem:[%s950_s0 + $0x80] sm:$0xf]  ;;  %v639_v1 = vld [vmem:[%s950_s0 + $0x88] sm:$0x10]  ;;  %187 = vmatpush.bf16.msrb.mxu0 %v162_v53 }
   0xf   :  { %515 = vmatmul.msk.bf16.vlgmr.msra.gmra.mxu2 %vm61_vm2, %v750_v37  ;;  %v617_v3 = vor.u32 %v645_v63, %v616_v60  ;;  %v582_v4 = vor.u32 %v639_v1, %v581_v0  ;;  %v608_v6 = vld [vmem:[%s950_s0 + $0xa8] sm:$0xf]  ;;  %v644_v7 = vld [vmem:[%s950_s0 + $0xb0] sm:$0x10]  ;;  %v598_v12 = vld [vmem:[%s950_s0 + $0x9c] sm:$0xf0]  ;;  %201 = vmatpush.bf16.msrb.mxu1 %v165_v57 }
  0x10   :  { %262 = vmatpush.bf16.msrb.mxu2 %v248_v47  ;;  %548 = vmatmul.msk.bf16.vlgmr.msra.gmra.mxu3 %vm61_vm2, %v750_v37  ;;  %v340_v9 = vand.u32 %v613_v62, %v684_v5  ;;  %v609_v10 = vor.u32 %v644_v7, %v608_v6  ;;  %v640_v11 = vld [vmem:[%s950_s0 + $0x94] sm:$0xf]  ;;  %v604_v16 = vld [vmem:[%s950_s0 + $0x98] sm:$0xf]  ;;  %v642_v17 = vld [vmem:[%s950_s0 + $0xa0] sm:$0xf0] }
  0x11   :  { %276 = vmatpush.bf16.msrb.mxu3 %v251_v48  ;;  %v343_v14 = vand.u32 %v617_v3, %v684_v5  ;;  %v254_v15 = vand.u32 %v582_v4, %v684_v5  ;;  %v569_v19 = vld [vmem:[%s950_s0 + $0x68] sm:$0xf]  ;;  %v636_v20 = vld [vmem:[%s950_s0 + $0x70] sm:$0xf0]  ;;  %v601_v21 = vor.u32 %v640_v11, %v598_v12  ;;  %v596_v22 = vld [vmem:[%s950_s0 + $0x90] sm:$0xf] }
  0x12   :  { %v337_v18 = vand.u32 %v609_v10, %v684_v5  ;;  %v641_v23 = vld [vmem:[%s950_s0 + $0x98] sm:$0xf0]  ;;  %188 = vmatpush.bf16.msrb.mxu0 %v531_v8  ;;  %v605_v5 = vor.u32 %v642_v17, %v604_v16  ;;  %v447_v24 = vld [vmem:[%s952_s2] sm:$0xff]  ;;  %v570_v25 = vor.u32 %v636_v20, %v569_v19  ;;  %v651_v27 = vmov 0   ;;  %v448_v28 = vld [vmem:[%s952_s2 + $0x8] sm:$0x3] }
  0x13   :  { %202 = vmatpush.bf16.msrb.mxu1 %v535_v13  ;;  %v597_v26 = vor.u32 %v641_v23, %v596_v22  ;;  %649 = vset.pattern.permute.xlu0 %v651_v27  ;;  %v652_v52 = vmov 3  }
  0x14   :  { %263 = vmatpush.bf16.msrb.mxu2 %v562_v61  ;;  %451 = vperm.xlu0 %649, %v447_v24  }
  0x15   :  { %277 = vmatpush.bf16.msrb.mxu3 %v566_v2 }
  0x16   :  { %290 = vmatpush.bf16.msra.mxu0 %v254_v15 }
  0x17   :  { %351 = vmatpush.bf16.msra.mxu1 %v337_v18 }
  0x18   :  { %365 = vmatpush.bf16.msra.mxu2 %v340_v9 }
  0x19   :  { %379 = vmatpush.bf16.msra.mxu3 %v343_v14 }
  0x1a   :  { %291 = vmatpush.bf16.msra.mxu0 %v570_v25 }
  0x1b   :  { %352 = vmatpush.bf16.msra.mxu1 %v597_v26 }
  0x1c   :  { %366 = vmatpush.bf16.msra.mxu2 %v601_v21  ;;  %456 = vperm.xlu0 %649, %v448_v28  }
  0x1d   :  { %380 = vmatpush.bf16.msra.mxu3 %v605_v5  ;;  %549 = vmatmul.msk.bf16.vlgmr.msrb.gmra.mxu0 %vm61_vm2, %v750_v37 }
  0x1e   :  { %550 = vmatmul.msk.bf16.vlgmr.msrb.gmra.mxu1 %vm61_vm2, %v750_v37 }
  0x1f   :  { %583 = vmatmul.msk.bf16.vlgmr.msrb.gmra.mxu2 %vm61_vm2, %v750_v37 }
  0x20   :  { %584 = vmatmul.msk.bf16.vlgmr.msrb.gmra.mxu3 %vm61_vm2, %v750_v37 }
  0x2d   :  { %585 = vmatmul.msk.bf16.vlgmr.msra.gmra.mxu0 %vm61_vm2, %v750_v37 }
  0x2e   :  { %618 = vmatmul.msk.bf16.vlgmr.msra.gmra.mxu1 %vm61_vm2, %v750_v37 }
  0x2f   :  { %619 = vmatmul.msk.bf16.vlgmr.msra.gmra.mxu2 %vm61_vm2, %v750_v37 }
  0x30   :  { %620 = vmatmul.msk.bf16.vlgmr.msra.gmra.mxu3 %vm61_vm2, %v750_v37 }
  0x86   :  { %v452_v49 = vpop.permute.xlu0 %451 }
  0x8a   :  { %v87_v29 = vpop.f32.mrf.mxu0 }
  0x8b   :  { %v101_v30 = vpop.f32.mrf.mxu1 }
  0x8e   :  { %v457_v15 = vpop.permute.xlu0 %456 }
  0x92   :  { %v874_v31 = vpop.f32.mrf.mxu2  ;;  %v876_v32 = vpop.f32.mrf.mxu0 }
  0x93   :  { %v176_v33 = vpop.f32.mrf.mxu3  ;;  %v878_v34 = vpop.f32.mrf.mxu1 }
  0x94   :  { %v387_v46 = vmax.f32 %v87_v29, %v176_v33 }
  0x9a   :  { %v880_v35 = vpop.f32.mrf.mxu2  ;;  %v190_v39 = vpop.f32.mrf.mxu0 }
  0x9b   :  { %v882_v36 = vpop.f32.mrf.mxu3  ;;  %v204_v38 = vpop.f32.mrf.mxu1  ;;  %v388_v57 = vmax.f32 %v101_v30, %v190_v39 }
  0x9c   :  { %v390_v62 = vmax.f32 %v876_v32, %v882_v36  ;;  %v389_v63 = vmax.f32 %v874_v31, %v204_v38 }
  0xa2   :  { %v265_v40 = vpop.f32.mrf.mxu2  ;;  %v886_v37 = vpop.f32.mrf.mxu0 }
  0xa3   :  { %v279_v41 = vpop.f32.mrf.mxu3  ;;  %v884_v42 = vpop.f32.mrf.mxu1  ;;  %v391_v6 = vmax.f32 %v878_v34, %v886_v37 }
  0xa4   :  { %v392_v22 = vmax.f32 %v880_v35, %v884_v42 }
  0xaa   :  { %v267_v43 = vpop.f32.mrf.mxu2  ;;  %v293_v51 = vpop.f32.mrf.mxu0 }
  0xab   :  { %v888_v44 = vpop.f32.mrf.mxu3  ;;  %v354_v45 = vpop.f32.mrf.mxu1 }
  0xac   :  { %v393_v47 = vmax.f32 %v265_v40, %v354_v45 }
  0xae   :  { %v399_v48 = vmax.f32 %v387_v46, %v393_v47 }
  0xb0   :  { %vm411_vm3 = vcmp.eq.f32.partialorder %v176_v33, %v399_v48  ;;  %vm417_vm4 = vcmp.eq.f32.partialorder %v265_v40, %v399_v48  ;;  %v459_v50 = vadd.f32 %v452_v49, %v399_v48  ;;  %vm405_vm5 = vcmp.eq.f32.partialorder %v87_v29, %v399_v48 }
  0xb1   :  { %v423_v53 = vsel %vm417_vm4, 2, %v652_v52 }
  0xb2   :  { %v429_v54 = vsel %vm411_vm3, 1, %v423_v53  ;;  %v465_v55 = vmax.f32 %v459_v50, 0.0  ;;  %v368_v56 = vpop.f32.mrf.mxu2  ;;  %v295_v19 = vpop.f32.mrf.mxu0 }
  0xb3   :  { %v435_v58 = vsel %vm405_vm5, 0, %v429_v54  ;;  %v394_v59 = vmax.f32 %v279_v41, %v368_v56  ;;  %v382_v60 = vpop.f32.mrf.mxu3  ;;  %v356_v61 = vpop.f32.mrf.mxu1 }
  0xb4   :  { %441 = vst [vmem:[%s953_s4] sm:$0xff] %v435_v58  ;;  %v395_v0 = vmax.f32 %v293_v51, %v382_v60  ;;  %v396_v1 = vmax.f32 %v267_v43, %v356_v61 }
  0xb5   :  { %471 = vst [vmem:[%s954_s3] sm:$0xff] %v465_v55  ;;  %v400_v2 = vmax.f32 %v388_v57, %v394_v59 }
  0xb6   :  { %v401_v3 = vmax.f32 %v389_v63, %v395_v0  ;;  %v402_v4 = vmax.f32 %v390_v62, %v396_v1 }
  0xb7   :  { %vm412_vm6 = vcmp.eq.f32.partialorder %v190_v39, %v400_v2  ;;  %vm418_vm7 = vcmp.eq.f32.partialorder %v279_v41, %v400_v2  ;;  %v460_v7 = vadd.f32 %v452_v49, %v400_v2  ;;  %vm406_vm8 = vcmp.eq.f32.partialorder %v101_v30, %v400_v2 }
  0xb8   :  { %v424_v8 = vsel %vm418_vm7, 2, %v652_v52  ;;  %vm413_vm9 = vcmp.eq.f32.partialorder %v204_v38, %v401_v3  ;;  %vm419_vm10 = vcmp.eq.f32.partialorder %v293_v51, %v401_v3  ;;  %v461_v12 = vadd.f32 %v452_v49, %v401_v3 }
  0xb9   :  { %v430_v9 = vsel %vm412_vm6, 1, %v424_v8  ;;  %v466_v10 = vmax.f32 %v460_v7, 0.0  ;;  %v425_v11 = vsel %vm419_vm10, 2, %v652_v52  ;;  %vm407_vm11 = vcmp.eq.f32.partialorder %v874_v31, %v401_v3 }
  0xba   :  { %v436_v13 = vsel %vm406_vm8, 0, %v430_v9  ;;  %v431_v14 = vsel %vm413_vm9, 1, %v425_v11  ;;  %vm414_vm12 = vcmp.eq.f32.partialorder %v882_v36, %v402_v4  ;;  %v370_v16 = vpop.f32.mrf.mxu2  ;;  %v467_v18 = vmax.f32 %v461_v12, 0.0 }
  0xbb   :  { %442 = vst [vmem:[%s953_s4 + $0x8] sm:$0xff] %v436_v13  ;;  %v437_v17 = vsel %vm407_vm11, 0, %v431_v14  ;;  %vm420_vm13 = vcmp.eq.f32.partialorder %v267_v43, %v402_v4  ;;  %v462_v20 = vadd.f32 %v457_v15, %v402_v4  ;;  %v384_v21 = vpop.f32.mrf.mxu3  ;;  %v397_v5 = vmax.f32 %v888_v44, %v370_v16 }
  0xbc   :  { %472 = vst [vmem:[%s954_s3 + $0x8] sm:$0xff] %v466_v10  ;;  %v426_v23 = vsel %vm420_vm13, 2, %v652_v52  ;;  %v398_v24 = vmax.f32 %v295_v19, %v384_v21  ;;  %vm408_vm14 = vcmp.eq.f32.partialorder %v876_v32, %v402_v4 }
  0xbd   :  { %443 = vst [vmem:[%s953_s4 + $0x10] sm:$0xff] %v437_v17  ;;  %v432_v25 = vsel %vm414_vm12, 1, %v426_v23  ;;  %v468_v26 = vmax.f32 %v462_v20, 0.0  ;;  %v403_v28 = vmax.f32 %v391_v6, %v397_v5 }
  0xbe   :  { %473 = vst [vmem:[%s954_s3 + $0x10] sm:$0xff] %v467_v18  ;;  %v438_v27 = vsel %vm408_vm14, 0, %v432_v25  ;;  %v404_v29 = vmax.f32 %v392_v22, %v398_v24 }
  0xbf   :  { %444 = vst [vmem:[%s953_s4 + $0x18] sm:$0x3] %v438_v27  ;;  %vm415_vm15 = vcmp.eq.f32.partialorder %v886_v37, %v403_v28  ;;  %vm421_vm0 = vcmp.eq.f32.partialorder %v888_v44, %v403_v28  ;;  %v463_v30 = vadd.f32 %v457_v15, %v403_v28  ;;  %vm409_vm1 = vcmp.eq.f32.partialorder %v878_v34, %v403_v28 }
  0xc0   :  { %474 = vst [vmem:[%s954_s3 + $0x18] sm:$0x3] %v468_v26  ;;  %v427_v31 = vsel %vm421_vm0, 2, %v652_v52  ;;  %vm416_vm2 = vcmp.eq.f32.partialorder %v884_v42, %v404_v29  ;;  %vm422_vm3 = vcmp.eq.f32.partialorder %v295_v19, %v404_v29  ;;  %v464_v38 = vadd.f32 %v457_v15, %v404_v29 }
  0xc1   :  { %v433_v32 = vsel %vm415_vm15, 1, %v427_v31  ;;  %v469_v33 = vmax.f32 %v463_v30, 0.0  ;;  %v428_v36 = vsel %vm422_vm3, 2, %v652_v52  ;;  %vm410_vm4 = vcmp.eq.f32.partialorder %v880_v35, %v404_v29 }
  0xc2   :  { %v439_v39 = vsel %vm409_vm1, 0, %v433_v32  ;;  %v434_v40 = vsel %vm416_vm2, 1, %v428_v36  ;;  %v470_v34 = vmax.f32 %v464_v38, 0.0 }
  0xc3   :  { %445 = vst [vmem:[%s953_s4 + $0x20] sm:$0x3] %v439_v39  ;;  %v440_v41 = vsel %vm410_vm4, 0, %v434_v40 }
  0xc4   :  { %475 = vst [vmem:[%s954_s3 + $0x20] sm:$0x3] %v469_v33 }
  0xc5   :  { %446 = vst [vmem:[%s953_s4 + $0x28] sm:$0x3] %v440_v41 }
  0xc6   :  { %476 = vst [vmem:[%s954_s3 + $0x28] sm:$0x3] %v470_v34 }

// kernel: net_forward.7
= control target key start
LH: loop header
LB: loop body
LE: loop exit
PB: predicated region body
PF: predicated region fallthrough
CT: control target
= control target key end

     0   :  { %vm168_vm0 = vcmask 1044480   ;;  %vm161_vm1 = vcmask 998400   ;;  %s1509_s0 = inlined_call_operand.vmem [shape: bf16[4,250,128], index: 0, kind: input, shape index: {}]   ;;  %s1510_s1 = inlined_call_operand.vmem [shape: bf16[20,250], index: 1, kind: input, shape index: {}]   ;;  %s1511_s2 = inlined_call_operand.vmem [shape: f32[20,1], index: 2, kind: input, shape index: {}]   ;;  %s1512_s4 = inlined_call_operand.vmem [shape: s32[20,128], index: 4, kind: output, shape index: {1}]   ;;  %s1513_s3 = inlined_call_operand.vmem [shape: f32[20,128], index: 3, kind: output, shape index: {0}]  }
   0x1   :  { %v1151_v0 = vld [vmem:[%s1509_s0 + $0x38] sm:$0xff]  ;;  %v1150_v8 = vld [vmem:[%s1509_s0 + $0x30] sm:$0xff]  ;;  %v1149_v14 = vld [vmem:[%s1509_s0 + $0x28] sm:$0xff] }
   0x2   :  { %v1167_v1 = vld [vmem:[%s1509_s0 + $0xb8] sm:$0xff]  ;;  %172 = vmatpush.bf16.msra.mxu0 %v1151_v0  ;;  %v1166_v9 = vld [vmem:[%s1509_s0 + $0xb0] sm:$0xff]  ;;  %v1165_v15 = vld [vmem:[%s1509_s0 + $0xa8] sm:$0xff] }
   0x3   :  { %v844_v2 = vld [vmem:[%s1509_s0 + $0x78] sm:$0xf]  ;;  %v1159_v3 = vld [vmem:[%s1509_s0 + $0x78] sm:$0x10]  ;;  %339 = vmatpush.bf16.msra.mxu2 %v1167_v1  ;;  %v1158_v12 = vld [vmem:[%s1509_s0 + $0x70] sm:$0xff] }
   0x4   :  { %v942_v4 = vld [vmem:[%s1509_s0 + $0xf8] sm:$0xf]  ;;  %v1175_v5 = vld [vmem:[%s1509_s0 + $0xf8] sm:$0x10]  ;;  %v845_v6 = vor.u32 %v1159_v3, %v844_v2  ;;  %v1174_v13 = vld [vmem:[%s1509_s0 + $0xf0] sm:$0xff] }
   0x5   :  { %v943_v7 = vor.u32 %v1175_v5, %v942_v4  ;;  %v1157_v16 = vld [vmem:[%s1509_s0 + $0x68] sm:$0xff]  ;;  %v1148_v18 = vld [vmem:[%s1509_s0 + $0x20] sm:$0xff]  ;;  %v1147_v22 = vld [vmem:[%s1509_s0 + $0x18] sm:$0xff] }
   0x6   :  { %v170_v10 = vsel %vm168_vm0, %v845_v6, 0  ;;  %173 = vmatpush.bf16.msra.mxu0 %v1150_v8  ;;  %v1173_v17 = vld [vmem:[%s1509_s0 + $0xe8] sm:$0xff]  ;;  %v1164_v19 = vld [vmem:[%s1509_s0 + $0xa0] sm:$0xff]  ;;  %v1163_v23 = vld [vmem:[%s1509_s0 + $0x98] sm:$0xff] }
   0x7   :  { %v337_v11 = vsel %vm168_vm0, %v943_v7, 0  ;;  %190 = vmatpush.bf16.msra.mxu1 %v170_v10  ;;  %340 = vmatpush.bf16.msra.mxu2 %v1166_v9  ;;  %v1156_v20 = vld [vmem:[%s1509_s0 + $0x60] sm:$0xff]  ;;  %v1155_v24 = vld [vmem:[%s1509_s0 + $0x58] sm:$0xff]  ;;  %v1146_v26 = vld [vmem:[%s1509_s0 + $0x10] sm:$0xff] }
   0x8   :  { %357 = vmatpush.bf16.msra.mxu3 %v337_v11  ;;  %v1172_v21 = vld [vmem:[%s1509_s0 + $0xe0] sm:$0xff]  ;;  %v1171_v25 = vld [vmem:[%s1509_s0 + $0xd8] sm:$0xff]  ;;  %v1162_v27 = vld [vmem:[%s1509_s0 + $0x90] sm:$0xff] }
   0x9   :  { %v1154_v28 = vld [vmem:[%s1509_s0 + $0x50] sm:$0xff]  ;;  %v1145_v30 = vld [vmem:[%s1509_s0 + $0x8] sm:$0xff]  ;;  %v1138_v34 = vld [vmem:[%s1509_s0 + $0x1f8] sm:$0xf] }
   0xa   :  { %174 = vmatpush.bf16.msra.mxu0 %v1149_v14  ;;  %v1170_v29 = vld [vmem:[%s1509_s0 + $0xd0] sm:$0xff]  ;;  %v1161_v31 = vld [vmem:[%s1509_s0 + $0x88] sm:$0xff]  ;;  %v1207_v35 = vld [vmem:[%s1509_s0 + $0x1f8] sm:$0x10] }
   0xb   :  { %191 = vmatpush.bf16.msra.mxu1 %v1158_v12  ;;  %341 = vmatpush.bf16.msra.mxu2 %v1165_v15  ;;  %v1153_v32 = vld [vmem:[%s1509_s0 + $0x48] sm:$0xff]  ;;  %v1040_v36 = vld [vmem:[%s1509_s0 + $0x178] sm:$0xf]  ;;  %v1191_v37 = vld [vmem:[%s1509_s0 + $0x178] sm:$0x10]  ;;  %v1139_v45 = vor.u32 %v1207_v35, %v1138_v34 }
   0xc   :  { %358 = vmatpush.bf16.msra.mxu3 %v1174_v13  ;;  %v1169_v33 = vld [vmem:[%s1509_s0 + $0xc8] sm:$0xff]  ;;  %v1144_v38 = vld [vmem:[%s1509_s0] sm:$0xff]  ;;  %v1183_v42 = vld [vmem:[%s1509_s0 + $0x138] sm:$0xff]  ;;  %v1041_v46 = vor.u32 %v1191_v37, %v1040_v36 }
   0xd   :  { %v1160_v39 = vld [vmem:[%s1509_s0 + $0x80] sm:$0xff]  ;;  %v1143_v41 = vld [vmem:[%s1510_s1 + $0x4] sm:$0xf0]  ;;  %v1199_v43 = vld [vmem:[%s1509_s0 + $0x1b8] sm:$0xff]  ;;  %v671_v52 = vsel %vm168_vm0, %v1139_v45, 0 }
   0xe   :  { %175 = vmatpush.bf16.msra.mxu0 %v1148_v18  ;;  %v776_v40 = vld [vmem:[%s1510_s1] sm:$0xf]  ;;  %v1142_v48 = vld [vmem:[%s1510_s1 + $0x4] sm:$0xf]  ;;  %v778_v49 = vld [vmem:[%s1510_s1 + $0x8] sm:$0xf0] }
   0xf   :  { %192 = vmatpush.bf16.msra.mxu1 %v1157_v16  ;;  %342 = vmatpush.bf16.msra.mxu2 %v1164_v19  ;;  %v1152_v44 = vld [vmem:[%s1509_s0 + $0x40] sm:$0xff]  ;;  %v1373_v50 = vor.u32 %v1143_v41, %v776_v40  ;;  %v1375_v51 = vor.u32 %v1142_v48, %v778_v49  ;;  %v504_v53 = vsel %vm168_vm0, %v1041_v46, 0  ;;  %v1182_v54 = vld [vmem:[%s1509_s0 + $0x130] sm:$0xff]  ;;  %v1181_v58 = vld [vmem:[%s1509_s0 + $0x128] sm:$0xff]  ;;  %v1212_v19 = vmov 0  }
  0x10   :  { %359 = vmatpush.bf16.msra.mxu3 %v1173_v17  ;;  %v1168_v47 = vld [vmem:[%s1509_s0 + $0xc0] sm:$0xff]  ;;  %v1198_v55 = vld [vmem:[%s1509_s0 + $0x1b0] sm:$0xff]  ;;  %v1197_v59 = vld [vmem:[%s1509_s0 + $0x1a8] sm:$0xff]  ;;  %1210 = vset.pattern.permute.xlu0 %v1212_v19 }
  0x11   :  { %v1206_v56 = vld [vmem:[%s1509_s0 + $0x1f0] sm:$0xff]  ;;  %v1205_v60 = vld [vmem:[%s1509_s0 + $0x1e8] sm:$0xff]  ;;  %v1180_v63 = vld [vmem:[%s1509_s0 + $0x120] sm:$0xff]  ;;  %1211 = vset.pattern.permute.xlu1 %v1212_v19 }
  0x12   :  { %176 = vmatpush.bf16.msra.mxu0 %v1147_v22  ;;  %v1190_v57 = vld [vmem:[%s1509_s0 + $0x170] sm:$0xff]  ;;  %v1189_v61 = vld [vmem:[%s1509_s0 + $0x168] sm:$0xff]  ;;  %v1196_v0 = vld [vmem:[%s1509_s0 + $0x1a0] sm:$0xff] }
  0x13   :  { %193 = vmatpush.bf16.msra.mxu1 %v1156_v20  ;;  %343 = vmatpush.bf16.msra.mxu2 %v1163_v23  ;;  %v18_v62 = vld [vmem:[%s1510_s1 + $0x10] sm:$0x33]  ;;  %v1204_v2 = vld [vmem:[%s1509_s0 + $0x1e0] sm:$0xff]  ;;  %v1179_v5 = vld [vmem:[%s1509_s0 + $0x118] sm:$0xff] }
  0x14   :  { %360 = vmatpush.bf16.msra.mxu3 %v1172_v21  ;;  %v58_v1 = vunpack.c.l.b16 %v18_v62  ;;  %v1188_v3 = vld [vmem:[%s1509_s0 + $0x160] sm:$0xff]  ;;  %v59_v4 = vunpack.c.h.b16 %v18_v62  ;;  %v1195_v6 = vld [vmem:[%s1509_s0 + $0x198] sm:$0xff]  ;;  %v1178_v11 = vld [vmem:[%s1509_s0 + $0x110] sm:$0xff] }
  0x15   :  { %v1203_v8 = vld [vmem:[%s1509_s0 + $0x1d8] sm:$0xff]  ;;  %v1194_v12 = vld [vmem:[%s1509_s0 + $0x190] sm:$0xff]  ;;  %v1177_v15 = vld [vmem:[%s1509_s0 + $0x108] sm:$0xff] }
  0x16   :  { %177 = vmatpush.bf16.msra.mxu0 %v1146_v26  ;;  %v62_v7 = vpack.c.b16 %v58_v1, %v58_v1  ;;  %v1187_v9 = vld [vmem:[%s1509_s0 + $0x158] sm:$0xff]  ;;  %v63_v10 = vpack.c.b16 %v59_v4, %v59_v4  ;;  %v1202_v13 = vld [vmem:[%s1509_s0 + $0x1d0] sm:$0xff]  ;;  %v1193_v16 = vld [vmem:[%s1509_s0 + $0x188] sm:$0xff] }
  0x17   :  { %194 = vmatpush.bf16.msra.mxu1 %v1155_v24  ;;  %344 = vmatpush.bf16.msra.mxu2 %v1162_v27  ;;  %v1186_v14 = vld [vmem:[%s1509_s0 + $0x150] sm:$0xff]  ;;  %v739_v17 = vld [vmem:[%s1511_s2] sm:$0xff]  ;;  %v1201_v20 = vld [vmem:[%s1509_s0 + $0x1c8] sm:$0xff] }
  0x18   :  { %361 = vmatpush.bf16.msra.mxu3 %v1171_v25  ;;  %v741_v18 = vld [vmem:[%s1511_s2 + $0x10] sm:$0xf]  ;;  %v1185_v21 = vld [vmem:[%s1509_s0 + $0x148] sm:$0xff]  ;;  %744 = vperm.xlu0 %1210, %v739_v17   ;;  %v1176_v22 = vld [vmem:[%s1509_s0 + $0x100] sm:$0xff] }
  0x19   :  { %754 = vperm.xlu1 %1211, %v741_v18   ;;  %v1192_v23 = vld [vmem:[%s1509_s0 + $0x180] sm:$0xff]  ;;  %v740_v26 = vld [vmem:[%s1511_s2 + $0x8] sm:$0xff] }
  0x1a   :  { %178 = vmatpush.bf16.msra.mxu0 %v1145_v30  ;;  %v1200_v24 = vld [vmem:[%s1509_s0 + $0x1c0] sm:$0xff] }
  0x1b   :  { %195 = vmatpush.bf16.msra.mxu1 %v1154_v28  ;;  %345 = vmatpush.bf16.msra.mxu2 %v1161_v31  ;;  %v1184_v25 = vld [vmem:[%s1509_s0 + $0x140] sm:$0xff] }
  0x1c   :  { %362 = vmatpush.bf16.msra.mxu3 %v1170_v29 }
  0x1e   :  { %179 = vmatpush.bf16.msra.mxu0 %v1144_v38 }
  0x1f   :  { %196 = vmatpush.bf16.msra.mxu1 %v1153_v32  ;;  %346 = vmatpush.bf16.msra.mxu2 %v1160_v39 }
  0x20   :  { %363 = vmatpush.bf16.msra.mxu3 %v1169_v33  ;;  %749 = vperm.xlu0 %1210, %v740_v26  }
  0x21   :  { %180 = vmatmul.bf16.vlgmr.msra.gmra.mxu0 %v1373_v50 }
  0x22   :  { %506 = vmatpush.bf16.msrb.mxu0 %v1183_v42  ;;  %347 = vmatmul.bf16.vlgmr.msra.gmra.mxu2 %v1373_v50 }
  0x23   :  { %673 = vmatpush.bf16.msrb.mxu2 %v1199_v43  ;;  %197 = vmatpush.bf16.msra.mxu1 %v1152_v44 }
  0x24   :  { %364 = vmatpush.bf16.msra.mxu3 %v1168_v47 }
  0x26   :  { %846 = vmatmul.msk.bf16.vlgmr.msra.gmra.mxu1 %vm161_vm1, %v1375_v51  ;;  %507 = vmatpush.bf16.msrb.mxu0 %v1182_v54 }
  0x27   :  { %524 = vmatpush.bf16.msrb.mxu1 %v504_v53  ;;  %944 = vmatmul.msk.bf16.vlgmr.msra.gmra.mxu3 %vm161_vm1, %v1375_v51 }
  0x28   :  { %691 = vmatpush.bf16.msrb.mxu3 %v671_v52  ;;  %674 = vmatpush.bf16.msrb.mxu2 %v1198_v55 }
  0x2a   :  { %508 = vmatpush.bf16.msrb.mxu0 %v1181_v58 }
  0x2b   :  { %525 = vmatpush.bf16.msrb.mxu1 %v1190_v57 }
  0x2c   :  { %692 = vmatpush.bf16.msrb.mxu3 %v1206_v56  ;;  %675 = vmatpush.bf16.msrb.mxu2 %v1197_v59 }
  0x2e   :  { %509 = vmatpush.bf16.msrb.mxu0 %v1180_v63 }
  0x2f   :  { %526 = vmatpush.bf16.msrb.mxu1 %v1189_v61  ;;  %v1213_v61 = vmov 3  }
  0x30   :  { %693 = vmatpush.bf16.msrb.mxu3 %v1205_v60  ;;  %676 = vmatpush.bf16.msrb.mxu2 %v1196_v0 }
  0x31   :  { %185 = vmatmul.bf16.gmra.mxu0 %v62_v7 }
  0x32   :  { %510 = vmatpush.bf16.msrb.mxu0 %v1179_v5  ;;  %352 = vmatmul.bf16.gmra.mxu2 %v62_v7 }
  0x33   :  { %527 = vmatpush.bf16.msrb.mxu1 %v1188_v3 }
  0x34   :  { %694 = vmatpush.bf16.msrb.mxu3 %v1204_v2  ;;  %677 = vmatpush.bf16.msrb.mxu2 %v1195_v6 }
  0x36   :  { %847 = vmatmul.msk.bf16.gmra.mxu1 %vm161_vm1, %v63_v10  ;;  %511 = vmatpush.bf16.msrb.mxu0 %v1178_v11 }
  0x37   :  { %528 = vmatpush.bf16.msrb.mxu1 %v1187_v9  ;;  %945 = vmatmul.msk.bf16.gmra.mxu3 %vm161_vm1, %v63_v10 }
  0x38   :  { %695 = vmatpush.bf16.msrb.mxu3 %v1203_v8  ;;  %678 = vmatpush.bf16.msrb.mxu2 %v1194_v12 }
  0x3a   :  { %512 = vmatpush.bf16.msrb.mxu0 %v1177_v15 }
  0x3b   :  { %529 = vmatpush.bf16.msrb.mxu1 %v1186_v14 }
  0x3c   :  { %696 = vmatpush.bf16.msrb.mxu3 %v1202_v13  ;;  %679 = vmatpush.bf16.msrb.mxu2 %v1193_v16 }
  0x3e   :  { %513 = vmatpush.bf16.msrb.mxu0 %v1176_v22 }
  0x3f   :  { %530 = vmatpush.bf16.msrb.mxu1 %v1185_v21 }
  0x40   :  { %697 = vmatpush.bf16.msrb.mxu3 %v1201_v20  ;;  %680 = vmatpush.bf16.msrb.mxu2 %v1192_v23 }
  0x41   :  { %514 = vmatmul.bf16.vlgmr.msrb.gmra.mxu0 %v1373_v50 }
  0x43   :  { %531 = vmatpush.bf16.msrb.mxu1 %v1184_v25  ;;  %681 = vmatmul.bf16.vlgmr.msrb.gmra.mxu2 %v1373_v50 }
  0x44   :  { %698 = vmatpush.bf16.msrb.mxu3 %v1200_v24 }
  0x46   :  { %1042 = vmatmul.msk.bf16.vlgmr.msrb.gmra.mxu1 %vm161_vm1, %v1375_v51 }
  0x47   :  { %1140 = vmatmul.msk.bf16.vlgmr.msrb.gmra.mxu3 %vm161_vm1, %v1375_v51 }
  0x51   :  { %519 = vmatmul.bf16.gmra.mxu0 %v62_v7 }
  0x53   :  { %686 = vmatmul.bf16.gmra.mxu2 %v62_v7 }
  0x56   :  { %1043 = vmatmul.msk.bf16.gmra.mxu1 %vm161_vm1, %v63_v10 }
  0x57   :  { %1141 = vmatmul.msk.bf16.gmra.mxu3 %vm161_vm1, %v63_v10 }
  0x8a   :  { %v745_v53 = vpop.permute.xlu0 %744 }
  0x8b   :  { %v755_v26 = vpop.permute.xlu1 %754 }
  0x92   :  { %v750_v9 = vpop.permute.xlu0 %749 }
  0x9e   :  { %v181_v27 = vpop.f32.mrf.mxu0 }
  0xa3   :  { %v199_v28 = vpop.f32.mrf.mxu1 }
  0xa4   :  { %v200_v46 = vadd.f32 %v199_v28, %v181_v27 }
  0xa5   :  { %v348_v29 = vpop.f32.mrf.mxu2 }
  0xa6   :  { %v183_v31 = vpop.f32.mrf.mxu0 }
  0xaa   :  { %v366_v30 = vpop.f32.mrf.mxu3 }
  0xab   :  { %v201_v32 = vpop.f32.mrf.mxu1  ;;  %v367_v47 = vadd.f32 %v366_v30, %v348_v29 }
  0xac   :  { %v202_v60 = vadd.f32 %v201_v32, %v183_v31 }
  0xad   :  { %v350_v33 = vpop.f32.mrf.mxu2  ;;  %v709_v54 = vmax.f32 %v200_v46, %v367_v47 }
  0xae   :  { %v186_v35 = vpop.f32.mrf.mxu0 }
  0xb2   :  { %v368_v34 = vpop.f32.mrf.mxu3 }
  0xb3   :  { %v204_v36 = vpop.f32.mrf.mxu1  ;;  %v369_v58 = vadd.f32 %v368_v34, %v350_v33 }
  0xb4   :  { %v205_v11 = vadd.f32 %v204_v36, %v186_v35 }
  0xb5   :  { %v353_v37 = vpop.f32.mrf.mxu2  ;;  %v710_v7 = vmax.f32 %v202_v60, %v369_v58 }
  0xb6   :  { %v188_v39 = vpop.f32.mrf.mxu0 }
  0xba   :  { %v371_v38 = vpop.f32.mrf.mxu3 }
  0xbb   :  { %v206_v40 = vpop.f32.mrf.mxu1  ;;  %v372_v12 = vadd.f32 %v371_v38, %v353_v37 }
  0xbd   :  { %v355_v41 = vpop.f32.mrf.mxu2  ;;  %v711_v24 = vmax.f32 %v205_v11, %v372_v12 }
  0xbe   :  { %v515_v43 = vpop.f32.mrf.mxu0 }
  0xc2   :  { %v373_v42 = vpop.f32.mrf.mxu3 }
  0xc3   :  { %v533_v44 = vpop.f32.mrf.mxu1 }
  0xc4   :  { %v534_v48 = vadd.f32 %v533_v44, %v515_v43 }
  0xc6   :  { %v682_v45 = vpop.f32.mrf.mxu2  ;;  %v517_v50 = vpop.f32.mrf.mxu0 }
  0xca   :  { %v700_v49 = vpop.f32.mrf.mxu3 }
  0xcb   :  { %v701_v51 = vadd.f32 %v700_v49, %v682_v45  ;;  %v535_v52 = vpop.f32.mrf.mxu1 }
  0xcc   :  { %v536_v63 = vadd.f32 %v535_v52, %v517_v50 }
  0xcd   :  { %v712_v55 = vmax.f32 %v534_v48, %v701_v51 }
  0xce   :  { %v684_v57 = vpop.f32.mrf.mxu2  ;;  %v520_v1 = vpop.f32.mrf.mxu0 }
  0xcf   :  { %v715_v56 = vmax.f32 %v709_v54, %v712_v55 }
  0xd1   :  { %vm721_vm2 = vcmp.eq.f32.partialorder %v367_v47, %v715_v56  ;;  %vm724_vm3 = vcmp.eq.f32.partialorder %v534_v48, %v715_v56  ;;  %v757_v59 = vadd.f32 %v745_v53, %v715_v56  ;;  %vm718_vm4 = vcmp.eq.f32.partialorder %v200_v46, %v715_v56 }
  0xd2   :  { %v727_v62 = vsel %vm724_vm3, 2, %v1213_v61  ;;  %v702_v0 = vpop.f32.mrf.mxu3 }
  0xd3   :  { %v730_v2 = vsel %vm721_vm2, 1, %v727_v62  ;;  %v760_v3 = vmax.f32 %v757_v59, 0.0  ;;  %v703_v4 = vadd.f32 %v702_v0, %v684_v57  ;;  %v538_v6 = vpop.f32.mrf.mxu1 }
  0xd4   :  { %v733_v5 = vsel %vm718_vm4, 0, %v730_v2  ;;  %v539_v14 = vadd.f32 %v538_v6, %v520_v1 }
  0xd5   :  { %736 = vst [vmem:[%s1512_s4] sm:$0xff] %v733_v5  ;;  %v713_v8 = vmax.f32 %v536_v63, %v703_v4 }
  0xd6   :  { %763 = vst [vmem:[%s1513_s3] sm:$0xff] %v760_v3  ;;  %v687_v13 = vpop.f32.mrf.mxu2  ;;  %v522_v18 = vpop.f32.mrf.mxu0 }
  0xd7   :  { %v716_v10 = vmax.f32 %v710_v7, %v713_v8 }
  0xd9   :  { %vm722_vm5 = vcmp.eq.f32.partialorder %v369_v58, %v716_v10  ;;  %vm725_vm6 = vcmp.eq.f32.partialorder %v536_v63, %v716_v10  ;;  %v758_v15 = vadd.f32 %v750_v9, %v716_v10  ;;  %vm719_vm7 = vcmp.eq.f32.partialorder %v202_v60, %v716_v10 }
  0xda   :  { %v728_v16 = vsel %vm725_vm6, 2, %v1213_v61  ;;  %v705_v17 = vpop.f32.mrf.mxu3 }
  0xdb   :  { %v731_v19 = vsel %vm722_vm5, 1, %v728_v16  ;;  %v761_v20 = vmax.f32 %v758_v15, 0.0  ;;  %v706_v21 = vadd.f32 %v705_v17, %v687_v13  ;;  %v540_v23 = vpop.f32.mrf.mxu1 }
  0xdc   :  { %v734_v22 = vsel %vm719_vm7, 0, %v731_v19 }
  0xdd   :  { %737 = vst [vmem:[%s1512_s4 + $0x8] sm:$0xff] %v734_v22  ;;  %v714_v25 = vmax.f32 %v539_v14, %v706_v21 }
  0xde   :  { %764 = vst [vmem:[%s1513_s3 + $0x8] sm:$0xff] %v761_v20  ;;  %v689_v28 = vpop.f32.mrf.mxu2 }
  0xdf   :  { %v717_v27 = vmax.f32 %v711_v24, %v714_v25 }
  0xe1   :  { %vm723_vm8 = vcmp.eq.f32.partialorder %v372_v12, %v717_v27  ;;  %vm726_vm9 = vcmp.eq.f32.partialorder %v539_v14, %v717_v27  ;;  %v759_v29 = vadd.f32 %v755_v26, %v717_v27  ;;  %vm720_vm10 = vcmp.eq.f32.partialorder %v205_v11, %v717_v27 }
  0xe2   :  { %v729_v30 = vsel %vm726_vm9, 2, %v1213_v61  ;;  %v707_v31 = vpop.f32.mrf.mxu3 }
  0xe3   :  { %v732_v32 = vsel %vm723_vm8, 1, %v729_v30  ;;  %v762_v33 = vmax.f32 %v759_v29, 0.0 }
  0xe4   :  { %v735_v34 = vsel %vm720_vm10, 0, %v732_v32 }
  0xe5   :  { %738 = vst [vmem:[%s1512_s4 + $0x10] sm:$0xf] %v735_v34 }
  0xe6   :  { %765 = vst [vmem:[%s1513_s3 + $0x10] sm:$0xf] %v762_v33 }

// kernel: net_forward.9
= control target key start
LH: loop header
LB: loop body
LE: loop exit
PB: predicated region body
PF: predicated region fallthrough
CT: control target
= control target key end

     0   :  { %vm41_vm0 = vcmask 261120   ;;  %vm44_vm1 = vcmask 257024   ;;  %s140_s0 = inlined_call_operand.vmem [shape: f32[20,32], index: 0, kind: input, shape index: {}]   ;;  %s141_s1 = inlined_call_operand.vmem [shape: s32[20,32], index: 1, kind: input, shape index: {}]   ;;  %s142_s2 = inlined_call_operand.vmem [shape: f32[4,20,32], index: 2, kind: output, shape index: {}]  }
   0x1   :  { %v11_v0 = vld [vmem:[%s140_s0] sm:$0xff]  ;;  %v12_v2 = vld [vmem:[%s140_s0 + $0x8] sm:$0xff]  ;;  %v13_v4 = vld [vmem:[%s140_s0 + $0x10] sm:$0xf] }
   0x2   :  { %v14_v1 = vld [vmem:[%s141_s1] sm:$0xff]  ;;  %v15_v3 = vld [vmem:[%s141_s1 + $0x8] sm:$0xff]  ;;  %v16_v5 = vld [vmem:[%s141_s1 + $0x10] sm:$0xf] }
   0x3   :  { %vm17_vm2 = vcmp.eq.s32.totalorder %v14_v1, 0  ;;  %vm18_vm3 = vcmp.eq.s32.totalorder %v15_v3, 0  ;;  %vm19_vm4 = vcmp.eq.s32.totalorder %v16_v5, 0  ;;  %vm23_vm5 = vcmp.eq.s32.totalorder %v14_v1, 1 }
   0x4   :  { %v20_v6 = vsel %vm17_vm2, %v11_v0, 0.0  ;;  %v21_v7 = vsel %vm18_vm3, %v12_v2, 0.0  ;;  %v22_v8 = vsel %vm19_vm4, %v13_v4, 0.0  ;;  %v26_v9 = vsel %vm23_vm5, %v11_v0, 0.0 }
   0x5   :  { %42 = vst.msk [vmem:[%s142_s2] sm:$0xff] %vm41_vm0, %v20_v6  ;;  %vm24_vm6 = vcmp.eq.s32.totalorder %v15_v3, 1  ;;  %vm25_vm7 = vcmp.eq.s32.totalorder %v16_v5, 1  ;;  %vm29_vm8 = vcmp.eq.s32.totalorder %v14_v1, 2  ;;  %vm30_vm9 = vcmp.eq.s32.totalorder %v15_v3, 2 }
   0x6   :  { %43 = vst.msk [vmem:[%s142_s2 + $0x8] sm:$0xff] %vm41_vm0, %v21_v7  ;;  %v27_v10 = vsel %vm24_vm6, %v12_v2, 0.0  ;;  %v28_v11 = vsel %vm25_vm7, %v13_v4, 0.0  ;;  %vm31_vm10 = vcmp.eq.s32.totalorder %v16_v5, 2  ;;  %v32_v12 = vsel %vm29_vm8, %v11_v0, 0.0 }
   0x7   :  { %45 = vst.msk [vmem:[%s142_s2 + $0x10] sm:$0xf] %vm44_vm1, %v22_v8  ;;  %vm35_vm11 = vcmp.eq.s32.totalorder %v14_v1, 3  ;;  %v33_v13 = vsel %vm30_vm9, %v12_v2, 0.0  ;;  %vm36_vm12 = vcmp.eq.s32.totalorder %v15_v3, 3  ;;  %v34_v14 = vsel %vm31_vm10, %v13_v4, 0.0 }
   0x8   :  { %46 = vst.msk [vmem:[%s142_s2 + $0x18] sm:$0xff] %vm41_vm0, %v26_v9  ;;  %vm37_vm13 = vcmp.eq.s32.totalorder %v16_v5, 3  ;;  %v38_v15 = vsel %vm35_vm11, %v11_v0, 0.0  ;;  %v39_v16 = vsel %vm36_vm12, %v12_v2, 0.0 }
   0x9   :  { %47 = vst.msk [vmem:[%s142_s2 + $0x20] sm:$0xff] %vm41_vm0, %v27_v10  ;;  %v40_v17 = vsel %vm37_vm13, %v13_v4, 0.0 }
   0xa   :  { %48 = vst.msk [vmem:[%s142_s2 + $0x28] sm:$0xf] %vm44_vm1, %v28_v11 }
   0xb   :  { %49 = vst.msk [vmem:[%s142_s2 + $0x30] sm:$0xff] %vm41_vm0, %v32_v12 }
   0xc   :  { %50 = vst.msk [vmem:[%s142_s2 + $0x38] sm:$0xff] %vm41_vm0, %v33_v13 }
   0xd   :  { %51 = vst.msk [vmem:[%s142_s2 + $0x40] sm:$0xf] %vm44_vm1, %v34_v14 }
   0xe   :  { %52 = vst.msk [vmem:[%s142_s2 + $0x48] sm:$0xff] %vm41_vm0, %v38_v15 }
   0xf   :  { %53 = vst.msk [vmem:[%s142_s2 + $0x50] sm:$0xff] %vm41_vm0, %v39_v16 }
  0x10   :  { %54 = vst.msk [vmem:[%s142_s2 + $0x58] sm:$0xf] %vm44_vm1, %v40_v17 }

// kernel: net_forward.8
= control target key start
LH: loop header
LB: loop body
LE: loop exit
PB: predicated region body
PF: predicated region fallthrough
CT: control target
= control target key end

     0   :  { %vm159_vm0 = vcmask 1041408   ;;  %vm79_vm1 = vcmask 523264   ;;  %vm155_vm2 = vcmask 408576   ;;  %vm190_vm3 = vcmask 80896   ;;  %s640_s1 = inlined_call_operand.vmem [shape: f32[320,50], index: 1, kind: input, shape index: {}]   ;;  %s641_s3 = inlined_call_operand.vmem [shape: f32[50,10], index: 3, kind: input, shape index: {}]   ;;  %s642_s2 = inlined_call_operand.vmem [shape: f32[1,50], index: 2, kind: input, shape index: {}]   ;;  %s643_s0 = inlined_call_operand.vmem [shape: f32[8,320], index: 0, kind: input, shape index: {}]   ;;  %s644_s4 = inlined_call_operand.vmem [shape: f32[1,10], index: 4, kind: input, shape index: {}]   ;;  %s645_s5 = inlined_call_operand.vmem [shape: f32[10,50], index: 5, kind: input, shape index: {}]   ;;  %s646_s6 = inlined_call_operand.vmem [shape: f32[1,50], index: 6, kind: input, shape index: {}]   ;;  %s647_s7 = inlined_call_operand.vmem [shape: f32[50,320], index: 7, kind: input, shape index: {}]   ;;  %s648_s8 = inlined_call_operand.vmem [shape: f32[1,320], index: 8, kind: input, shape index: {}]   ;;  %s649_s9 = inlined_call_operand.vmem [shape: f32[8,320], index: 9, kind: output, shape index: {}]  }
   0x1   :  { %v50_v0 = vld [vmem:[%s640_s1 + $0x78] sm:$0xff]  ;;  %v49_v1 = vld [vmem:[%s640_s1 + $0x70] sm:$0xff]  ;;  %v48_v4 = vld [vmem:[%s640_s1 + $0x68] sm:$0xff] }
   0x2   :  { %v66_v2 = vld [vmem:[%s640_s1 + $0xf8] sm:$0xff]  ;;  %83 = vmatpush.msra.mxu0 %v50_v0  ;;  %v65_v3 = vld [vmem:[%s640_s1 + $0xf0] sm:$0xff]  ;;  %v64_v5 = vld [vmem:[%s640_s1 + $0xe8] sm:$0xff] }
   0x3   :  { %103 = vmatpush.msra.mxu1 %v66_v2  ;;  %v47_v6 = vld [vmem:[%s640_s1 + $0x60] sm:$0xff]  ;;  %v74_v8 = vld [vmem:[%s640_s1 + $0x138] sm:$0xff]  ;;  %v73_v11 = vld [vmem:[%s640_s1 + $0x130] sm:$0xff] }
   0x4   :  { %84 = vmatpush.msra.mxu0 %v49_v1  ;;  %v63_v7 = vld [vmem:[%s640_s1 + $0xe0] sm:$0xff]  ;;  %v46_v9 = vld [vmem:[%s640_s1 + $0x58] sm:$0xff]  ;;  %131 = vmatpush.msra.mxu2 %v74_v8  ;;  %v72_v12 = vld [vmem:[%s640_s1 + $0x128] sm:$0xff] }
   0x5   :  { %104 = vmatpush.msra.mxu1 %v65_v3  ;;  %v62_v10 = vld [vmem:[%s640_s1 + $0xd8] sm:$0xff]  ;;  %v45_v13 = vld [vmem:[%s640_s1 + $0x50] sm:$0xff]  ;;  %v71_v15 = vld [vmem:[%s640_s1 + $0x120] sm:$0xff] }
   0x6   :  { %85 = vmatpush.msra.mxu0 %v48_v4  ;;  %v61_v14 = vld [vmem:[%s640_s1 + $0xd0] sm:$0xff]  ;;  %132 = vmatpush.msra.mxu2 %v73_v11  ;;  %v44_v16 = vld [vmem:[%s640_s1 + $0x48] sm:$0xff]  ;;  %v70_v18 = vld [vmem:[%s640_s1 + $0x118] sm:$0xff] }
   0x7   :  { %105 = vmatpush.msra.mxu1 %v64_v5  ;;  %v60_v17 = vld [vmem:[%s640_s1 + $0xc8] sm:$0xff]  ;;  %v43_v19 = vld [vmem:[%s640_s1 + $0x40] sm:$0xff]  ;;  %v69_v21 = vld [vmem:[%s640_s1 + $0x110] sm:$0xff] }
   0x8   :  { %86 = vmatpush.msra.mxu0 %v47_v6  ;;  %133 = vmatpush.msra.mxu2 %v72_v12  ;;  %v59_v20 = vld [vmem:[%s640_s1 + $0xc0] sm:$0xff]  ;;  %v42_v22 = vld [vmem:[%s640_s1 + $0x38] sm:$0xff]  ;;  %v150_v24 = vld [vmem:[%s641_s3 + $0x30] sm:$0x3] }
   0x9   :  { %106 = vmatpush.msra.mxu1 %v63_v7  ;;  %v58_v23 = vld [vmem:[%s640_s1 + $0xb8] sm:$0xff]  ;;  %v68_v25 = vld [vmem:[%s640_s1 + $0x108] sm:$0xff]  ;;  %v41_v27 = vld [vmem:[%s640_s1 + $0x30] sm:$0xff]  ;;  %326 = vmatpush.msk.msra.mxu3 %vm159_vm0, %v150_v24 }
   0xa   :  { %87 = vmatpush.msra.mxu0 %v46_v9  ;;  %134 = vmatpush.msra.mxu2 %v71_v15  ;;  %v149_v26 = vld [vmem:[%s641_s3 + $0x28] sm:$0xff]  ;;  %v57_v28 = vld [vmem:[%s640_s1 + $0xb0] sm:$0xff]  ;;  %v67_v29 = vld [vmem:[%s640_s1 + $0x100] sm:$0xff] }
   0xb   :  { %107 = vmatpush.msra.mxu1 %v62_v10  ;;  %v40_v30 = vld [vmem:[%s640_s1 + $0x28] sm:$0xff]  ;;  %173 = vmatpush.msra.mxu3 %v149_v26  ;;  %v34_v32 = vld [vmem:[%s643_s0 + $0x10] sm:$0xff]  ;;  %v39_v33 = vld [vmem:[%s640_s1 + $0x20] sm:$0xff] }
   0xc   :  { %88 = vmatpush.msra.mxu0 %v45_v13  ;;  %135 = vmatpush.msra.mxu2 %v70_v18  ;;  %v56_v31 = vld [vmem:[%s640_s1 + $0xa8] sm:$0xff]  ;;  %v55_v34 = vld [vmem:[%s640_s1 + $0xa0] sm:$0xff]  ;;  %v38_v35 = vld [vmem:[%s640_s1 + $0x18] sm:$0xff] }
   0xd   :  { %108 = vmatpush.msra.mxu1 %v61_v14  ;;  %v54_v36 = vld [vmem:[%s640_s1 + $0x98] sm:$0xff]  ;;  %v37_v37 = vld [vmem:[%s640_s1 + $0x10] sm:$0xff]  ;;  %v36_v39 = vld [vmem:[%s640_s1 + $0x8] sm:$0xff] }
   0xe   :  { %89 = vmatpush.msra.mxu0 %v44_v16  ;;  %136 = vmatpush.msra.mxu2 %v69_v21  ;;  %v53_v38 = vld [vmem:[%s640_s1 + $0x90] sm:$0xff]  ;;  %v52_v40 = vld [vmem:[%s640_s1 + $0x88] sm:$0xff]  ;;  %v35_v41 = vld [vmem:[%s640_s1] sm:$0xff] }
   0xf   :  { %109 = vmatpush.msra.mxu1 %v60_v17  ;;  %v51_v42 = vld [vmem:[%s640_s1 + $0x80] sm:$0xff]  ;;  %v33_v44 = vld [vmem:[%s643_s0 + $0x8] sm:$0xff]  ;;  %v147_v46 = vld [vmem:[%s641_s3 + $0x18] sm:$0xff] }
  0x10   :  { %90 = vmatpush.msra.mxu0 %v43_v19  ;;  %137 = vmatpush.msra.mxu2 %v68_v25  ;;  %v32_v43 = vld [vmem:[%s643_s0] sm:$0xff]  ;;  %v146_v47 = vld [vmem:[%s641_s3 + $0x10] sm:$0xff]  ;;  %v145_v48 = vld [vmem:[%s641_s3 + $0x8] sm:$0xff] }
  0x11   :  { %110 = vmatpush.msra.mxu1 %v59_v20  ;;  %v148_v45 = vld [vmem:[%s641_s3 + $0x20] sm:$0xff]  ;;  %v185_v50 = vld [vmem:[%s645_s5 + $0x8] sm:$0x3]  ;;  %v235_v60 = vld [vmem:[%s647_s7 + $0x90] sm:$0x3] }
  0x12   :  { %91 = vmatpush.msra.mxu0 %v42_v22  ;;  %138 = vmatpush.msra.mxu2 %v67_v29  ;;  %v144_v49 = vld [vmem:[%s641_s3] sm:$0xff]  ;;  %v232_v61 = vld [vmem:[%s647_s7 + $0x78] sm:$0xff]  ;;  %v230_v1 = vld [vmem:[%s647_s7 + $0x68] sm:$0xff] }
  0x13   :  { %111 = vmatpush.msra.mxu1 %v58_v23  ;;  %325 = vmatmul.msk.f32.vlgmr.msra.gmra.mxu2 %vm79_vm1, %v34_v32  ;;  %v336_v51 = vld [vmem:[%s642_s2] ss:$0 sm:$0xff]  ;;  %v236_v62 = vld [vmem:[%s647_s7 + $0x98] sm:$0x3]  ;;  %v226_v2 = vld [vmem:[%s647_s7 + $0x48] sm:$0xff] }
  0x14   :  { %92 = vmatpush.msra.mxu0 %v41_v27  ;;  %174 = vmatpush.msra.mxu3 %v148_v45  ;;  %v184_v59 = vld [vmem:[%s645_s5] sm:$0xff]  ;;  %v227_v3 = vld [vmem:[%s647_s7 + $0x50] sm:$0xff]  ;;  %v224_v5 = vld [vmem:[%s647_s7 + $0x38] sm:$0xff] }
  0x15   :  { %112 = vmatpush.msra.mxu1 %v57_v28  ;;  %330 = vmatpush.msk.msrb.mxu2 %vm159_vm0, %v235_v60  ;;  %v233_v63 = vld [vmem:[%s647_s7 + $0x80] sm:$0xff]  ;;  %v223_v4 = vld [vmem:[%s647_s7 + $0x30] sm:$0xff]  ;;  %v220_v6 = vld [vmem:[%s647_s7 + $0x18] sm:$0xff] }
  0x16   :  { %93 = vmatpush.msra.mxu0 %v40_v30  ;;  %175 = vmatpush.msra.mxu3 %v147_v46  ;;  %v229_v0 = vld [vmem:[%s647_s7 + $0x60] sm:$0xff]  ;;  %v234_v14 = vld [vmem:[%s647_s7 + $0x88] sm:$0xff]  ;;  %v231_v16 = vld [vmem:[%s647_s7 + $0x70] sm:$0xff] }
  0x17   :  { %113 = vmatpush.msra.mxu1 %v56_v31  ;;  %268 = vmatpush.msrb.mxu2 %v232_v61  ;;  %v217_v7 = vld [vmem:[%s647_s7] sm:$0xff]  ;;  %v218_v15 = vld [vmem:[%s647_s7 + $0x8] sm:$0xff]  ;;  %v228_v17 = vld [vmem:[%s647_s7 + $0x58] sm:$0xff] }
  0x18   :  { %94 = vmatpush.msra.mxu0 %v39_v33  ;;  %176 = vmatpush.msra.mxu3 %v146_v47  ;;  %v237_v8 = vld [vmem:[%s647_s7 + $0xa0] sm:$0x3]  ;;  %v222_v19 = vld [vmem:[%s647_s7 + $0x28] sm:$0xff]  ;;  %v219_v20 = vld [vmem:[%s647_s7 + $0x10] sm:$0xff] }
  0x19   :  { %114 = vmatpush.msra.mxu1 %v55_v34  ;;  %269 = vmatpush.msrb.mxu2 %v229_v0  ;;  %v337_v9 = vld [vmem:[%s644_s4] ss:$0 sm:$0xff] }
  0x1a   :  { %95 = vmatpush.msra.mxu0 %v38_v35  ;;  %177 = vmatpush.msra.mxu3 %v145_v48  ;;  %v221_v13 = vld [vmem:[%s647_s7 + $0x20] sm:$0xff] }
  0x1b   :  { %115 = vmatpush.msra.mxu1 %v54_v36  ;;  %270 = vmatpush.msrb.mxu2 %v226_v2  ;;  %v225_v18 = vld [vmem:[%s647_s7 + $0x40] sm:$0xff] }
  0x1c   :  { %96 = vmatpush.msra.mxu0 %v37_v37  ;;  %178 = vmatpush.msra.mxu3 %v144_v49  ;;  %v338_v21 = vld [vmem:[%s646_s6] ss:$0 sm:$0xff] }
  0x1d   :  { %116 = vmatpush.msra.mxu1 %v53_v38  ;;  %271 = vmatpush.msrb.mxu2 %v223_v4  ;;  %v238_v24 = vld [vmem:[%s648_s8] sm:$0x7] }
  0x1e   :  { %97 = vmatpush.msra.mxu0 %v36_v39  ;;  %328 = vmatpush.msk.msrb.mxu3 %vm159_vm0, %v185_v50  ;;  %v240_v25 = vperm.slane %v238_v24, 0  ;;  %v241_v26 = vperm.slane %v238_v24, 1  ;;  %v242_v31 = vperm.slane %v238_v24, 2 }
  0x1f   :  { %117 = vmatpush.msra.mxu1 %v52_v40  ;;  %272 = vmatpush.msrb.mxu2 %v220_v6 }
  0x20   :  { %98 = vmatpush.msra.mxu0 %v35_v41  ;;  %212 = vmatpush.msrb.mxu3 %v184_v59 }
  0x21   :  { %118 = vmatpush.msra.mxu1 %v51_v42  ;;  %99 = vmatmul.f32.vlgmr.msra.gmra.mxu0 %v32_v43 }
  0x22   :  { %119 = vmatmul.f32.vlgmr.msra.gmra.mxu1 %v33_v44  ;;  %273 = vmatpush.msrb.mxu2 %v217_v7 }
  0x24   :  { %334 = vmatpush.msk.msra.mxu2 %vm159_vm0, %v237_v8 }
  0x26   :  { %308 = vmatpush.msra.mxu2 %v234_v14 }
  0x28   :  { %309 = vmatpush.msra.mxu2 %v231_v16 }
  0x2a   :  { %310 = vmatpush.msra.mxu2 %v228_v17 }
  0x2c   :  { %311 = vmatpush.msra.mxu2 %v225_v18 }
  0x2e   :  { %312 = vmatpush.msra.mxu2 %v222_v19 }
  0x30   :  { %313 = vmatpush.msra.mxu2 %v219_v20 }
  0x96   :  { %v140_v55 = vpop.f32.mrf.mxu2 }
  0x9e   :  { %v100_v52 = vpop.f32.mrf.mxu0 }
  0x9f   :  { %v120_v53 = vpop.f32.mrf.mxu1  ;;  %v101_v54 = vadd.f32 %v336_v51, %v100_v52 }
  0xa1   :  { %v121_v56 = vadd.f32 %v120_v53, %v101_v54 }
  0xa3   :  { %v141_v57 = vadd.f32 %v140_v55, %v121_v56 }
  0xa5   :  { %v143_v58 = vmax.f32 %v141_v57, 0.0 }
  0xa7   :  { %327 = vmatmul.msk.f32.vlgmr.msra.gmra.mxu3 %vm155_vm2, %v143_v58 }
  0xa8   :  { %332 = vmatpush.msk.msra.mxu3 %vm159_vm0, %v236_v62 }
  0xaa   :  { %288 = vmatpush.msra.mxu3 %v233_v63 }
  0xac   :  { %289 = vmatpush.msra.mxu3 %v230_v1 }
  0xae   :  { %290 = vmatpush.msra.mxu3 %v227_v3 }
  0xb0   :  { %291 = vmatpush.msra.mxu3 %v224_v5 }
  0xb2   :  { %292 = vmatpush.msra.mxu3 %v221_v13 }
  0xb4   :  { %293 = vmatpush.msra.mxu3 %v218_v15 }
 0x12a   :  { %v180_v10 = vpop.f32.mrf.mxu3 }
 0x12b   :  { %v181_v11 = vadd.f32 %v337_v9, %v180_v10 }
 0x12d   :  { %v183_v12 = vmax.f32 %v181_v11, 0.0 }
 0x12f   :  { %329 = vmatmul.msk.f32.vlgmr.msrb.gmra.mxu3 %vm190_vm3, %v183_v12 }
 0x1b2   :  { %v214_v22 = vpop.f32.mrf.mxu3 }
 0x1b3   :  { %v215_v23 = vadd.f32 %v338_v21, %v214_v22 }
 0x1b5   :  { %331 = vmatmul.msk.f32.vlgmr.msrb.gmra.mxu2 %vm155_vm2, %v215_v23  ;;  %333 = vmatmul.msk.f32.vlgmr.msra.gmra.mxu3 %vm155_vm2, %v215_v23 }
 0x1bd   :  { %335 = vmatmul.msk.f32.vlgmr.msra.gmra.mxu2 %vm155_vm2, %v215_v23 }
 0x238   :  { %v275_v27 = vpop.f32.mrf.mxu2  ;;  %v295_v28 = vpop.f32.mrf.mxu3 }
 0x239   :  { %v276_v29 = vadd.f32 %v275_v27, %v240_v25  ;;  %v296_v30 = vadd.f32 %v295_v28, %v241_v26 }
 0x23b   :  { %318 = vst [vmem:[%s649_s9] sm:$0xff] %v276_v29 }
 0x23c   :  { %319 = vst [vmem:[%s649_s9 + $0x8] sm:$0xff] %v296_v30 }
 0x240   :  { %v315_v32 = vpop.f32.mrf.mxu2 }
 0x241   :  { %v316_v33 = vadd.f32 %v315_v32, %v242_v31 }
 0x243   :  { %320 = vst.msk [vmem:[%s649_s9 + $0x10] sm:$0xff] %vm79_vm1, %v316_v33 }

// kernel: net_forward.10
= control target key start
LH: loop header
LB: loop body
LE: loop exit
PB: predicated region body
PF: predicated region fallthrough
CT: control target
= control target key end

     0   :  { %vm686_vm0 = vcmask 1041408   ;;  %vm682_vm1 = vcmask 949248   ;;  %s2192_s0 = inlined_call_operand.vmem [shape: bf16[500,384], index: 0, kind: input, shape index: {}]   ;;  %s2193_s1 = inlined_call_operand.vmem [shape: bf16[10,500], index: 1, kind: input, shape index: {}]   ;;  %s2194_s2 = inlined_call_operand.vmem [shape: f32[10,1], index: 2, kind: input, shape index: {}]   ;;  %s2195_s3 = inlined_call_operand.vmem [shape: s32[10,384], index: 3, kind: input, shape index: {}]   ;;  %s2196_s4 = inlined_call_operand.vmem [shape: f32[4,10,384], index: 4, kind: output, shape index: {}]  }
   0x1   :  { %v1054_v0 = vld [vmem:[%s2192_s0 + $0xa8] sm:$0xf]  ;;  %v1369_v1 = vld [vmem:[%s2192_s0 + $0xb0] sm:$0xf0]  ;;  %v1042_v10 = vld [vmem:[%s2192_s0 + $0x90] sm:$0xf] }
   0x2   :  { %v1150_v2 = vld [vmem:[%s2192_s0 + $0x168] sm:$0xf]  ;;  %v1055_v3 = vor.u32 %v1369_v1, %v1054_v0  ;;  %v1393_v4 = vld [vmem:[%s2192_s0 + $0x170] sm:$0xf0]  ;;  %v1366_v11 = vld [vmem:[%s2192_s0 + $0x98] sm:$0xf0] }
   0x3   :  { %v1246_v5 = vld [vmem:[%s2192_s0 + $0x228] sm:$0xf]  ;;  %v1417_v6 = vld [vmem:[%s2192_s0 + $0x230] sm:$0xf0]  ;;  %v1151_v7 = vor.u32 %v1393_v4, %v1150_v2  ;;  %v1043_v13 = vor.u32 %v1366_v11, %v1042_v10  ;;  %v1138_v14 = vld [vmem:[%s2192_s0 + $0x150] sm:$0xf] }
   0x4   :  { %v1247_v8 = vor.u32 %v1417_v6, %v1246_v5  ;;  %v1489_v9 = vld [vmem:[%s2192_s0 + $0x2e8] sm:$0x33]  ;;  %696 = vmatpush.bf16.msra.mxu0 %v1055_v3  ;;  %v1390_v15 = vld [vmem:[%s2192_s0 + $0x158] sm:$0xf0]  ;;  %v1234_v16 = vld [vmem:[%s2192_s0 + $0x210] sm:$0xf] }
   0x5   :  { %v490_v12 = vunpack.c.l.b16 %v1489_v9  ;;  %710 = vmatpush.bf16.msra.mxu1 %v1151_v7  ;;  %v1139_v17 = vor.u32 %v1390_v15, %v1138_v14  ;;  %v1414_v18 = vld [vmem:[%s2192_s0 + $0x218] sm:$0xf0]  ;;  %v1330_v19 = vld [vmem:[%s2192_s0 + $0x2d0] sm:$0xf]  ;;  %v1030_v23 = vld [vmem:[%s2192_s0 + $0x78] sm:$0xf] }
   0x6   :  { %724 = vmatpush.bf16.msra.mxu2 %v1247_v8  ;;  %v1438_v20 = vld [vmem:[%s2192_s0 + $0x2d8] sm:$0xf0]  ;;  %v1235_v22 = vor.u32 %v1414_v18, %v1234_v16  ;;  %v1363_v24 = vld [vmem:[%s2192_s0 + $0x80] sm:$0xf0]  ;;  %v1126_v25 = vld [vmem:[%s2192_s0 + $0x138] sm:$0xf] }
   0x7   :  { %v586_v21 = vpack.c.b16 %v490_v12, %v490_v12  ;;  %v1387_v26 = vld [vmem:[%s2192_s0 + $0x140] sm:$0xf0]  ;;  %v1222_v27 = vld [vmem:[%s2192_s0 + $0x1f8] sm:$0xf]  ;;  %v1031_v30 = vor.u32 %v1363_v24, %v1030_v23  ;;  %v1331_v31 = vor.u32 %v1438_v20, %v1330_v19  ;;  %v1018_v34 = vld [vmem:[%s2192_s0 + $0x60] sm:$0xf]  ;;  %v491_v23 = vunpack.c.h.b16 %v1489_v9 }
   0x8   :  { %v1411_v28 = vld [vmem:[%s2192_s0 + $0x200] sm:$0xf0]  ;;  %697 = vmatpush.bf16.msra.mxu0 %v1043_v13  ;;  %v1127_v32 = vor.u32 %v1387_v26, %v1126_v25  ;;  %v1318_v33 = vld [vmem:[%s2192_s0 + $0x2b8] sm:$0xf]  ;;  %v1360_v35 = vld [vmem:[%s2192_s0 + $0x68] sm:$0xf0] }
   0x9   :  { %v688_v29 = vsel %vm686_vm0, %v586_v21, 0  ;;  %711 = vmatpush.bf16.msra.mxu1 %v1139_v17  ;;  %v1223_v36 = vor.u32 %v1411_v28, %v1222_v27  ;;  %v1435_v37 = vld [vmem:[%s2192_s0 + $0x2c0] sm:$0xf0]  ;;  %v1114_v38 = vld [vmem:[%s2192_s0 + $0x120] sm:$0xf]  ;;  %v1019_v42 = vor.u32 %v1360_v35, %v1018_v34 }
   0xa   :  { %738 = vmatpush.bf16.msra.mxu3 %v688_v29  ;;  %725 = vmatpush.bf16.msra.mxu2 %v1235_v22  ;;  %v1384_v39 = vld [vmem:[%s2192_s0 + $0x128] sm:$0xf0]  ;;  %v1210_v40 = vld [vmem:[%s2192_s0 + $0x1e0] sm:$0xf]  ;;  %v1319_v43 = vor.u32 %v1435_v37, %v1318_v33  ;;  %v1006_v46 = vld [vmem:[%s2192_s0 + $0x48] sm:$0xf] }
   0xb   :  { %v1408_v41 = vld [vmem:[%s2192_s0 + $0x1e8] sm:$0xf0]  ;;  %v1115_v44 = vor.u32 %v1384_v39, %v1114_v38  ;;  %v1306_v45 = vld [vmem:[%s2192_s0 + $0x2a0] sm:$0xf]  ;;  %v1357_v47 = vld [vmem:[%s2192_s0 + $0x50] sm:$0xf0] }
   0xc   :  { %698 = vmatpush.bf16.msra.mxu0 %v1031_v30  ;;  %v1211_v48 = vor.u32 %v1408_v41, %v1210_v40  ;;  %v1432_v49 = vld [vmem:[%s2192_s0 + $0x2a8] sm:$0xf0]  ;;  %v1102_v50 = vld [vmem:[%s2192_s0 + $0x108] sm:$0xf]  ;;  %v1381_v51 = vld [vmem:[%s2192_s0 + $0x110] sm:$0xf0]  ;;  %v1007_v54 = vor.u32 %v1357_v47, %v1006_v46 }
   0xd   :  { %712 = vmatpush.bf16.msra.mxu1 %v1127_v32  ;;  %v1198_v52 = vld [vmem:[%s2192_s0 + $0x1c8] sm:$0xf]  ;;  %v1405_v53 = vld [vmem:[%s2192_s0 + $0x1d0] sm:$0xf0]  ;;  %v1307_v55 = vor.u32 %v1432_v49, %v1306_v45  ;;  %v1103_v56 = vor.u32 %v1381_v51, %v1102_v50  ;;  %v994_v58 = vld [vmem:[%s2192_s0 + $0x30] sm:$0xf] }
   0xe   :  { %739 = vmatpush.bf16.msra.mxu3 %v1331_v31  ;;  %726 = vmatpush.bf16.msra.mxu2 %v1223_v36  ;;  %v1294_v57 = vld [vmem:[%s2192_s0 + $0x288] sm:$0xf]  ;;  %v1354_v59 = vld [vmem:[%s2192_s0 + $0x38] sm:$0xf0]  ;;  %v1199_v60 = vor.u32 %v1405_v53, %v1198_v52  ;;  %v1429_v61 = vld [vmem:[%s2192_s0 + $0x290] sm:$0xf0]  ;;  %v587_v36 = vpack.c.b16 %v491_v23, %v491_v23 }
   0xf   :  { %v1090_v62 = vld [vmem:[%s2192_s0 + $0xf0] sm:$0xf]  ;;  %v1378_v63 = vld [vmem:[%s2192_s0 + $0xf8] sm:$0xf0]  ;;  %v995_v2 = vor.u32 %v1354_v59, %v994_v58  ;;  %v1295_v3 = vor.u32 %v1429_v61, %v1294_v57  ;;  %v982_v6 = vld [vmem:[%s2192_s0 + $0x18] sm:$0xf] }
  0x10   :  { %699 = vmatpush.bf16.msra.mxu0 %v1019_v42  ;;  %v1186_v0 = vld [vmem:[%s2192_s0 + $0x1b0] sm:$0xf]  ;;  %v1402_v1 = vld [vmem:[%s2192_s0 + $0x1b8] sm:$0xf0]  ;;  %v1091_v4 = vor.u32 %v1378_v63, %v1090_v62  ;;  %v1351_v7 = vld [vmem:[%s2192_s0 + $0x20] sm:$0xf0] }
  0x11   :  { %713 = vmatpush.bf16.msra.mxu1 %v1115_v44  ;;  %v1282_v5 = vld [vmem:[%s2192_s0 + $0x270] sm:$0xf]  ;;  %v1187_v8 = vor.u32 %v1402_v1, %v1186_v0  ;;  %v1426_v10 = vld [vmem:[%s2192_s0 + $0x278] sm:$0xf0]  ;;  %v1078_v11 = vld [vmem:[%s2192_s0 + $0xd8] sm:$0xf]  ;;  %v983_v15 = vor.u32 %v1351_v7, %v982_v6 }
  0x12   :  { %740 = vmatpush.bf16.msra.mxu3 %v1319_v43  ;;  %727 = vmatpush.bf16.msra.mxu2 %v1211_v48  ;;  %v1375_v12 = vld [vmem:[%s2192_s0 + $0xe0] sm:$0xf0]  ;;  %v1174_v13 = vld [vmem:[%s2192_s0 + $0x198] sm:$0xf]  ;;  %v1283_v18 = vor.u32 %v1426_v10, %v1282_v5  ;;  %v970_v20 = vld [vmem:[%s2192_s0] sm:$0xf] }
  0x13   :  { %v1399_v14 = vld [vmem:[%s2192_s0 + $0x1a0] sm:$0xf0]  ;;  %v1270_v16 = vld [vmem:[%s2192_s0 + $0x258] sm:$0xf]  ;;  %v1079_v19 = vor.u32 %v1375_v12, %v1078_v11  ;;  %v1348_v21 = vld [vmem:[%s2192_s0 + $0x8] sm:$0xf0] }
  0x14   :  { %700 = vmatpush.bf16.msra.mxu0 %v1007_v54  ;;  %v1423_v17 = vld [vmem:[%s2192_s0 + $0x260] sm:$0xf0]  ;;  %v1066_v22 = vld [vmem:[%s2192_s0 + $0xc0] sm:$0xf]  ;;  %v1175_v24 = vor.u32 %v1399_v14, %v1174_v13  ;;  %v1372_v25 = vld [vmem:[%s2192_s0 + $0xc8] sm:$0xf0]  ;;  %v971_v30 = vor.u32 %v1348_v21, %v970_v20 }
  0x15   :  { %714 = vmatpush.bf16.msra.mxu1 %v1103_v56  ;;  %v1162_v26 = vld [vmem:[%s2192_s0 + $0x180] sm:$0xf]  ;;  %v1396_v27 = vld [vmem:[%s2192_s0 + $0x188] sm:$0xf0]  ;;  %v1056_v9 = vld [vmem:[%s2192_s0 + $0xb4] sm:$0xf0]  ;;  %v1271_v34 = vor.u32 %v1423_v17, %v1270_v16  ;;  %v1067_v35 = vor.u32 %v1372_v25, %v1066_v22 }
  0x16   :  { %741 = vmatpush.bf16.msra.mxu3 %v1307_v55  ;;  %728 = vmatpush.bf16.msra.mxu2 %v1199_v60  ;;  %v1368_v28 = vld [vmem:[%s2192_s0 + $0xac] sm:$0xf]  ;;  %v1152_v31 = vld [vmem:[%s2192_s0 + $0x174] sm:$0xf0]  ;;  %v1163_v37 = vor.u32 %v1396_v27, %v1162_v26  ;;  %v1258_v39 = vld [vmem:[%s2192_s0 + $0x240] sm:$0xf] }
  0x17   :  { %v1392_v29 = vld [vmem:[%s2192_s0 + $0x16c] sm:$0xf]  ;;  %v1248_v33 = vld [vmem:[%s2192_s0 + $0x234] sm:$0xf0]  ;;  %v1059_v38 = vor.u32 %v1368_v28, %v1056_v9  ;;  %v1365_v43 = vld [vmem:[%s2192_s0 + $0x94] sm:$0xf] }
  0x18   :  { %701 = vmatpush.bf16.msra.mxu0 %v995_v2  ;;  %v1416_v32 = vld [vmem:[%s2192_s0 + $0x22c] sm:$0xf]  ;;  %v1155_v41 = vor.u32 %v1392_v29, %v1152_v31  ;;  %v1044_v44 = vld [vmem:[%s2192_s0 + $0x9c] sm:$0xf0]  ;;  %v1389_v45 = vld [vmem:[%s2192_s0 + $0x154] sm:$0xf] }
  0x19   :  { %715 = vmatpush.bf16.msra.mxu1 %v1091_v4  ;;  %v1420_v40 = vld [vmem:[%s2192_s0 + $0x248] sm:$0xf0]  ;;  %v1251_v42 = vor.u32 %v1416_v32, %v1248_v33  ;;  %v1140_v46 = vld [vmem:[%s2192_s0 + $0x15c] sm:$0xf0]  ;;  %v1413_v47 = vld [vmem:[%s2192_s0 + $0x214] sm:$0xf]  ;;  %v1047_v53 = vor.u32 %v1365_v43, %v1044_v44 }
  0x1a   :  { %742 = vmatpush.bf16.msra.mxu3 %v1295_v3  ;;  %729 = vmatpush.bf16.msra.mxu2 %v1187_v8  ;;  %v1236_v48 = vld [vmem:[%s2192_s0 + $0x21c] sm:$0xf0]  ;;  %v1259_v49 = vor.u32 %v1420_v40, %v1258_v39  ;;  %v691_v50 = vsel %vm686_vm0, %v587_v36, 0  ;;  %v1437_v51 = vld [vmem:[%s2192_s0 + $0x2d4] sm:$0xf]  ;;  %v1143_v57 = vor.u32 %v1389_v45, %v1140_v46  ;;  %v1442_v20 = vmov 0  }
  0x1b   :  { %v1332_v52 = vld [vmem:[%s2192_s0 + $0x2dc] sm:$0xf0]  ;;  %v1362_v54 = vld [vmem:[%s2192_s0 + $0x7c] sm:$0xf]  ;;  %v1032_v55 = vld [vmem:[%s2192_s0 + $0x84] sm:$0xf0]  ;;  %v1239_v58 = vor.u32 %v1413_v47, %v1236_v48  ;;  %1441 = vset.pattern.permute.xlu0 %v1442_v20 }
  0x1c   :  { %702 = vmatpush.bf16.msra.mxu0 %v983_v15  ;;  %v1386_v56 = vld [vmem:[%s2192_s0 + $0x13c] sm:$0xf]  ;;  %v1128_v59 = vld [vmem:[%s2192_s0 + $0x144] sm:$0xf0]  ;;  %v1335_v62 = vor.u32 %v1437_v51, %v1332_v52  ;;  %v1035_v63 = vor.u32 %v1362_v54, %v1032_v55  ;;  %v1359_v2 = vld [vmem:[%s2192_s0 + $0x64] sm:$0xf] }
  0x1d   :  { %716 = vmatpush.bf16.msra.mxu1 %v1079_v19  ;;  %v1410_v60 = vld [vmem:[%s2192_s0 + $0x1fc] sm:$0xf]  ;;  %v1224_v61 = vld [vmem:[%s2192_s0 + $0x204] sm:$0xf0]  ;;  %v1346_v4 = vld [vmem:[%s2193_s1 + $0x14] sm:$0x10]  ;;  %v1131_v6 = vor.u32 %v1386_v56, %v1128_v59 }
  0x1e   :  { %743 = vmatpush.bf16.msra.mxu3 %v1283_v18  ;;  %730 = vmatpush.bf16.msra.mxu2 %v1175_v24  ;;  %v1434_v0 = vld [vmem:[%s2192_s0 + $0x2bc] sm:$0xf]  ;;  %v1320_v1 = vld [vmem:[%s2192_s0 + $0x2c4] sm:$0xf0]  ;;  %v954_v5 = vld [vmem:[%s2193_s1] sm:$0xf]  ;;  %v1227_v7 = vor.u32 %v1410_v60, %v1224_v61 }
  0x1f   :  { %v962_v3 = vld [vmem:[%s2193_s1 + $0x8] sm:$0xf]  ;;  %v1345_v10 = vld [vmem:[%s2193_s1 + $0xc] sm:$0x10]  ;;  %v1344_v11 = vld [vmem:[%s2193_s1 + $0xc] sm:$0xf]  ;;  %v1323_v22 = vor.u32 %v1434_v0, %v1320_v1 }
  0x20   :  { %703 = vmatpush.bf16.msra.mxu0 %v971_v30  ;;  %v1741_v8 = vor.u32 %v1346_v4, %v962_v3  ;;  %v964_v12 = vld [vmem:[%s2193_s1 + $0x18] sm:$0x10]  ;;  %v1020_v13 = vld [vmem:[%s2192_s0 + $0x6c] sm:$0xf0]  ;;  %v1383_v14 = vld [vmem:[%s2192_s0 + $0x124] sm:$0xf]  ;;  %v1758_v15 = vor.u32 %v1345_v10, %v954_v5 }
  0x21   :  { %717 = vmatpush.bf16.msra.mxu1 %v1067_v35  ;;  %v1760_v16 = vor.u32 %v1344_v11, %v964_v12  ;;  %v1116_v17 = vld [vmem:[%s2192_s0 + $0x12c] sm:$0xf0]  ;;  %v1407_v18 = vld [vmem:[%s2192_s0 + $0x1e4] sm:$0xf]  ;;  %v1023_v23 = vor.u32 %v1359_v2, %v1020_v13  ;;  %v956_v26 = vld [vmem:[%s2193_s1 + $0x10] sm:$0x10] }
  0x22   :  { %744 = vmatpush.bf16.msra.mxu3 %v1271_v34  ;;  %731 = vmatpush.bf16.msra.mxu2 %v1163_v37  ;;  %v1212_v19 = vld [vmem:[%s2192_s0 + $0x1ec] sm:$0xf0]  ;;  %v1431_v21 = vld [vmem:[%s2192_s0 + $0x2a4] sm:$0xf]  ;;  %v1119_v27 = vor.u32 %v1383_v14, %v1116_v17  ;;  %v1356_v9 = vld [vmem:[%s2192_s0 + $0x4c] sm:$0xf] }
  0x23   :  { %704 = vmatmul.bf16.vlgmr.msra.gmra.mxu0 %v1758_v15  ;;  %v1308_v24 = vld [vmem:[%s2192_s0 + $0x2ac] sm:$0xf0]  ;;  %v1343_v25 = vld [vmem:[%s2193_s1 + $0x4] sm:$0xf]  ;;  %v1215_v28 = vor.u32 %v1407_v18, %v1212_v19  ;;  %v1008_v29 = vld [vmem:[%s2192_s0 + $0x54] sm:$0xf0] }
  0x24   :  { %752 = vmatpush.bf16.msrb.mxu0 %v1059_v38  ;;  %v1380_v30 = vld [vmem:[%s2192_s0 + $0x10c] sm:$0xf]  ;;  %v1796_v31 = vor.u32 %v1343_v25, %v956_v26  ;;  %v1104_v32 = vld [vmem:[%s2192_s0 + $0x114] sm:$0xf0]  ;;  %v1311_v35 = vor.u32 %v1431_v21, %v1308_v24  ;;  %v1011_v36 = vor.u32 %v1356_v9, %v1008_v29  ;;  %v1377_v43 = vld [vmem:[%s2192_s0 + $0xf4] sm:$0xf] }
  0x25   :  { %766 = vmatpush.bf16.msrb.mxu1 %v1155_v41  ;;  %732 = vmatmul.bf16.vlgmr.msra.gmra.mxu2 %v1741_v8  ;;  %v1404_v33 = vld [vmem:[%s2192_s0 + $0x1cc] sm:$0xf]  ;;  %v1200_v34 = vld [vmem:[%s2192_s0 + $0x1d4] sm:$0xf0]  ;;  %v1107_v39 = vor.u32 %v1380_v30, %v1104_v32  ;;  %v1353_v41 = vld [vmem:[%s2192_s0 + $0x34] sm:$0xf] }
  0x26   :  { %780 = vmatpush.bf16.msrb.mxu2 %v1251_v42  ;;  %745 = vmatpush.bf16.msra.mxu3 %v1259_v49  ;;  %v1428_v37 = vld [vmem:[%s2192_s0 + $0x28c] sm:$0xf]  ;;  %v1296_v38 = vld [vmem:[%s2192_s0 + $0x294] sm:$0xf0]  ;;  %v1203_v40 = vor.u32 %v1404_v33, %v1200_v34  ;;  %v996_v42 = vld [vmem:[%s2192_s0 + $0x3c] sm:$0xf0] }
  0x27   :  { %718 = vmatmul.bf16.vlgmr.msra.gmra.mxu1 %v1796_v31  ;;  %v1092_v44 = vld [vmem:[%s2192_s0 + $0xfc] sm:$0xf0]  ;;  %v1401_v45 = vld [vmem:[%s2192_s0 + $0x1b4] sm:$0xf]  ;;  %v1299_v47 = vor.u32 %v1428_v37, %v1296_v38  ;;  %v999_v48 = vor.u32 %v1353_v41, %v996_v42  ;;  %v1350_v54 = vld [vmem:[%s2192_s0 + $0x1c] sm:$0xf] }
  0x28   :  { %753 = vmatpush.bf16.msrb.mxu0 %v1047_v53  ;;  %v1188_v46 = vld [vmem:[%s2192_s0 + $0x1bc] sm:$0xf0]  ;;  %v1425_v49 = vld [vmem:[%s2192_s0 + $0x274] sm:$0xf]  ;;  %v1095_v52 = vor.u32 %v1377_v43, %v1092_v44  ;;  %v984_v55 = vld [vmem:[%s2192_s0 + $0x24] sm:$0xf0] }
  0x29   :  { %767 = vmatpush.bf16.msrb.mxu1 %v1143_v57  ;;  %1340 = vmatmul.msk.bf16.vlgmr.msra.gmra.mxu3 %vm682_vm1, %v1760_v16  ;;  %v147_v51 = vld [vmem:[%s2194_s2] sm:$0xff]  ;;  %v1191_v53 = vor.u32 %v1401_v45, %v1188_v46  ;;  %v1374_v56 = vld [vmem:[%s2192_s0 + $0xdc] sm:$0xf]  ;;  %v1080_v57 = vld [vmem:[%s2192_s0 + $0xe4] sm:$0xf0] }
  0x2a   :  { %794 = vmatpush.bf16.msrb.mxu3 %v691_v50  ;;  %781 = vmatpush.bf16.msrb.mxu2 %v1239_v58  ;;  %v1284_v50 = vld [vmem:[%s2192_s0 + $0x27c] sm:$0xf0]  ;;  %v1398_v58 = vld [vmem:[%s2192_s0 + $0x19c] sm:$0xf]  ;;  %v1176_v59 = vld [vmem:[%s2192_s0 + $0x1a4] sm:$0xf0]  ;;  %v1083_v3 = vor.u32 %v1374_v56, %v1080_v57 }
  0x2b   :  { %151 = vperm.xlu0 %1441, %v147_v51   ;;  %v1422_v60 = vld [vmem:[%s2192_s0 + $0x25c] sm:$0xf]  ;;  %v146_v61 = vld [vmem:[%s2192_s0 + $0x2f0] sm:$0x3]  ;;  %v1272_v0 = vld [vmem:[%s2192_s0 + $0x264] sm:$0xf0]  ;;  %v1179_v4 = vor.u32 %v1398_v58, %v1176_v59 }
  0x2c   :  { %754 = vmatpush.bf16.msrb.mxu0 %v1035_v63  ;;  %v987_v63 = vor.u32 %v1350_v54, %v984_v55  ;;  %v1347_v1 = vld [vmem:[%s2192_s0 + $0x4] sm:$0xf]  ;;  %v972_v2 = vld [vmem:[%s2192_s0 + $0xc] sm:$0xf0]  ;;  %v1370_v12 = vld [vmem:[%s2192_s0 + $0xb8] sm:$0xf0]  ;;  %v492_v13 = vunpack.c.l.b16 %v146_v61  ;;  %v1275_v19 = vor.u32 %v1422_v60, %v1272_v0 }
  0x2d   :  { %768 = vmatpush.bf16.msrb.mxu1 %v1131_v6  ;;  %v1371_v5 = vld [vmem:[%s2192_s0 + $0xc4] sm:$0xf]  ;;  %v1068_v6 = vld [vmem:[%s2192_s0 + $0xcc] sm:$0xf0]  ;;  %v1394_v17 = vld [vmem:[%s2192_s0 + $0x178] sm:$0xf0]  ;;  %v975_v20 = vor.u32 %v1347_v1, %v972_v2 }
  0x2e   :  { %795 = vmatpush.bf16.msrb.mxu3 %v1335_v62  ;;  %782 = vmatpush.bf16.msrb.mxu2 %v1227_v7  ;;  %v1287_v62 = vor.u32 %v1425_v49, %v1284_v50  ;;  %v1395_v7 = vld [vmem:[%s2192_s0 + $0x184] sm:$0xf]  ;;  %v1164_v10 = vld [vmem:[%s2192_s0 + $0x18c] sm:$0xf0]  ;;  %v148_v18 = vld [vmem:[%s2194_s2 + $0x8] sm:$0x3]  ;;  %v588_v9 = vpack.c.b16 %v492_v13, %v492_v13 }
  0x2f   :  { %v1062_v11 = vld [vmem:[%s2192_s0 + $0xb0] sm:$0xf]  ;;  %v1167_v24 = vor.u32 %v1395_v7, %v1164_v10  ;;  %v1419_v25 = vld [vmem:[%s2192_s0 + $0x244] sm:$0xf]  ;;  %v1050_v29 = vld [vmem:[%s2192_s0 + $0x98] sm:$0xf] }
  0x30   :  { %755 = vmatpush.bf16.msrb.mxu0 %v1023_v23  ;;  %v1158_v14 = vld [vmem:[%s2192_s0 + $0x170] sm:$0xf]  ;;  %v1071_v23 = vor.u32 %v1371_v5, %v1068_v6  ;;  %v1367_v32 = vld [vmem:[%s2192_s0 + $0xa0] sm:$0xf0]  ;;  %v1146_v33 = vld [vmem:[%s2192_s0 + $0x158] sm:$0xf] }
  0x31   :  { %769 = vmatpush.bf16.msrb.mxu1 %v1119_v27  ;;  %v1254_v21 = vld [vmem:[%s2192_s0 + $0x230] sm:$0xf]  ;;  %v1063_v27 = vor.u32 %v1370_v12, %v1062_v11  ;;  %v1391_v34 = vld [vmem:[%s2192_s0 + $0x160] sm:$0xf0]  ;;  %v1338_v38 = vld [vmem:[%s2192_s0 + $0x2d8] sm:$0xf] }
  0x32   :  { %796 = vmatpush.bf16.msrb.mxu3 %v1323_v22  ;;  %783 = vmatpush.bf16.msrb.mxu2 %v1215_v28  ;;  %v1418_v22 = vld [vmem:[%s2192_s0 + $0x238] sm:$0xf0]  ;;  %v1260_v26 = vld [vmem:[%s2192_s0 + $0x24c] sm:$0xf0]  ;;  %v1159_v28 = vor.u32 %v1394_v17, %v1158_v14  ;;  %v1415_v37 = vld [vmem:[%s2192_s0 + $0x220] sm:$0xf0]  ;;  %v1147_v41 = vor.u32 %v1391_v34, %v1146_v33 }
  0x33   :  { %156 = vperm.xlu0 %1441, %v148_v18   ;;  %v1255_v30 = vor.u32 %v1418_v22, %v1254_v21  ;;  %v1439_v42 = vld [vmem:[%s2192_s0 + $0x2e0] sm:$0xf0]  ;;  %v1038_v43 = vld [vmem:[%s2192_s0 + $0x80] sm:$0xf]  ;;  %v1364_v45 = vld [vmem:[%s2192_s0 + $0x88] sm:$0xf0] }
  0x34   :  { %756 = vmatpush.bf16.msrb.mxu0 %v1011_v36  ;;  %v1242_v36 = vld [vmem:[%s2192_s0 + $0x218] sm:$0xf]  ;;  %v1134_v46 = vld [vmem:[%s2192_s0 + $0x140] sm:$0xf]  ;;  %v1412_v49 = vld [vmem:[%s2192_s0 + $0x208] sm:$0xf0]  ;;  %v1339_v50 = vor.u32 %v1439_v42, %v1338_v38  ;;  %v1039_v51 = vor.u32 %v1364_v45, %v1038_v43 }
  0x35   :  { %770 = vmatpush.bf16.msrb.mxu1 %v1107_v39  ;;  %v694_v39 = vsel %vm686_vm0, %v588_v9, 0  ;;  %v1243_v44 = vor.u32 %v1415_v37, %v1242_v36  ;;  %v1436_v54 = vld [vmem:[%s2192_s0 + $0x2c8] sm:$0xf0]  ;;  %v1026_v55 = vld [vmem:[%s2192_s0 + $0x68] sm:$0xf] }
  0x36   :  { %797 = vmatpush.bf16.msrb.mxu3 %v1311_v35  ;;  %784 = vmatpush.bf16.msrb.mxu2 %v1203_v40  ;;  %v1263_v35 = vor.u32 %v1419_v25, %v1260_v26  ;;  %v1051_v40 = vor.u32 %v1367_v32, %v1050_v29  ;;  %v1361_v57 = vld [vmem:[%s2192_s0 + $0x70] sm:$0xf0]  ;;  %v1122_v58 = vld [vmem:[%s2192_s0 + $0x128] sm:$0xf]  ;;  %v1358_v5 = vld [vmem:[%s2192_s0 + $0x58] sm:$0xf0] }
  0x37   :  { %v1385_v59 = vld [vmem:[%s2192_s0 + $0x130] sm:$0xf0]  ;;  %v1218_v60 = vld [vmem:[%s2192_s0 + $0x1e8] sm:$0xf]  ;;  %v1110_v6 = vld [vmem:[%s2192_s0 + $0x110] sm:$0xf] }
  0x38   :  { %757 = vmatpush.bf16.msrb.mxu0 %v999_v48  ;;  %v1230_v48 = vld [vmem:[%s2192_s0 + $0x200] sm:$0xf]  ;;  %v1409_v61 = vld [vmem:[%s2192_s0 + $0x1f0] sm:$0xf0]  ;;  %v1123_v0 = vor.u32 %v1385_v59, %v1122_v58  ;;  %v1314_v1 = vld [vmem:[%s2192_s0 + $0x2a8] sm:$0xf] }
  0x39   :  { %771 = vmatpush.bf16.msrb.mxu1 %v1095_v52  ;;  %v1231_v56 = vor.u32 %v1412_v49, %v1230_v48  ;;  %v1433_v2 = vld [vmem:[%s2192_s0 + $0x2b0] sm:$0xf0]  ;;  %v1382_v7 = vld [vmem:[%s2192_s0 + $0x118] sm:$0xf0]  ;;  %v1206_v10 = vld [vmem:[%s2192_s0 + $0x1d0] sm:$0xf] }
  0x3a   :  { %798 = vmatpush.bf16.msrb.mxu3 %v1299_v47  ;;  %785 = vmatpush.bf16.msrb.mxu2 %v1191_v53  ;;  %v1388_v47 = vld [vmem:[%s2192_s0 + $0x148] sm:$0xf0]  ;;  %v1326_v53 = vld [vmem:[%s2192_s0 + $0x2c0] sm:$0xf]  ;;  %v1406_v11 = vld [vmem:[%s2192_s0 + $0x1d8] sm:$0xf0]  ;;  %v1315_v12 = vor.u32 %v1433_v2, %v1314_v1  ;;  %v1111_v14 = vor.u32 %v1382_v7, %v1110_v6 }
  0x3b   :  { %v1135_v52 = vor.u32 %v1388_v47, %v1134_v46  ;;  %v1302_v17 = vld [vmem:[%s2192_s0 + $0x290] sm:$0xf]  ;;  %v1430_v18 = vld [vmem:[%s2192_s0 + $0x298] sm:$0xf0]  ;;  %v1355_v21 = vld [vmem:[%s2192_s0 + $0x40] sm:$0xf0] }
  0x3c   :  { %758 = vmatpush.bf16.msrb.mxu0 %v987_v63  ;;  %v1027_v63 = vor.u32 %v1361_v57, %v1026_v55  ;;  %v1098_v22 = vld [vmem:[%s2192_s0 + $0xf8] sm:$0xf]  ;;  %v1403_v25 = vld [vmem:[%s2192_s0 + $0x1c0] sm:$0xf0]  ;;  %v1303_v26 = vor.u32 %v1430_v18, %v1302_v17  ;;  %v1352_v33 = vld [vmem:[%s2192_s0 + $0x28] sm:$0xf0] }
  0x3d   :  { %772 = vmatpush.bf16.msrb.mxu1 %v1083_v3  ;;  %v1014_v3 = vld [vmem:[%s2192_s0 + $0x50] sm:$0xf]  ;;  %v1290_v9 = vld [vmem:[%s2192_s0 + $0x278] sm:$0xf]  ;;  %v1427_v29 = vld [vmem:[%s2192_s0 + $0x280] sm:$0xf0] }
  0x3e   :  { %799 = vmatpush.bf16.msrb.mxu3 %v1287_v62  ;;  %786 = vmatpush.bf16.msrb.mxu2 %v1179_v4  ;;  %v1327_v62 = vor.u32 %v1436_v54, %v1326_v53  ;;  %v1219_v4 = vor.u32 %v1409_v61, %v1218_v60  ;;  %v1015_v13 = vor.u32 %v1358_v5, %v1014_v3  ;;  %v1086_v34 = vld [vmem:[%s2192_s0 + $0xe0] sm:$0xf]  ;;  %v1400_v37 = vld [vmem:[%s2192_s0 + $0x1a8] sm:$0xf0]  ;;  %v978_v43 = vld [vmem:[%s2192_s0 + $0x8] sm:$0xf] }
  0x3f   :  { %v1182_v36 = vld [vmem:[%s2192_s0 + $0x1a0] sm:$0xf]  ;;  %v1291_v38 = vor.u32 %v1427_v29, %v1290_v9  ;;  %v1424_v42 = vld [vmem:[%s2192_s0 + $0x268] sm:$0xf0]  ;;  %v1349_v45 = vld [vmem:[%s2192_s0 + $0x10] sm:$0xf0] }
  0x40   :  { %759 = vmatpush.bf16.msrb.mxu0 %v975_v20  ;;  %v1207_v20 = vor.u32 %v1406_v11, %v1206_v10  ;;  %v1074_v46 = vld [vmem:[%s2192_s0 + $0xc8] sm:$0xf]  ;;  %v1373_v47 = vld [vmem:[%s2192_s0 + $0xd0] sm:$0xf0] }
  0x41   :  { %773 = vmatpush.bf16.msrb.mxu1 %v1071_v23  ;;  %v1379_v23 = vld [vmem:[%s2192_s0 + $0x100] sm:$0xf0]  ;;  %v1170_v48 = vld [vmem:[%s2192_s0 + $0x188] sm:$0xf]  ;;  %v1397_v49 = vld [vmem:[%s2192_s0 + $0x190] sm:$0xf0] }
  0x42   :  { %800 = vmatpush.bf16.msrb.mxu3 %v1275_v19  ;;  %787 = vmatpush.bf16.msrb.mxu2 %v1167_v24  ;;  %v1002_v19 = vld [vmem:[%s2192_s0 + $0x38] sm:$0xf]  ;;  %v1171_v53 = vor.u32 %v1397_v49, %v1170_v48  ;;  %v1266_v54 = vld [vmem:[%s2192_s0 + $0x248] sm:$0xf]  ;;  %v1421_v55 = vld [vmem:[%s2192_s0 + $0x250] sm:$0xf0] }
  0x43   :  { %760 = vmatmul.bf16.vlgmr.msrb.gmra.mxu0 %v1758_v15  ;;  %v1194_v24 = vld [vmem:[%s2192_s0 + $0x1b8] sm:$0xf]  ;;  %v871_v29 = vld [vmem:[%s2195_s3 + $0x8] sm:$0xff] }
  0x44   :  { %808 = vmatpush.bf16.msra.mxu0 %v1063_v27  ;;  %774 = vmatmul.bf16.vlgmr.msrb.gmra.mxu1 %v1796_v31  ;;  %v1003_v27 = vor.u32 %v1355_v21, %v1002_v19  ;;  %v1195_v32 = vor.u32 %v1403_v25, %v1194_v24  ;;  %vm877_vm10 = vcmp.eq.s32.totalorder %v871_v29, 0  ;;  %vm889_vm11 = vcmp.eq.s32.totalorder %v871_v29, 1 }
  0x45   :  { %822 = vmatpush.bf16.msra.mxu1 %v1159_v28  ;;  %788 = vmatmul.bf16.vlgmr.msrb.gmra.mxu2 %v1741_v8  ;;  %v1099_v28 = vor.u32 %v1379_v23, %v1098_v22  ;;  %vm901_vm12 = vcmp.eq.s32.totalorder %v871_v29, 2  ;;  %vm913_vm13 = vcmp.eq.s32.totalorder %v871_v29, 3 }
  0x46   :  { %836 = vmatpush.bf16.msra.mxu2 %v1255_v30  ;;  %801 = vmatpush.bf16.msrb.mxu3 %v1263_v35  ;;  %v990_v30 = vld [vmem:[%s2192_s0 + $0x20] sm:$0xf]  ;;  %v1376_v35 = vld [vmem:[%s2192_s0 + $0xe8] sm:$0xf0] }
  0x48   :  { %809 = vmatpush.bf16.msra.mxu0 %v1051_v40  ;;  %v1087_v40 = vor.u32 %v1376_v35, %v1086_v34 }
  0x49   :  { %823 = vmatpush.bf16.msra.mxu1 %v1147_v41  ;;  %1341 = vmatmul.msk.bf16.vlgmr.msrb.gmra.mxu3 %vm682_vm1, %v1760_v16  ;;  %v1278_v41 = vld [vmem:[%s2192_s0 + $0x260] sm:$0xf] }
  0x4a   :  { %850 = vmatpush.bf16.msra.mxu3 %v694_v39  ;;  %837 = vmatpush.bf16.msra.mxu2 %v1243_v44  ;;  %v991_v39 = vor.u32 %v1352_v33, %v990_v30  ;;  %v1183_v44 = vor.u32 %v1400_v37, %v1182_v36 }
  0x4c   :  { %810 = vmatpush.bf16.msra.mxu0 %v1039_v51  ;;  %v979_v51 = vor.u32 %v1349_v45, %v978_v43  ;;  %v874_v43 = vld [vmem:[%s2195_s3 + $0x20] sm:$0x3] }
  0x4d   :  { %824 = vmatpush.bf16.msra.mxu1 %v1135_v52  ;;  %v1075_v52 = vor.u32 %v1373_v47, %v1074_v46  ;;  %vm880_vm14 = vcmp.eq.s32.totalorder %v874_v43, 0  ;;  %vm892_vm15 = vcmp.eq.s32.totalorder %v874_v43, 1  ;;  %vm904_vm0 = vcmp.eq.s32.totalorder %v874_v43, 2 }
  0x4e   :  { %851 = vmatpush.bf16.msra.mxu3 %v1339_v50  ;;  %838 = vmatpush.bf16.msra.mxu2 %v1231_v56  ;;  %v1279_v50 = vor.u32 %v1424_v42, %v1278_v41  ;;  %v1267_v56 = vor.u32 %v1421_v55, %v1266_v54 }
  0x50   :  { %811 = vmatpush.bf16.msra.mxu0 %v1027_v63 }
  0x51   :  { %825 = vmatpush.bf16.msra.mxu1 %v1123_v0 }
  0x52   :  { %852 = vmatpush.bf16.msra.mxu3 %v1327_v62  ;;  %839 = vmatpush.bf16.msra.mxu2 %v1219_v4 }
  0x54   :  { %812 = vmatpush.bf16.msra.mxu0 %v1015_v13 }
  0x55   :  { %826 = vmatpush.bf16.msra.mxu1 %v1111_v14  ;;  %v873_v14 = vld [vmem:[%s2195_s3 + $0x18] sm:$0x3] }
  0x56   :  { %853 = vmatpush.bf16.msra.mxu3 %v1315_v12  ;;  %840 = vmatpush.bf16.msra.mxu2 %v1207_v20  ;;  %vm879_vm6 = vcmp.eq.s32.totalorder %v873_v14, 0  ;;  %vm891_vm7 = vcmp.eq.s32.totalorder %v873_v14, 1  ;;  %vm903_vm8 = vcmp.eq.s32.totalorder %v873_v14, 2  ;;  %vm915_vm9 = vcmp.eq.s32.totalorder %v873_v14, 3 }
  0x58   :  { %813 = vmatpush.bf16.msra.mxu0 %v1003_v27 }
  0x59   :  { %827 = vmatpush.bf16.msra.mxu1 %v1099_v28 }
  0x5a   :  { %854 = vmatpush.bf16.msra.mxu3 %v1303_v26  ;;  %841 = vmatpush.bf16.msra.mxu2 %v1195_v32 }
  0x5c   :  { %814 = vmatpush.bf16.msra.mxu0 %v991_v39 }
  0x5d   :  { %828 = vmatpush.bf16.msra.mxu1 %v1087_v40 }
  0x5e   :  { %855 = vmatpush.bf16.msra.mxu3 %v1291_v38  ;;  %842 = vmatpush.bf16.msra.mxu2 %v1183_v44 }
  0x60   :  { %815 = vmatpush.bf16.msra.mxu0 %v979_v51 }
  0x61   :  { %829 = vmatpush.bf16.msra.mxu1 %v1075_v52 }
  0x62   :  { %856 = vmatpush.bf16.msra.mxu3 %v1279_v50  ;;  %843 = vmatpush.bf16.msra.mxu2 %v1171_v53 }
  0x63   :  { %816 = vmatmul.bf16.vlgmr.msra.gmra.mxu0 %v1758_v15  ;;  %v870_v15 = vld [vmem:[%s2195_s3] sm:$0xff] }
  0x64   :  { %830 = vmatmul.bf16.vlgmr.msra.gmra.mxu1 %v1796_v31  ;;  %vm876_vm2 = vcmp.eq.s32.totalorder %v870_v15, 0  ;;  %vm888_vm3 = vcmp.eq.s32.totalorder %v870_v15, 1  ;;  %vm900_vm4 = vcmp.eq.s32.totalorder %v870_v15, 2  ;;  %vm912_vm5 = vcmp.eq.s32.totalorder %v870_v15, 3 }
  0x65   :  { %844 = vmatmul.bf16.vlgmr.msra.gmra.mxu2 %v1741_v8 }
  0x66   :  { %857 = vmatpush.bf16.msra.mxu3 %v1267_v56 }
  0x69   :  { %1342 = vmatmul.msk.bf16.vlgmr.msra.gmra.mxu3 %vm682_vm1, %v1760_v16  ;;  %vm916_vm1 = vcmp.eq.s32.totalorder %v874_v43, 3 }
  0x9d   :  { %v2092_v57 = vpop.permute.xlu0 %151 }
  0xa0   :  { %v705_v58 = vpop.f32.mrf.mxu0 }
  0xa1   :  { %v706_v59 = vadd.f32 %v705_v58, %v2092_v57 }
  0xa4   :  { %v719_v60 = vpop.f32.mrf.mxu1 }
  0xa5   :  { %v720_v61 = vadd.f32 %v719_v60, %v706_v59  ;;  %v2098_v31 = vpop.permute.xlu0 %156  ;;  %v872_v59 = vld [vmem:[%s2195_s3 + $0x10] sm:$0xff] }
  0xa8   :  { %v733_v62 = vpop.f32.mrf.mxu2  ;;  %v707_v8 = vpop.f32.mrf.mxu0 }
  0xa9   :  { %v734_v0 = vadd.f32 %v733_v62, %v720_v61  ;;  %v708_v16 = vadd.f32 %v707_v8, %v2098_v31 }
  0xac   :  { %v747_v63 = vpop.f32.mrf.mxu3  ;;  %v721_v3 = vpop.f32.mrf.mxu1 }
  0xad   :  { %v748_v1 = vadd.f32 %v747_v63, %v734_v0  ;;  %v722_v11 = vadd.f32 %v721_v3, %v708_v16 }
  0xaf   :  { %v864_v2 = vmax.f32 %v748_v1, 0.0 }
  0xb0   :  { %v735_v7 = vpop.f32.mrf.mxu2 }
  0xb1   :  { %v882_v4 = vsel %vm876_vm2, %v864_v2, 0.0  ;;  %v894_v5 = vsel %vm888_vm3, %v864_v2, 0.0  ;;  %v906_v6 = vsel %vm900_vm4, %v864_v2, 0.0  ;;  %v918_v10 = vsel %vm912_vm5, %v864_v2, 0.0 }
  0xb2   :  { %924 = vst [vmem:[%s2196_s4] sm:$0xff] %v882_v4  ;;  %v736_v13 = vadd.f32 %v735_v7, %v722_v11  ;;  %vm878_vm2 = vcmp.eq.s32.totalorder %v872_v59, 0  ;;  %vm890_vm3 = vcmp.eq.s32.totalorder %v872_v59, 1  ;;  %vm902_vm4 = vcmp.eq.s32.totalorder %v872_v59, 2 }
  0xb3   :  { %930 = vst [vmem:[%s2196_s4 + $0x30] sm:$0xff] %v894_v5  ;;  %vm914_vm5 = vcmp.eq.s32.totalorder %v872_v59, 3 }
  0xb4   :  { %v749_v12 = vpop.f32.mrf.mxu3  ;;  %936 = vst [vmem:[%s2196_s4 + $0x60] sm:$0xff] %v906_v6 }
  0xb5   :  { %942 = vst [vmem:[%s2196_s4 + $0x90] sm:$0xff] %v918_v10  ;;  %v750_v17 = vadd.f32 %v749_v12, %v736_v13 }
  0xb7   :  { %v867_v18 = vmax.f32 %v750_v17, 0.0 }
  0xb9   :  { %v885_v19 = vsel %vm879_vm6, %v867_v18, 0.0  ;;  %v897_v20 = vsel %vm891_vm7, %v867_v18, 0.0  ;;  %v909_v21 = vsel %vm903_vm8, %v867_v18, 0.0  ;;  %v921_v22 = vsel %vm915_vm9, %v867_v18, 0.0 }
  0xba   :  { %927 = vst [vmem:[%s2196_s4 + $0x18] sm:$0x3] %v885_v19 }
  0xbb   :  { %933 = vst [vmem:[%s2196_s4 + $0x48] sm:$0x3] %v897_v20 }
  0xbc   :  { %939 = vst [vmem:[%s2196_s4 + $0x78] sm:$0x3] %v909_v21 }
  0xbd   :  { %945 = vst [vmem:[%s2196_s4 + $0xa8] sm:$0x3] %v921_v22 }
  0xc0   :  { %v761_v23 = vpop.f32.mrf.mxu0 }
  0xc1   :  { %v762_v24 = vadd.f32 %v761_v23, %v2092_v57  ;;  %v775_v25 = vpop.f32.mrf.mxu1 }
  0xc3   :  { %v776_v26 = vadd.f32 %v775_v25, %v762_v24 }
  0xc8   :  { %v789_v27 = vpop.f32.mrf.mxu2  ;;  %v763_v9 = vpop.f32.mrf.mxu0 }
  0xc9   :  { %v790_v28 = vadd.f32 %v789_v27, %v776_v26  ;;  %v764_v30 = vadd.f32 %v763_v9, %v2098_v31  ;;  %v777_v33 = vpop.f32.mrf.mxu1 }
  0xcb   :  { %v778_v35 = vadd.f32 %v777_v33, %v764_v30 }
  0xcc   :  { %v803_v32 = vpop.f32.mrf.mxu3 }
  0xcd   :  { %v804_v34 = vadd.f32 %v803_v32, %v790_v28 }
  0xcf   :  { %v865_v36 = vmax.f32 %v804_v34, 0.0 }
  0xd0   :  { %v791_v40 = vpop.f32.mrf.mxu2 }
  0xd1   :  { %v883_v37 = vsel %vm877_vm10, %v865_v36, 0.0  ;;  %v895_v38 = vsel %vm889_vm11, %v865_v36, 0.0  ;;  %v907_v39 = vsel %vm901_vm12, %v865_v36, 0.0  ;;  %v919_v41 = vsel %vm913_vm13, %v865_v36, 0.0 }
  0xd2   :  { %925 = vst [vmem:[%s2196_s4 + $0x8] sm:$0xff] %v883_v37  ;;  %v792_v42 = vadd.f32 %v791_v40, %v778_v35 }
  0xd3   :  { %931 = vst [vmem:[%s2196_s4 + $0x38] sm:$0xff] %v895_v38 }
  0xd4   :  { %937 = vst [vmem:[%s2196_s4 + $0x68] sm:$0xff] %v907_v39  ;;  %v805_v44 = vpop.f32.mrf.mxu3 }
  0xd5   :  { %943 = vst [vmem:[%s2196_s4 + $0x98] sm:$0xff] %v919_v41  ;;  %v806_v45 = vadd.f32 %v805_v44, %v792_v42 }
  0xd7   :  { %v868_v46 = vmax.f32 %v806_v45, 0.0 }
  0xd9   :  { %v886_v47 = vsel %vm880_vm14, %v868_v46, 0.0  ;;  %v898_v48 = vsel %vm892_vm15, %v868_v46, 0.0  ;;  %v910_v49 = vsel %vm904_vm0, %v868_v46, 0.0  ;;  %v922_v50 = vsel %vm916_vm1, %v868_v46, 0.0 }
  0xda   :  { %928 = vst [vmem:[%s2196_s4 + $0x20] sm:$0x3] %v886_v47 }
  0xdb   :  { %934 = vst [vmem:[%s2196_s4 + $0x50] sm:$0x3] %v898_v48 }
  0xdc   :  { %940 = vst [vmem:[%s2196_s4 + $0x80] sm:$0x3] %v910_v49 }
  0xdd   :  { %946 = vst [vmem:[%s2196_s4 + $0xb0] sm:$0x3] %v922_v50 }
  0xe0   :  { %v817_v51 = vpop.f32.mrf.mxu0 }
  0xe1   :  { %v818_v52 = vadd.f32 %v817_v51, %v2092_v57  ;;  %v831_v53 = vpop.f32.mrf.mxu1 }
  0xe3   :  { %v832_v54 = vadd.f32 %v831_v53, %v818_v52 }
  0xe8   :  { %v845_v55 = vpop.f32.mrf.mxu2  ;;  %v819_v58 = vpop.f32.mrf.mxu0 }
  0xe9   :  { %v846_v56 = vadd.f32 %v845_v55, %v832_v54  ;;  %v820_v60 = vadd.f32 %v819_v58, %v2098_v31  ;;  %v833_v63 = vpop.f32.mrf.mxu1  ;;  %v875_v31 = vld [vmem:[%s2195_s3 + $0x28] sm:$0x3] }
  0xea   :  { %vm881_vm6 = vcmp.eq.s32.totalorder %v875_v31, 0  ;;  %vm893_vm7 = vcmp.eq.s32.totalorder %v875_v31, 1  ;;  %vm905_vm8 = vcmp.eq.s32.totalorder %v875_v31, 2  ;;  %vm917_vm9 = vcmp.eq.s32.totalorder %v875_v31, 3 }
  0xeb   :  { %v834_v57 = vadd.f32 %v833_v63, %v820_v60 }
  0xec   :  { %v859_v61 = vpop.f32.mrf.mxu3 }
  0xed   :  { %v860_v62 = vadd.f32 %v859_v61, %v846_v56 }
  0xef   :  { %v866_v0 = vmax.f32 %v860_v62, 0.0 }
  0xf0   :  { %v847_v16 = vpop.f32.mrf.mxu2 }
  0xf1   :  { %v884_v15 = vsel %vm878_vm2, %v866_v0, 0.0  ;;  %v896_v8 = vsel %vm890_vm3, %v866_v0, 0.0  ;;  %v908_v1 = vsel %vm902_vm4, %v866_v0, 0.0  ;;  %v920_v2 = vsel %vm914_vm5, %v866_v0, 0.0 }
  0xf2   :  { %926 = vst [vmem:[%s2196_s4 + $0x10] sm:$0xff] %v884_v15  ;;  %v848_v3 = vadd.f32 %v847_v16, %v834_v57 }
  0xf3   :  { %932 = vst [vmem:[%s2196_s4 + $0x40] sm:$0xff] %v896_v8 }
  0xf4   :  { %938 = vst [vmem:[%s2196_s4 + $0x70] sm:$0xff] %v908_v1  ;;  %v861_v4 = vpop.f32.mrf.mxu3 }
  0xf5   :  { %944 = vst [vmem:[%s2196_s4 + $0xa0] sm:$0xff] %v920_v2  ;;  %v862_v5 = vadd.f32 %v861_v4, %v848_v3 }
  0xf7   :  { %v869_v6 = vmax.f32 %v862_v5, 0.0 }
  0xf9   :  { %v887_v7 = vsel %vm881_vm6, %v869_v6, 0.0  ;;  %v899_v10 = vsel %vm893_vm7, %v869_v6, 0.0  ;;  %v911_v11 = vsel %vm905_vm8, %v869_v6, 0.0  ;;  %v923_v12 = vsel %vm917_vm9, %v869_v6, 0.0 }
  0xfa   :  { %929 = vst [vmem:[%s2196_s4 + $0x28] sm:$0x3] %v887_v7 }
  0xfb   :  { %935 = vst [vmem:[%s2196_s4 + $0x58] sm:$0x3] %v899_v10 }
  0xfc   :  { %941 = vst [vmem:[%s2196_s4 + $0x88] sm:$0x3] %v911_v11 }
  0xfd   :  { %947 = vst [vmem:[%s2196_s4 + $0xb8] sm:$0x3] %v923_v12 }

// kernel: net_forward.11
= control target key start
LH: loop header
LB: loop body
LE: loop exit
PB: predicated region body
PF: predicated region fallthrough
CT: control target
= control target key end

     0   :  { %s2895_s0 = inlined_call_operand.vmem [shape: bf16[250,2048], index: 0, kind: input, shape index: {}]   ;;  %s2896_s1 = inlined_call_operand.vmem [shape: bf16[1,250], index: 1, kind: input, shape index: {}]   ;;  %s2897_s2 = inlined_call_operand.<no memory space> [shape: f32[1,1], index: 2, kind: input, shape index: {}]   ;;  %s2898_s3 = inlined_call_operand.vmem [shape: f32[1,2048], index: 3, kind: output, shape index: {}]  }
   0x1   :  { %v8_v0 = vstv %s2897_s2 }
   0x2   :  { %9 = vst [vmem:[#allocation2] sm:$0x1] %v8_v0 }
   0x3   :  { %s2286_s14 = smov 0   ;;  %s2288_s15 = smov 0  }
   0x4   :  { %s2290_s16 = smov 0  }
   0x5 LB: > { %s1551_s2 = sadd.s32 4294967295, %s2260_s16   ;;  %s2303_s17 = sadd.s32 1, %s2260_s16   ;;  %s2260_s16 = sphi %s2290_s16, %s2901_s16   ;;  %s2256_s15 = sphi %s2288_s15, %s2900_s15   ;;  %s2252_s14 = sphi %s2286_s14, %s2899_s14  }
   0x6   : > { %s19_s18 = ssub.s32 %s2260_s16, %s2303_s17  ;;  %s22_s19 = sadd.s32 1, %s2256_s15 }
   0x7   : > { %p20_p0 = scmp.eq.s32.totalorder %s19_s18, 0  ;;  %p29_p1 = scmp.ne.s32.totalorder %s2256_s15, %s2252_s14 }
   0x8   : > { %p30_p2 = scmp.eq.s32.totalorder %s2260_s16, 0  ;;  %p1554_p4 = scmp.ge.s32.totalorder %s2260_s16, 2 }
   0x9   : > { %s2312_s20 = scalar_select %p20_p0, %s2256_s15, %s22_s19  }
   0xa   : > { %p31_p3 = por %p30_p2, %p29_p1  ;;  %129 = sbr.rel (%p1554_p4) target bundleno = 147 (0x93), region = 24 }
   0xf   : > { %132 = sbr.rel (!%p31_p3) target bundleno = 147 (0x93), region = 28  ;;  %s134_s21 = sand.u32 (%p31_p3), 1, %s2256_s15  }
  0x10   : > { %s2083_s22 = sshll.u32 (%p31_p3), %s2260_s16, 5  ;;  %s1555_s23 = sshll.u32 (%p31_p3), %s134_s21, 10 }
  0x11   : > { %s2320_s26 = scalar_lea.vmem (%p31_p3), %s2895_s0, %s2083_s22  ;;  %s2325_s27 = scalar_lea.vmem (%p31_p3), [#allocation3], %s1555_s23 }
  0x12   : > { %v152_v1 = vld [vmem:[%s2320_s26] sm:$0xff] (%p31_p3)  ;;  %v154_v2 = vld [vmem:[%s2320_s26 + $0x8] sm:$0xff] (%p31_p3)  ;;  %v156_v3 = vld [vmem:[%s2320_s26 + $0x10] sm:$0xff] (%p31_p3) }
  0x13   : > { %153 = vst [vmem:[%s2325_s27] sm:$0xff] (%p31_p3), %v152_v1  ;;  %v158_v4 = vld [vmem:[%s2320_s26 + $0x18] sm:$0xff] (%p31_p3)  ;;  %v160_v5 = vld [vmem:[%s2320_s26 + $0x40] sm:$0xff] (%p31_p3)  ;;  %v162_v6 = vld [vmem:[%s2320_s26 + $0x48] sm:$0xff] (%p31_p3) }
  0x14   : > { %155 = vst [vmem:[%s2325_s27 + $0x8] sm:$0xff] %v154_v2  ;;  %v164_v7 = vld [vmem:[%s2320_s26 + $0x50] sm:$0xff]  ;;  %v166_v8 = vld [vmem:[%s2320_s26 + $0x58] sm:$0xff]  ;;  %v168_v9 = vld [vmem:[%s2320_s26 + $0x80] sm:$0xff] }
  0x15   : > { %157 = vst [vmem:[%s2325_s27 + $0x10] sm:$0xff] %v156_v3  ;;  %v170_v10 = vld [vmem:[%s2320_s26 + $0x88] sm:$0xff]  ;;  %v172_v11 = vld [vmem:[%s2320_s26 + $0x90] sm:$0xff]  ;;  %v174_v12 = vld [vmem:[%s2320_s26 + $0x98] sm:$0xff] }
  0x16   : > { %159 = vst [vmem:[%s2325_s27 + $0x18] sm:$0xff] %v158_v4  ;;  %v176_v13 = vld [vmem:[%s2320_s26 + $0xc0] sm:$0xff]  ;;  %v178_v14 = vld [vmem:[%s2320_s26 + $0xc8] sm:$0xff]  ;;  %v180_v15 = vld [vmem:[%s2320_s26 + $0xd0] sm:$0xff] }
  0x17   : > { %161 = vst [vmem:[%s2325_s27 + $0x20] sm:$0xff] %v160_v5  ;;  %v182_v16 = vld [vmem:[%s2320_s26 + $0xd8] sm:$0xff]  ;;  %v184_v17 = vld [vmem:[%s2320_s26 + $0x100] sm:$0xff]  ;;  %v186_v18 = vld [vmem:[%s2320_s26 + $0x108] sm:$0xff] }
  0x18   : > { %163 = vst [vmem:[%s2325_s27 + $0x28] sm:$0xff] %v162_v6  ;;  %v188_v19 = vld [vmem:[%s2320_s26 + $0x110] sm:$0xff]  ;;  %v190_v20 = vld [vmem:[%s2320_s26 + $0x118] sm:$0xff]  ;;  %v192_v21 = vld [vmem:[%s2320_s26 + $0x140] sm:$0xff] }
  0x19   : > { %165 = vst [vmem:[%s2325_s27 + $0x30] sm:$0xff] %v164_v7  ;;  %v194_v22 = vld [vmem:[%s2320_s26 + $0x148] sm:$0xff]  ;;  %v196_v23 = vld [vmem:[%s2320_s26 + $0x150] sm:$0xff]  ;;  %v198_v24 = vld [vmem:[%s2320_s26 + $0x158] sm:$0xff] }
  0x1a   : > { %167 = vst [vmem:[%s2325_s27 + $0x38] sm:$0xff] %v166_v8  ;;  %v200_v25 = vld [vmem:[%s2320_s26 + $0x180] sm:$0xff]  ;;  %v202_v26 = vld [vmem:[%s2320_s26 + $0x188] sm:$0xff]  ;;  %v204_v27 = vld [vmem:[%s2320_s26 + $0x190] sm:$0xff] }
  0x1b   : > { %169 = vst [vmem:[%s2325_s27 + $0x40] sm:$0xff] %v168_v9  ;;  %v206_v28 = vld [vmem:[%s2320_s26 + $0x198] sm:$0xff]  ;;  %v208_v29 = vld [vmem:[%s2320_s26 + $0x1c0] sm:$0xff]  ;;  %v210_v30 = vld [vmem:[%s2320_s26 + $0x1c8] sm:$0xff] }
  0x1c   : > { %171 = vst [vmem:[%s2325_s27 + $0x48] sm:$0xff] %v170_v10  ;;  %v212_v31 = vld [vmem:[%s2320_s26 + $0x1d0] sm:$0xff]  ;;  %v214_v32 = vld [vmem:[%s2320_s26 + $0x1d8] sm:$0xff]  ;;  %v216_v33 = vld [vmem:[%s2320_s26 + $0x200] sm:$0xff] }
  0x1d   : > { %173 = vst [vmem:[%s2325_s27 + $0x50] sm:$0xff] %v172_v11  ;;  %v218_v34 = vld [vmem:[%s2320_s26 + $0x208] sm:$0xff]  ;;  %v220_v35 = vld [vmem:[%s2320_s26 + $0x210] sm:$0xff]  ;;  %v222_v36 = vld [vmem:[%s2320_s26 + $0x218] sm:$0xff] }
  0x1e   : > { %175 = vst [vmem:[%s2325_s27 + $0x58] sm:$0xff] %v174_v12  ;;  %v224_v37 = vld [vmem:[%s2320_s26 + $0x240] sm:$0xff]  ;;  %v226_v38 = vld [vmem:[%s2320_s26 + $0x248] sm:$0xff]  ;;  %v228_v39 = vld [vmem:[%s2320_s26 + $0x250] sm:$0xff] }
  0x1f   : > { %177 = vst [vmem:[%s2325_s27 + $0x60] sm:$0xff] %v176_v13  ;;  %v230_v40 = vld [vmem:[%s2320_s26 + $0x258] sm:$0xff]  ;;  %v232_v41 = vld [vmem:[%s2320_s26 + $0x280] sm:$0xff]  ;;  %v234_v42 = vld [vmem:[%s2320_s26 + $0x288] sm:$0xff] }
  0x20   : > { %179 = vst [vmem:[%s2325_s27 + $0x68] sm:$0xff] %v178_v14  ;;  %v236_v43 = vld [vmem:[%s2320_s26 + $0x290] sm:$0xff]  ;;  %v238_v44 = vld [vmem:[%s2320_s26 + $0x298] sm:$0xff]  ;;  %v240_v45 = vld [vmem:[%s2320_s26 + $0x2c0] sm:$0xff] }
  0x21   : > { %181 = vst [vmem:[%s2325_s27 + $0x70] sm:$0xff] %v180_v15  ;;  %v242_v46 = vld [vmem:[%s2320_s26 + $0x2c8] sm:$0xff]  ;;  %v244_v47 = vld [vmem:[%s2320_s26 + $0x2d0] sm:$0xff]  ;;  %v246_v48 = vld [vmem:[%s2320_s26 + $0x2d8] sm:$0xff] }
  0x22   : > { %183 = vst [vmem:[%s2325_s27 + $0x78] sm:$0xff] %v182_v16  ;;  %v248_v49 = vld [vmem:[%s2320_s26 + $0x300] sm:$0xff]  ;;  %v250_v50 = vld [vmem:[%s2320_s26 + $0x308] sm:$0xff]  ;;  %v252_v51 = vld [vmem:[%s2320_s26 + $0x310] sm:$0xff] }
  0x23   : > { %185 = vst [vmem:[%s2325_s27 + $0x80] sm:$0xff] %v184_v17  ;;  %v254_v52 = vld [vmem:[%s2320_s26 + $0x318] sm:$0xff]  ;;  %v256_v53 = vld [vmem:[%s2320_s26 + $0x340] sm:$0xff]  ;;  %v258_v54 = vld [vmem:[%s2320_s26 + $0x348] sm:$0xff] }
  0x24   : > { %187 = vst [vmem:[%s2325_s27 + $0x88] sm:$0xff] %v186_v18  ;;  %v260_v55 = vld [vmem:[%s2320_s26 + $0x350] sm:$0xff]  ;;  %v262_v56 = vld [vmem:[%s2320_s26 + $0x358] sm:$0xff]  ;;  %v264_v57 = vld [vmem:[%s2320_s26 + $0x380] sm:$0xff] }
  0x25   : > { %189 = vst [vmem:[%s2325_s27 + $0x90] sm:$0xff] %v188_v19  ;;  %v266_v58 = vld [vmem:[%s2320_s26 + $0x388] sm:$0xff]  ;;  %v268_v59 = vld [vmem:[%s2320_s26 + $0x390] sm:$0xff]  ;;  %v270_v60 = vld [vmem:[%s2320_s26 + $0x398] sm:$0xff] }
  0x26   : > { %191 = vst [vmem:[%s2325_s27 + $0x98] sm:$0xff] %v190_v20  ;;  %v272_v61 = vld [vmem:[%s2320_s26 + $0x3c0] sm:$0xff]  ;;  %v274_v62 = vld [vmem:[%s2320_s26 + $0x3c8] sm:$0xff]  ;;  %v276_v63 = vld [vmem:[%s2320_s26 + $0x3d0] sm:$0xff] }
  0x27   : > { %193 = vst [vmem:[%s2325_s27 + $0xa0] sm:$0xff] %v192_v21  ;;  %v278_v0 = vld [vmem:[%s2320_s26 + $0x3d8] sm:$0xff]  ;;  %v280_v1 = vld [vmem:[%s2320_s26 + $0x400] sm:$0xff]  ;;  %v282_v2 = vld [vmem:[%s2320_s26 + $0x408] sm:$0xff] }
  0x28   : > { %195 = vst [vmem:[%s2325_s27 + $0xa8] sm:$0xff] %v194_v22  ;;  %v284_v3 = vld [vmem:[%s2320_s26 + $0x410] sm:$0xff]  ;;  %v286_v4 = vld [vmem:[%s2320_s26 + $0x418] sm:$0xff]  ;;  %v288_v5 = vld [vmem:[%s2320_s26 + $0x440] sm:$0xff] }
  0x29   : > { %197 = vst [vmem:[%s2325_s27 + $0xb0] sm:$0xff] %v196_v23  ;;  %v290_v6 = vld [vmem:[%s2320_s26 + $0x448] sm:$0xff]  ;;  %v292_v7 = vld [vmem:[%s2320_s26 + $0x450] sm:$0xff]  ;;  %v294_v8 = vld [vmem:[%s2320_s26 + $0x458] sm:$0xff] }
  0x2a   : > { %199 = vst [vmem:[%s2325_s27 + $0xb8] sm:$0xff] %v198_v24  ;;  %v296_v9 = vld [vmem:[%s2320_s26 + $0x480] sm:$0xff]  ;;  %v298_v10 = vld [vmem:[%s2320_s26 + $0x488] sm:$0xff]  ;;  %v300_v11 = vld [vmem:[%s2320_s26 + $0x490] sm:$0xff] }
  0x2b   : > { %201 = vst [vmem:[%s2325_s27 + $0xc0] sm:$0xff] %v200_v25  ;;  %v302_v12 = vld [vmem:[%s2320_s26 + $0x498] sm:$0xff]  ;;  %v304_v13 = vld [vmem:[%s2320_s26 + $0x4c0] sm:$0xff]  ;;  %v306_v14 = vld [vmem:[%s2320_s26 + $0x4c8] sm:$0xff] }
  0x2c   : > { %203 = vst [vmem:[%s2325_s27 + $0xc8] sm:$0xff] %v202_v26  ;;  %v308_v15 = vld [vmem:[%s2320_s26 + $0x4d0] sm:$0xff]  ;;  %v310_v16 = vld [vmem:[%s2320_s26 + $0x4d8] sm:$0xff]  ;;  %v312_v17 = vld [vmem:[%s2320_s26 + $0x500] sm:$0xff] }
  0x2d   : > { %205 = vst [vmem:[%s2325_s27 + $0xd0] sm:$0xff] %v204_v27  ;;  %v314_v18 = vld [vmem:[%s2320_s26 + $0x508] sm:$0xff]  ;;  %v316_v19 = vld [vmem:[%s2320_s26 + $0x510] sm:$0xff]  ;;  %v318_v20 = vld [vmem:[%s2320_s26 + $0x518] sm:$0xff] }
  0x2e   : > { %207 = vst [vmem:[%s2325_s27 + $0xd8] sm:$0xff] %v206_v28  ;;  %v320_v21 = vld [vmem:[%s2320_s26 + $0x540] sm:$0xff]  ;;  %v322_v22 = vld [vmem:[%s2320_s26 + $0x548] sm:$0xff]  ;;  %v324_v23 = vld [vmem:[%s2320_s26 + $0x550] sm:$0xff] }
  0x2f   : > { %209 = vst [vmem:[%s2325_s27 + $0xe0] sm:$0xff] %v208_v29  ;;  %v326_v24 = vld [vmem:[%s2320_s26 + $0x558] sm:$0xff]  ;;  %v328_v25 = vld [vmem:[%s2320_s26 + $0x580] sm:$0xff]  ;;  %v330_v26 = vld [vmem:[%s2320_s26 + $0x588] sm:$0xff] }
  0x30   : > { %211 = vst [vmem:[%s2325_s27 + $0xe8] sm:$0xff] %v210_v30  ;;  %v332_v27 = vld [vmem:[%s2320_s26 + $0x590] sm:$0xff]  ;;  %v334_v28 = vld [vmem:[%s2320_s26 + $0x598] sm:$0xff]  ;;  %v336_v29 = vld [vmem:[%s2320_s26 + $0x5c0] sm:$0xff] }
  0x31   : > { %213 = vst [vmem:[%s2325_s27 + $0xf0] sm:$0xff] %v212_v31  ;;  %v338_v30 = vld [vmem:[%s2320_s26 + $0x5c8] sm:$0xff]  ;;  %v340_v31 = vld [vmem:[%s2320_s26 + $0x5d0] sm:$0xff] }
  0x32   : > { %215 = vst [vmem:[%s2325_s27 + $0xf8] sm:$0xff] %v214_v32  ;;  %v342_v32 = vld [vmem:[%s2320_s26 + $0x5d8] sm:$0xff] }
  0x33   : > { %217 = vst [vmem:[%s2325_s27 + $0x100] sm:$0xff] %v216_v33  ;;  %v344_v33 = vld [vmem:[%s2320_s26 + $0x600] sm:$0xff] }
  0x34   : > { %219 = vst [vmem:[%s2325_s27 + $0x108] sm:$0xff] %v218_v34  ;;  %v346_v34 = vld [vmem:[%s2320_s26 + $0x608] sm:$0xff] }
  0x35   : > { %221 = vst [vmem:[%s2325_s27 + $0x110] sm:$0xff] %v220_v35  ;;  %v348_v35 = vld [vmem:[%s2320_s26 + $0x610] sm:$0xff] }
  0x36   : > { %223 = vst [vmem:[%s2325_s27 + $0x118] sm:$0xff] %v222_v36  ;;  %v350_v36 = vld [vmem:[%s2320_s26 + $0x618] sm:$0xff] }
  0x37   : > { %225 = vst [vmem:[%s2325_s27 + $0x120] sm:$0xff] %v224_v37  ;;  %v352_v37 = vld [vmem:[%s2320_s26 + $0x640] sm:$0xff] }
  0x38   : > { %227 = vst [vmem:[%s2325_s27 + $0x128] sm:$0xff] %v226_v38  ;;  %v354_v38 = vld [vmem:[%s2320_s26 + $0x648] sm:$0xff] }
  0x39   : > { %229 = vst [vmem:[%s2325_s27 + $0x130] sm:$0xff] %v228_v39  ;;  %v356_v39 = vld [vmem:[%s2320_s26 + $0x650] sm:$0xff] }
  0x3a   : > { %231 = vst [vmem:[%s2325_s27 + $0x138] sm:$0xff] %v230_v40  ;;  %v358_v40 = vld [vmem:[%s2320_s26 + $0x658] sm:$0xff] }
  0x3b   : > { %233 = vst [vmem:[%s2325_s27 + $0x140] sm:$0xff] %v232_v41  ;;  %v360_v41 = vld [vmem:[%s2320_s26 + $0x680] sm:$0xff] }
  0x3c   : > { %235 = vst [vmem:[%s2325_s27 + $0x148] sm:$0xff] %v234_v42  ;;  %v362_v42 = vld [vmem:[%s2320_s26 + $0x688] sm:$0xff] }
  0x3d   : > { %237 = vst [vmem:[%s2325_s27 + $0x150] sm:$0xff] %v236_v43  ;;  %v364_v43 = vld [vmem:[%s2320_s26 + $0x690] sm:$0xff] }
  0x3e   : > { %239 = vst [vmem:[%s2325_s27 + $0x158] sm:$0xff] %v238_v44  ;;  %v366_v44 = vld [vmem:[%s2320_s26 + $0x698] sm:$0xff] }
  0x3f   : > { %241 = vst [vmem:[%s2325_s27 + $0x160] sm:$0xff] %v240_v45  ;;  %v368_v45 = vld [vmem:[%s2320_s26 + $0x6c0] sm:$0xff] }
  0x40   : > { %243 = vst [vmem:[%s2325_s27 + $0x168] sm:$0xff] %v242_v46  ;;  %v370_v46 = vld [vmem:[%s2320_s26 + $0x6c8] sm:$0xff] }
  0x41   : > { %245 = vst [vmem:[%s2325_s27 + $0x170] sm:$0xff] %v244_v47  ;;  %v372_v47 = vld [vmem:[%s2320_s26 + $0x6d0] sm:$0xff] }
  0x42   : > { %247 = vst [vmem:[%s2325_s27 + $0x178] sm:$0xff] %v246_v48  ;;  %v374_v48 = vld [vmem:[%s2320_s26 + $0x6d8] sm:$0xff] }
  0x43   : > { %249 = vst [vmem:[%s2325_s27 + $0x180] sm:$0xff] %v248_v49  ;;  %v376_v49 = vld [vmem:[%s2320_s26 + $0x700] sm:$0xff] }
  0x44   : > { %251 = vst [vmem:[%s2325_s27 + $0x188] sm:$0xff] %v250_v50  ;;  %v378_v50 = vld [vmem:[%s2320_s26 + $0x708] sm:$0xff] }
  0x45   : > { %253 = vst [vmem:[%s2325_s27 + $0x190] sm:$0xff] %v252_v51  ;;  %v380_v51 = vld [vmem:[%s2320_s26 + $0x710] sm:$0xff] }
  0x46   : > { %255 = vst [vmem:[%s2325_s27 + $0x198] sm:$0xff] %v254_v52  ;;  %v382_v52 = vld [vmem:[%s2320_s26 + $0x718] sm:$0xff] }
  0x47   : > { %257 = vst [vmem:[%s2325_s27 + $0x1a0] sm:$0xff] %v256_v53  ;;  %v384_v53 = vld [vmem:[%s2320_s26 + $0x740] sm:$0xff] }
  0x48   : > { %259 = vst [vmem:[%s2325_s27 + $0x1a8] sm:$0xff] %v258_v54  ;;  %v386_v54 = vld [vmem:[%s2320_s26 + $0x748] sm:$0xff] }
  0x49   : > { %261 = vst [vmem:[%s2325_s27 + $0x1b0] sm:$0xff] %v260_v55  ;;  %v388_v55 = vld [vmem:[%s2320_s26 + $0x750] sm:$0xff] }
  0x4a   : > { %263 = vst [vmem:[%s2325_s27 + $0x1b8] sm:$0xff] %v262_v56  ;;  %v390_v56 = vld [vmem:[%s2320_s26 + $0x758] sm:$0xff] }
  0x4b   : > { %265 = vst [vmem:[%s2325_s27 + $0x1c0] sm:$0xff] %v264_v57  ;;  %v392_v57 = vld [vmem:[%s2320_s26 + $0x780] sm:$0xff] }
  0x4c   : > { %267 = vst [vmem:[%s2325_s27 + $0x1c8] sm:$0xff] %v266_v58  ;;  %v394_v58 = vld [vmem:[%s2320_s26 + $0x788] sm:$0xff] }
  0x4d   : > { %269 = vst [vmem:[%s2325_s27 + $0x1d0] sm:$0xff] %v268_v59  ;;  %v396_v59 = vld [vmem:[%s2320_s26 + $0x790] sm:$0xff] }
  0x4e   : > { %271 = vst [vmem:[%s2325_s27 + $0x1d8] sm:$0xff] %v270_v60  ;;  %v398_v60 = vld [vmem:[%s2320_s26 + $0x798] sm:$0xff] }
  0x4f   : > { %273 = vst [vmem:[%s2325_s27 + $0x1e0] sm:$0xff] %v272_v61  ;;  %v400_v61 = vld [vmem:[%s2320_s26 + $0x7c0] sm:$0xff] }
  0x50   : > { %275 = vst [vmem:[%s2325_s27 + $0x1e8] sm:$0xff] %v274_v62  ;;  %v402_v62 = vld [vmem:[%s2320_s26 + $0x7c8] sm:$0xff] }
  0x51   : > { %277 = vst [vmem:[%s2325_s27 + $0x1f0] sm:$0xff] %v276_v63  ;;  %v404_v63 = vld [vmem:[%s2320_s26 + $0x7d0] sm:$0xff] }
  0x52   : > { %279 = vst [vmem:[%s2325_s27 + $0x1f8] sm:$0xff] %v278_v0  ;;  %v406_v0 = vld [vmem:[%s2320_s26 + $0x7d8] sm:$0xff] }
  0x53   : > { %281 = vst [vmem:[%s2325_s27 + $0x200] sm:$0xff] %v280_v1 }
  0x54   : > { %283 = vst [vmem:[%s2325_s27 + $0x208] sm:$0xff] %v282_v2 }
  0x55   : > { %285 = vst [vmem:[%s2325_s27 + $0x210] sm:$0xff] %v284_v3 }
  0x56   : > { %287 = vst [vmem:[%s2325_s27 + $0x218] sm:$0xff] %v286_v4 }
  0x57   : > { %289 = vst [vmem:[%s2325_s27 + $0x220] sm:$0xff] %v288_v5 }
  0x58   : > { %291 = vst [vmem:[%s2325_s27 + $0x228] sm:$0xff] %v290_v6 }
  0x59   : > { %293 = vst [vmem:[%s2325_s27 + $0x230] sm:$0xff] %v292_v7 }
  0x5a   : > { %295 = vst [vmem:[%s2325_s27 + $0x238] sm:$0xff] %v294_v8 }
  0x5b   : > { %297 = vst [vmem:[%s2325_s27 + $0x240] sm:$0xff] %v296_v9 }
  0x5c   : > { %299 = vst [vmem:[%s2325_s27 + $0x248] sm:$0xff] %v298_v10 }
  0x5d   : > { %301 = vst [vmem:[%s2325_s27 + $0x250] sm:$0xff] %v300_v11 }
  0x5e   : > { %303 = vst [vmem:[%s2325_s27 + $0x258] sm:$0xff] %v302_v12 }
  0x5f   : > { %305 = vst [vmem:[%s2325_s27 + $0x260] sm:$0xff] %v304_v13 }
  0x60   : > { %307 = vst [vmem:[%s2325_s27 + $0x268] sm:$0xff] %v306_v14 }
  0x61   : > { %309 = vst [vmem:[%s2325_s27 + $0x270] sm:$0xff] %v308_v15 }
  0x62   : > { %311 = vst [vmem:[%s2325_s27 + $0x278] sm:$0xff] %v310_v16 }
  0x63   : > { %313 = vst [vmem:[%s2325_s27 + $0x280] sm:$0xff] %v312_v17 }
  0x64   : > { %315 = vst [vmem:[%s2325_s27 + $0x288] sm:$0xff] %v314_v18 }
  0x65   : > { %317 = vst [vmem:[%s2325_s27 + $0x290] sm:$0xff] %v316_v19 }
  0x66   : > { %319 = vst [vmem:[%s2325_s27 + $0x298] sm:$0xff] %v318_v20 }
  0x67   : > { %321 = vst [vmem:[%s2325_s27 + $0x2a0] sm:$0xff] %v320_v21 }
  0x68   : > { %323 = vst [vmem:[%s2325_s27 + $0x2a8] sm:$0xff] %v322_v22 }
  0x69   : > { %325 = vst [vmem:[%s2325_s27 + $0x2b0] sm:$0xff] %v324_v23 }
  0x6a   : > { %327 = vst [vmem:[%s2325_s27 + $0x2b8] sm:$0xff] %v326_v24 }
  0x6b   : > { %329 = vst [vmem:[%s2325_s27 + $0x2c0] sm:$0xff] %v328_v25 }
  0x6c   : > { %331 = vst [vmem:[%s2325_s27 + $0x2c8] sm:$0xff] %v330_v26 }
  0x6d   : > { %333 = vst [vmem:[%s2325_s27 + $0x2d0] sm:$0xff] %v332_v27 }
  0x6e   : > { %335 = vst [vmem:[%s2325_s27 + $0x2d8] sm:$0xff] %v334_v28 }
  0x6f   : > { %337 = vst [vmem:[%s2325_s27 + $0x2e0] sm:$0xff] %v336_v29 }
  0x70   : > { %339 = vst [vmem:[%s2325_s27 + $0x2e8] sm:$0xff] %v338_v30 }
  0x71   : > { %341 = vst [vmem:[%s2325_s27 + $0x2f0] sm:$0xff] %v340_v31 }
  0x72   : > { %343 = vst [vmem:[%s2325_s27 + $0x2f8] sm:$0xff] %v342_v32 }
  0x73   : > { %345 = vst [vmem:[%s2325_s27 + $0x300] sm:$0xff] %v344_v33 }
  0x74   : > { %347 = vst [vmem:[%s2325_s27 + $0x308] sm:$0xff] %v346_v34 }
  0x75   : > { %349 = vst [vmem:[%s2325_s27 + $0x310] sm:$0xff] %v348_v35 }
  0x76   : > { %351 = vst [vmem:[%s2325_s27 + $0x318] sm:$0xff] %v350_v36 }
  0x77   : > { %353 = vst [vmem:[%s2325_s27 + $0x320] sm:$0xff] %v352_v37 }
  0x78   : > { %355 = vst [vmem:[%s2325_s27 + $0x328] sm:$0xff] %v354_v38 }
  0x79   : > { %357 = vst [vmem:[%s2325_s27 + $0x330] sm:$0xff] %v356_v39 }
  0x7a   : > { %359 = vst [vmem:[%s2325_s27 + $0x338] sm:$0xff] %v358_v40 }
  0x7b   : > { %361 = vst [vmem:[%s2325_s27 + $0x340] sm:$0xff] %v360_v41 }
  0x7c   : > { %363 = vst [vmem:[%s2325_s27 + $0x348] sm:$0xff] %v362_v42 }
  0x7d   : > { %365 = vst [vmem:[%s2325_s27 + $0x350] sm:$0xff] %v364_v43 }
  0x7e   : > { %367 = vst [vmem:[%s2325_s27 + $0x358] sm:$0xff] %v366_v44 }
  0x7f   : > { %369 = vst [vmem:[%s2325_s27 + $0x360] sm:$0xff] %v368_v45 }
  0x80   : > { %371 = vst [vmem:[%s2325_s27 + $0x368] sm:$0xff] %v370_v46 }
  0x81   : > { %373 = vst [vmem:[%s2325_s27 + $0x370] sm:$0xff] %v372_v47 }
  0x82   : > { %375 = vst [vmem:[%s2325_s27 + $0x378] sm:$0xff] %v374_v48 }
  0x83   : > { %377 = vst [vmem:[%s2325_s27 + $0x380] sm:$0xff] %v376_v49 }
  0x84   : > { %379 = vst [vmem:[%s2325_s27 + $0x388] sm:$0xff] %v378_v50 }
  0x85   : > { %381 = vst [vmem:[%s2325_s27 + $0x390] sm:$0xff] %v380_v51 }
  0x86   : > { %383 = vst [vmem:[%s2325_s27 + $0x398] sm:$0xff] %v382_v52 }
  0x87   : > { %385 = vst [vmem:[%s2325_s27 + $0x3a0] sm:$0xff] %v384_v53 }
  0x88   : > { %387 = vst [vmem:[%s2325_s27 + $0x3a8] sm:$0xff] %v386_v54 }
  0x89   : > { %389 = vst [vmem:[%s2325_s27 + $0x3b0] sm:$0xff] %v388_v55 }
  0x8a   : > { %391 = vst [vmem:[%s2325_s27 + $0x3b8] sm:$0xff] %v390_v56 }
  0x8b   : > { %393 = vst [vmem:[%s2325_s27 + $0x3c0] sm:$0xff] %v392_v57 }
  0x8c   : > { %395 = vst [vmem:[%s2325_s27 + $0x3c8] sm:$0xff] %v394_v58 }
  0x8d   : > { %397 = vst [vmem:[%s2325_s27 + $0x3d0] sm:$0xff] %v396_v59 }
  0x8e   : > { %399 = vst [vmem:[%s2325_s27 + $0x3d8] sm:$0xff] %v398_v60 }
  0x8f   : > { %401 = vst [vmem:[%s2325_s27 + $0x3e0] sm:$0xff] %v400_v61 }
  0x90   : > { %403 = vst [vmem:[%s2325_s27 + $0x3e8] sm:$0xff] %v402_v62 }
  0x91   : > { %405 = vst [vmem:[%s2325_s27 + $0x3f0] sm:$0xff] %v404_v63 }
  0x92   : > { %407 = vst [vmem:[%s2325_s27 + $0x3f8] sm:$0xff] %v406_v0 }
  0x93 PF: > { %p1558_p5 = scmp.ge.s32.totalorder %s2260_s16, 1  ;;  %p412_p6 = scmp.lt.s32.totalorder %s2260_s16, 3 }
  0x95   : > { %p413_p7 = pnand %p1558_p5, %p412_p6 }
  0x96   : > { %s419_s28 = sand.u32 (!%p413_p7), 1, %s2252_s14   ;;  %s1560_s6 = sshll.u32 (!%p413_p7), %s1551_s2, 3 }
  0x97   : > { %416 = sbr.rel (%p413_p7) target bundleno = 432 (0x1b0), region = 51  ;;  %s1559_s29 = sshll.u32 (!%p413_p7), %s419_s28, 10 }
  0x98   : > { %s2583_s30 = scalar_lea.vmem (!%p413_p7), [#allocation3], %s1559_s29  ;;  %p443_p8 = scmp.lt.s32.totalorder (!%p413_p7), %s1560_s6, 15 }
  0x9c   : > { %vm1223_vm0 = vcmask 1044480   ;;  %v1787_v1 = vld [vmem:[%s2583_s30 + $0x1c0] sm:$0xf]  ;;  %v2140_v3 = vld [vmem:[%s2583_s30 + $0x1c4] sm:$0xf]  ;;  %vm1220_vm1 = vcmask 998400  }
  0x9d   : > { %v2144_v2 = vld [vmem:[%s2583_s30 + $0x1dc] sm:$0xf0]  ;;  %v1789_v5 = vld [vmem:[%s2583_s30 + $0x1e0] sm:$0xf0]  ;;  %vm1479_vm2 = vcmask 1040384   ;;  %vm1481_vm3 = vcmask 1042434  }
  0x9e   : > { %v1788_v4 = vor.u32 %v2144_v2, %v1787_v1  ;;  %v2043_v6 = vld [vmem:[%s2583_s30 + $0x3c0] sm:$0xf]  ;;  %v1792_v8 = vor.u32 %v2140_v3, %v1789_v5  ;;  %v2204_v10 = vld [vmem:[%s2583_s30 + $0x3c4] sm:$0xf]  ;;  %vm1483_vm4 = vcmask 1041408   ;;  %s2903_s6 = smov (!%p443_p8, %s1560_s6), 15 }
  0x9f   : > { %v2208_v7 = vld [vmem:[%s2583_s30 + $0x3dc] sm:$0x10]  ;;  %v2045_v11 = vld [vmem:[%s2583_s30 + $0x3e0] sm:$0x10]  ;;  %vm1485_vm5 = vcmask 1044484   ;;  %vm1487_vm6 = vcmask 1046534   ;;  %s445_s9 = scalar_lea.vmem %s2898_s3, %s2903_s6 }
  0xa0   : > { %v2044_v9 = vor.u32 %v2208_v7, %v2043_v6  ;;  %v1755_v12 = vld [vmem:[%s2583_s30 + $0x180] sm:$0xf]  ;;  %1248 = vmatpush.bf16.msra.mxu0 %v1788_v4  ;;  %v2048_v13 = vor.u32 %v2204_v10, %v2045_v11  ;;  %v2132_v15 = vld [vmem:[%s2583_s30 + $0x184] sm:$0xf]  ;;  %1274 = vmatpush.bf16.msra.mxu2 %v1792_v8  ;;  %vm1489_vm7 = vcmask 1045508   ;;  %vm1491_vm8 = vcmask 1043456  }
  0xa1   : > { %v2136_v14 = vld [vmem:[%s2583_s30 + $0x19c] sm:$0xf0]  ;;  %v1757_v16 = vld [vmem:[%s2583_s30 + $0x1a0] sm:$0xf0] }
  0xa2   : > { %v1225_v17 = vsel %vm1223_vm0, %v2044_v9, 0  ;;  %v1756_v18 = vor.u32 %v2136_v14, %v1755_v12  ;;  %v1760_v19 = vor.u32 %v2132_v15, %v1757_v16  ;;  %v2011_v20 = vld [vmem:[%s2583_s30 + $0x380] sm:$0xf]  ;;  %v1228_v22 = vsel %vm1223_vm0, %v2048_v13, 0  ;;  %v2196_v24 = vld [vmem:[%s2583_s30 + $0x384] sm:$0xf] }
  0xa3   : > { %v2200_v21 = vld [vmem:[%s2583_s30 + $0x39c] sm:$0xf0]  ;;  %1261 = vmatpush.bf16.msra.mxu1 %v1225_v17  ;;  %v2013_v25 = vld [vmem:[%s2583_s30 + $0x3a0] sm:$0xf0]  ;;  %1287 = vmatpush.bf16.msra.mxu3 %v1228_v22 }
  0xa4   : > { %v2012_v23 = vor.u32 %v2200_v21, %v2011_v20  ;;  %v2016_v26 = vor.u32 %v2196_v24, %v2013_v25  ;;  %v1723_v27 = vld [vmem:[%s2583_s30 + $0x140] sm:$0xf]  ;;  %v2124_v29 = vld [vmem:[%s2583_s30 + $0x144] sm:$0xf]  ;;  %1249 = vmatpush.bf16.msra.mxu0 %v1756_v18  ;;  %1275 = vmatpush.bf16.msra.mxu2 %v1760_v19 }
  0xa5   : > { %v2128_v28 = vld [vmem:[%s2583_s30 + $0x15c] sm:$0xf0]  ;;  %v1725_v31 = vld [vmem:[%s2583_s30 + $0x160] sm:$0xf0] }
  0xa6   : > { %v1724_v30 = vor.u32 %v2128_v28, %v1723_v27  ;;  %v1979_v32 = vld [vmem:[%s2583_s30 + $0x340] sm:$0xf]  ;;  %v1728_v34 = vor.u32 %v2124_v29, %v1725_v31  ;;  %v2188_v35 = vld [vmem:[%s2583_s30 + $0x344] sm:$0xf]  ;;  %v2051_v27 = vld [vmem:[%s2583_s30 + $0x3c8] sm:$0xf] }
  0xa7   : > { %v2192_v33 = vld [vmem:[%s2583_s30 + $0x35c] sm:$0xf0]  ;;  %v1981_v36 = vld [vmem:[%s2583_s30 + $0x360] sm:$0xf0]  ;;  %1262 = vmatpush.bf16.msra.mxu1 %v2012_v23  ;;  %1288 = vmatpush.bf16.msra.mxu3 %v2016_v26  ;;  %v1795_v26 = vld [vmem:[%s2583_s30 + $0x1c8] sm:$0xf] }
  0xa8   : > { %v1691_v37 = vld [vmem:[%s2583_s30 + $0x100] sm:$0xf]  ;;  %v1980_v38 = vor.u32 %v2192_v33, %v1979_v32  ;;  %v2116_v40 = vld [vmem:[%s2583_s30 + $0x104] sm:$0xf]  ;;  %v1984_v42 = vor.u32 %v2188_v35, %v1981_v36  ;;  %1250 = vmatpush.bf16.msra.mxu0 %v1724_v30  ;;  %1276 = vmatpush.bf16.msra.mxu2 %v1728_v34  ;;  %v2209_v28 = vld [vmem:[%s2583_s30 + $0x3e4] sm:$0x10] }
  0xa9   : > { %v2120_v39 = vld [vmem:[%s2583_s30 + $0x11c] sm:$0xf0]  ;;  %v1693_v41 = vld [vmem:[%s2583_s30 + $0x120] sm:$0xf0]  ;;  %v2145_v30 = vld [vmem:[%s2583_s30 + $0x1e4] sm:$0xf0] }
  0xaa   : > { %v1947_v43 = vld [vmem:[%s2583_s30 + $0x300] sm:$0xf]  ;;  %v1692_v45 = vor.u32 %v2120_v39, %v1691_v37  ;;  %v2180_v46 = vld [vmem:[%s2583_s30 + $0x304] sm:$0xf]  ;;  %v1696_v48 = vor.u32 %v2116_v40, %v1693_v41  ;;  %v2205_v31 = vld [vmem:[%s2583_s30 + $0x3cc] sm:$0xf]  ;;  %v2052_v40 = vor.u32 %v2209_v28, %v2051_v27 }
  0xab   : > { %v2184_v44 = vld [vmem:[%s2583_s30 + $0x31c] sm:$0xf0]  ;;  %v1949_v47 = vld [vmem:[%s2583_s30 + $0x320] sm:$0xf0]  ;;  %1263 = vmatpush.bf16.msra.mxu1 %v1980_v38  ;;  %1289 = vmatpush.bf16.msra.mxu3 %v1984_v42  ;;  %v2053_v32 = vld [vmem:[%s2583_s30 + $0x3e8] sm:$0x10]  ;;  %v1796_v42 = vor.u32 %v2145_v30, %v1795_v26 }
  0xac   : > { %v1659_v49 = vld [vmem:[%s2583_s30 + $0xc0] sm:$0xf]  ;;  %v1948_v51 = vor.u32 %v2184_v44, %v1947_v43  ;;  %v2108_v52 = vld [vmem:[%s2583_s30 + $0xc4] sm:$0xf]  ;;  %v1952_v54 = vor.u32 %v2180_v46, %v1949_v47  ;;  %1251 = vmatpush.bf16.msra.mxu0 %v1692_v45  ;;  %1277 = vmatpush.bf16.msra.mxu2 %v1696_v48  ;;  %v2141_v35 = vld [vmem:[%s2583_s30 + $0x1cc] sm:$0xf]  ;;  %v2056_v43 = vor.u32 %v2205_v31, %v2053_v32 }
  0xad   : > { %v2112_v50 = vld [vmem:[%s2583_s30 + $0xdc] sm:$0xf0]  ;;  %v1661_v53 = vld [vmem:[%s2583_s30 + $0xe0] sm:$0xf0]  ;;  %v1797_v36 = vld [vmem:[%s2583_s30 + $0x1e8] sm:$0xf0] }
  0xae   : > { %v1915_v55 = vld [vmem:[%s2583_s30 + $0x2c0] sm:$0xf]  ;;  %v1660_v57 = vor.u32 %v2112_v50, %v1659_v49  ;;  %v2172_v58 = vld [vmem:[%s2583_s30 + $0x2c4] sm:$0xf]  ;;  %v1664_v60 = vor.u32 %v2108_v52, %v1661_v53  ;;  %v1800_v45 = vor.u32 %v2141_v35, %v1797_v36  ;;  %v1763_v46 = vld [vmem:[%s2583_s30 + $0x188] sm:$0xf] }
  0xaf   : > { %v2176_v56 = vld [vmem:[%s2583_s30 + $0x2dc] sm:$0xf0]  ;;  %v1917_v59 = vld [vmem:[%s2583_s30 + $0x2e0] sm:$0xf0]  ;;  %1264 = vmatpush.bf16.msra.mxu1 %v1948_v51  ;;  %1290 = vmatpush.bf16.msra.mxu3 %v1952_v54  ;;  %v2137_v47 = vld [vmem:[%s2583_s30 + $0x1a4] sm:$0xf0] }
  0xb0   : > { %v1627_v61 = vld [vmem:[%s2583_s30 + $0x80] sm:$0xf]  ;;  %v1916_v63 = vor.u32 %v2176_v56, %v1915_v55  ;;  %v2100_v0 = vld [vmem:[%s2583_s30 + $0x84] sm:$0xf]  ;;  %v1920_v2 = vor.u32 %v2172_v58, %v1917_v59  ;;  %1252 = vmatpush.bf16.msra.mxu0 %v1660_v57  ;;  %1278 = vmatpush.bf16.msra.mxu2 %v1664_v60  ;;  %v2133_v49 = vld [vmem:[%s2583_s30 + $0x18c] sm:$0xf]  ;;  %v1764_v55 = vor.u32 %v2137_v47, %v1763_v46 }
  0xb1   : > { %v2104_v62 = vld [vmem:[%s2583_s30 + $0x9c] sm:$0xf0]  ;;  %v1629_v1 = vld [vmem:[%s2583_s30 + $0xa0] sm:$0xf0]  ;;  %v1765_v50 = vld [vmem:[%s2583_s30 + $0x1a8] sm:$0xf0] }
  0xb2   : > { %v1883_v3 = vld [vmem:[%s2583_s30 + $0x280] sm:$0xf]  ;;  %v1628_v5 = vor.u32 %v2104_v62, %v1627_v61  ;;  %v2164_v6 = vld [vmem:[%s2583_s30 + $0x284] sm:$0xf]  ;;  %v1632_v8 = vor.u32 %v2100_v0, %v1629_v1  ;;  %v1231_v51 = vsel %vm1223_vm0, %v2052_v40, 0  ;;  %v1234_v54 = vsel %vm1223_vm0, %v2056_v43, 0 }
  0xb3   : > { %v2168_v4 = vld [vmem:[%s2583_s30 + $0x29c] sm:$0xf0]  ;;  %v1885_v7 = vld [vmem:[%s2583_s30 + $0x2a0] sm:$0xf0]  ;;  %1265 = vmatpush.bf16.msra.mxu1 %v1916_v63  ;;  %1291 = vmatpush.bf16.msra.mxu3 %v1920_v2  ;;  %v2019_v52 = vld [vmem:[%s2583_s30 + $0x388] sm:$0xf]  ;;  %v1768_v58 = vor.u32 %v2133_v49, %v1765_v50 }
  0xb4   : > { %v1595_v9 = vld [vmem:[%s2583_s30 + $0x40] sm:$0xf]  ;;  %v2092_v11 = vld [vmem:[%s2583_s30 + $0x44] sm:$0xf]  ;;  %v1884_v12 = vor.u32 %v2168_v4, %v1883_v3  ;;  %v1888_v16 = vor.u32 %v2164_v6, %v1885_v7  ;;  %1253 = vmatpush.bf16.msra.mxu0 %v1628_v5  ;;  %1279 = vmatpush.bf16.msra.mxu2 %v1632_v8  ;;  %v2201_v53 = vld [vmem:[%s2583_s30 + $0x3a4] sm:$0xf0] }
  0xb5   : > { %v2096_v10 = vld [vmem:[%s2583_s30 + $0x5c] sm:$0xf0]  ;;  %v1597_v13 = vld [vmem:[%s2583_s30 + $0x60] sm:$0xf0]  ;;  %v2197_v56 = vld [vmem:[%s2583_s30 + $0x38c] sm:$0xf]  ;;  %v2020_v62 = vor.u32 %v2201_v53, %v2019_v52 }
  0xb6   : > { %v1851_v14 = vld [vmem:[%s2583_s30 + $0x240] sm:$0xf]  ;;  %v2156_v17 = vld [vmem:[%s2583_s30 + $0x244] sm:$0xf]  ;;  %v1596_v20 = vor.u32 %v2096_v10, %v1595_v9  ;;  %v1600_v24 = vor.u32 %v2092_v11, %v1597_v13  ;;  %v2021_v57 = vld [vmem:[%s2583_s30 + $0x3a8] sm:$0xf0] }
  0xb7   : > { %v2160_v15 = vld [vmem:[%s2583_s30 + $0x25c] sm:$0xf0]  ;;  %v1853_v18 = vld [vmem:[%s2583_s30 + $0x260] sm:$0xf0]  ;;  %1266 = vmatpush.bf16.msra.mxu1 %v1884_v12  ;;  %1292 = vmatpush.bf16.msra.mxu3 %v1888_v16  ;;  %v1731_v59 = vld [vmem:[%s2583_s30 + $0x148] sm:$0xf]  ;;  %v2024_v1 = vor.u32 %v2197_v56, %v2021_v57 }
  0xb8   : > { %v1563_v19 = vld [vmem:[%s2583_s30] sm:$0xf]  ;;  %v2084_v22 = vld [vmem:[%s2583_s30 + $0x4] sm:$0xf]  ;;  %v1852_v29 = vor.u32 %v2160_v15, %v1851_v14  ;;  %v1856_v33 = vor.u32 %v2156_v17, %v1853_v18  ;;  %1254 = vmatpush.bf16.msra.mxu0 %v1596_v20  ;;  %1280 = vmatpush.bf16.msra.mxu2 %v1600_v24  ;;  %v2129_v60 = vld [vmem:[%s2583_s30 + $0x164] sm:$0xf0] }
  0xb9   : > { %v2088_v21 = vld [vmem:[%s2583_s30 + $0x1c] sm:$0xf0]  ;;  %v1565_v23 = vld [vmem:[%s2583_s30 + $0x20] sm:$0xf0]  ;;  %v447_v61 = vld [vmem:[%s2896_s1] sm:$0x3]  ;;  %v1732_v4 = vor.u32 %v2129_v60, %v1731_v59 }
  0xba   : > { %v1819_v25 = vld [vmem:[%s2583_s30 + $0x200] sm:$0xf]  ;;  %v1564_v37 = vor.u32 %v2088_v21, %v1563_v19  ;;  %v2148_v38 = vld [vmem:[%s2583_s30 + $0x204] sm:$0xf]  ;;  %v1568_v41 = vor.u32 %v2084_v22, %v1565_v23  ;;  %v2125_v63 = vld [vmem:[%s2583_s30 + $0x14c] sm:$0xf] }
  0xbb   : > { %v2152_v34 = vld [vmem:[%s2583_s30 + $0x21c] sm:$0xf0]  ;;  %v1821_v39 = vld [vmem:[%s2583_s30 + $0x220] sm:$0xf0]  ;;  %1267 = vmatpush.bf16.msra.mxu1 %v1852_v29  ;;  %1293 = vmatpush.bf16.msra.mxu3 %v1856_v33  ;;  %v1733_v0 = vld [vmem:[%s2583_s30 + $0x168] sm:$0xf0] }
  0xbc   : > { %v1820_v44 = vor.u32 %v2152_v34, %v1819_v25  ;;  %v1824_v48 = vor.u32 %v2148_v38, %v1821_v39  ;;  %1255 = vmatpush.bf16.msra.mxu0 %v1564_v37  ;;  %1281 = vmatpush.bf16.msra.mxu2 %v1568_v41  ;;  %584 = vst [vmem:[#allocation1] ss:$9 sm:$0xff] %v447_v61  ;;  %v1987_v2 = vld [vmem:[%s2583_s30 + $0x348] sm:$0xf]  ;;  %v2189_v5 = vld [vmem:[%s2583_s30 + $0x34c] sm:$0xf] }
  0xbd   : > { %v2193_v3 = vld [vmem:[%s2583_s30 + $0x364] sm:$0xf0]  ;;  %v1989_v6 = vld [vmem:[%s2583_s30 + $0x368] sm:$0xf0]  ;;  %v1736_v7 = vor.u32 %v2125_v63, %v1733_v0  ;;  %v2262_v39 = vmov 0  }
  0xbe   : > { %v1699_v8 = vld [vmem:[%s2583_s30 + $0x108] sm:$0xf]  ;;  %v1988_v10 = vor.u32 %v2193_v3, %v1987_v2  ;;  %v2117_v11 = vld [vmem:[%s2583_s30 + $0x10c] sm:$0xf]  ;;  %v1992_v13 = vor.u32 %v2189_v5, %v1989_v6  ;;  %2237 = vset.pattern.permute.xlu0 %v2262_v39  ;;  %v2059_v2 = vld [vmem:[%s2583_s30 + $0x3d0] sm:$0xf] }
  0xbf   : > { %1268 = vmatpush.bf16.msra.mxu1 %v1820_v44  ;;  %1294 = vmatpush.bf16.msra.mxu3 %v1824_v48  ;;  %v2121_v9 = vld [vmem:[%s2583_s30 + $0x124] sm:$0xf0]  ;;  %v1701_v12 = vld [vmem:[%s2583_s30 + $0x128] sm:$0xf0]  ;;  %v2210_v3 = vld [vmem:[%s2583_s30 + $0x3ec] sm:$0x10] }
  0xc0   : > { %1300 = vmatpush.bf16.msrb.mxu0 %v1796_v42  ;;  %1326 = vmatpush.bf16.msrb.mxu2 %v1800_v45  ;;  %v1955_v14 = vld [vmem:[%s2583_s30 + $0x308] sm:$0xf]  ;;  %v1700_v16 = vor.u32 %v2121_v9, %v1699_v8  ;;  %v2181_v17 = vld [vmem:[%s2583_s30 + $0x30c] sm:$0xf]  ;;  %v1704_v20 = vor.u32 %v2117_v11, %v1701_v12  ;;  %v2146_v5 = vld [vmem:[%s2583_s30 + $0x1ec] sm:$0xf0] }
  0xc1   : > { %v2185_v15 = vld [vmem:[%s2583_s30 + $0x324] sm:$0xf0]  ;;  %v1957_v18 = vld [vmem:[%s2583_s30 + $0x328] sm:$0xf0]  ;;  %v2206_v6 = vld [vmem:[%s2583_s30 + $0x3d4] sm:$0xf] }
  0xc2   : > { %v1667_v19 = vld [vmem:[%s2583_s30 + $0xc8] sm:$0xf]  ;;  %v1956_v24 = vor.u32 %v2185_v15, %v1955_v14  ;;  %v2109_v25 = vld [vmem:[%s2583_s30 + $0xcc] sm:$0xf]  ;;  %v1960_v27 = vor.u32 %v2181_v17, %v1957_v18  ;;  %v2142_v9 = vld [vmem:[%s2583_s30 + $0x1d4] sm:$0xf]  ;;  %v2060_v15 = vor.u32 %v2210_v3, %v2059_v2 }
  0xc3   : > { %1313 = vmatpush.bf16.msrb.mxu1 %v1231_v51  ;;  %1339 = vmatpush.bf16.msrb.mxu3 %v1234_v54  ;;  %v2689_v21 = vld [vmem:[#allocation1] sm:$0xff]  ;;  %v2113_v22 = vld [vmem:[%s2583_s30 + $0xe4] sm:$0xf0]  ;;  %v2692_v23 = vld [vmem:[#allocation1 + $0x9] sm:$0xff] }
  0xc4   : > { %1301 = vmatpush.bf16.msrb.mxu0 %v1764_v55  ;;  %1327 = vmatpush.bf16.msrb.mxu2 %v1768_v58  ;;  %v1669_v26 = vld [vmem:[%s2583_s30 + $0xe8] sm:$0xf0]  ;;  %v1923_v28 = vld [vmem:[%s2583_s30 + $0x2c8] sm:$0xf]  ;;  %v1668_v30 = vor.u32 %v2113_v22, %v1667_v19  ;;  %v576_v11 = vld [vmem:[#allocation2] sm:$0x1] }
  0xc5   : > { %1282 = vmatmul.bf16.vlgmr.msra.gmra.mxu2 %v2689_v21  ;;  %v2177_v29 = vld [vmem:[%s2583_s30 + $0x2e4] sm:$0xf0]  ;;  %1256 = vmatmul.bf16.vlgmr.msra.gmra.mxu0 %v2689_v21  ;;  %v2173_v31 = vld [vmem:[%s2583_s30 + $0x2cc] sm:$0xf]  ;;  %v1672_v33 = vor.u32 %v2109_v25, %v1669_v26  ;;  %v1771_v22 = vld [vmem:[%s2583_s30 + $0x190] sm:$0xf] }
  0xc6   : > { %2074 = vmatmul.msk.bf16.vlgmr.msra.gmra.mxu3 %vm1220_vm1, %v2692_v23  ;;  %v1925_v32 = vld [vmem:[%s2583_s30 + $0x2e8] sm:$0xf0]  ;;  %v1635_v34 = vld [vmem:[%s2583_s30 + $0x88] sm:$0xf]  ;;  %2073 = vmatmul.msk.bf16.vlgmr.msra.gmra.mxu1 %vm1220_vm1, %v2692_v23  ;;  %v1924_v36 = vor.u32 %v2177_v29, %v1923_v28  ;;  %v2134_v26 = vld [vmem:[%s2583_s30 + $0x194] sm:$0xf] }
  0xc7   : > { %1314 = vmatpush.bf16.msrb.mxu1 %v2020_v62  ;;  %1340 = vmatpush.bf16.msrb.mxu3 %v2024_v1  ;;  %v2105_v35 = vld [vmem:[%s2583_s30 + $0xa4] sm:$0xf0]  ;;  %v2101_v37 = vld [vmem:[%s2583_s30 + $0x8c] sm:$0xf]  ;;  %v1928_v40 = vor.u32 %v2173_v31, %v1925_v32  ;;  %v1803_v1 = vld [vmem:[%s2583_s30 + $0x1d0] sm:$0xf] }
  0xc8   : > { %1302 = vmatpush.bf16.msrb.mxu0 %v1732_v4  ;;  %1328 = vmatpush.bf16.msrb.mxu2 %v1736_v7  ;;  %v1637_v38 = vld [vmem:[%s2583_s30 + $0xa8] sm:$0xf0]  ;;  %v1891_v41 = vld [vmem:[%s2583_s30 + $0x288] sm:$0xf]  ;;  %v1636_v43 = vor.u32 %v2105_v35, %v1635_v34  ;;  %v2061_v7 = vld [vmem:[%s2583_s30 + $0x3f0] sm:$0x10]  ;;  %v1804_v17 = vor.u32 %v2146_v5, %v1803_v1 }
  0xc9   : > { %v2169_v42 = vld [vmem:[%s2583_s30 + $0x2a4] sm:$0xf0]  ;;  %v2165_v44 = vld [vmem:[%s2583_s30 + $0x28c] sm:$0xf]  ;;  %v1640_v46 = vor.u32 %v2101_v37, %v1637_v38  ;;  %579 = vperm.xlu0 %2237, %v576_v11   ;;  %v2064_v18 = vor.u32 %v2206_v6, %v2061_v7  ;;  %v1237_v28 = vsel %vm1223_vm0, %v2060_v15, 0 }
  0xca   : > { %v1893_v45 = vld [vmem:[%s2583_s30 + $0x2a8] sm:$0xf0]  ;;  %v1603_v47 = vld [vmem:[%s2583_s30 + $0x48] sm:$0xf]  ;;  %v1892_v50 = vor.u32 %v2169_v42, %v1891_v41  ;;  %v2027_v29 = vld [vmem:[%s2583_s30 + $0x390] sm:$0xf] }
  0xcb   : > { %1315 = vmatpush.bf16.msrb.mxu1 %v1988_v10  ;;  %1341 = vmatpush.bf16.msrb.mxu3 %v1992_v13  ;;  %v2097_v48 = vld [vmem:[%s2583_s30 + $0x64] sm:$0xf0]  ;;  %v2093_v49 = vld [vmem:[%s2583_s30 + $0x4c] sm:$0xf]  ;;  %v1896_v54 = vor.u32 %v2165_v44, %v1893_v45  ;;  %v1805_v10 = vld [vmem:[%s2583_s30 + $0x1f0] sm:$0xf0] }
  0xcc   : > { %1303 = vmatpush.bf16.msrb.mxu0 %v1700_v16  ;;  %1329 = vmatpush.bf16.msrb.mxu2 %v1704_v20  ;;  %v1605_v51 = vld [vmem:[%s2583_s30 + $0x68] sm:$0xf0]  ;;  %v1859_v52 = vld [vmem:[%s2583_s30 + $0x248] sm:$0xf]  ;;  %v1604_v58 = vor.u32 %v2097_v48, %v1603_v47  ;;  %v1808_v20 = vor.u32 %v2142_v9, %v1805_v10  ;;  %v1240_v31 = vsel %vm1223_vm0, %v2064_v18, 0 }
  0xcd   : > { %v2161_v53 = vld [vmem:[%s2583_s30 + $0x264] sm:$0xf0]  ;;  %v2157_v55 = vld [vmem:[%s2583_s30 + $0x24c] sm:$0xf]  ;;  %v1608_v62 = vor.u32 %v2093_v49, %v1605_v51  ;;  %v2029_v34 = vld [vmem:[%s2583_s30 + $0x3b0] sm:$0xf0] }
  0xce   : > { %v1861_v56 = vld [vmem:[%s2583_s30 + $0x268] sm:$0xf0]  ;;  %v1571_v57 = vld [vmem:[%s2583_s30 + $0x8] sm:$0xf]  ;;  %v1860_v4 = vor.u32 %v2161_v53, %v1859_v52  ;;  %v2130_v37 = vld [vmem:[%s2583_s30 + $0x16c] sm:$0xf0] }
  0xcf   : > { %1316 = vmatpush.bf16.msrb.mxu1 %v1956_v24  ;;  %1342 = vmatpush.bf16.msrb.mxu3 %v1960_v27  ;;  %v2089_v59 = vld [vmem:[%s2583_s30 + $0x24] sm:$0xf0]  ;;  %v2085_v60 = vld [vmem:[%s2583_s30 + $0xc] sm:$0xf]  ;;  %v1864_v8 = vor.u32 %v2157_v55, %v1861_v56  ;;  %v2138_v24 = vld [vmem:[%s2583_s30 + $0x1ac] sm:$0xf0] }
  0xd0   : > { %1304 = vmatpush.bf16.msrb.mxu0 %v1668_v30  ;;  %1330 = vmatpush.bf16.msrb.mxu2 %v1672_v33  ;;  %v1573_v61 = vld [vmem:[%s2583_s30 + $0x28] sm:$0xf0]  ;;  %v1827_v63 = vld [vmem:[%s2583_s30 + $0x208] sm:$0xf]  ;;  %v1572_v12 = vor.u32 %v2089_v59, %v1571_v57  ;;  %v1773_v27 = vld [vmem:[%s2583_s30 + $0x1b0] sm:$0xf0]  ;;  %v1772_v32 = vor.u32 %v2138_v24, %v1771_v22 }
  0xd1   : > { %v2153_v0 = vld [vmem:[%s2583_s30 + $0x224] sm:$0xf0]  ;;  %v2149_v13 = vld [vmem:[%s2583_s30 + $0x20c] sm:$0xf]  ;;  %v1576_v16 = vor.u32 %v2085_v60, %v1573_v61  ;;  %v2202_v30 = vld [vmem:[%s2583_s30 + $0x3ac] sm:$0xf0]  ;;  %v1776_v35 = vor.u32 %v2134_v26, %v1773_v27 }
  0xd2   : > { %v1829_v14 = vld [vmem:[%s2583_s30 + $0x228] sm:$0xf0]  ;;  %v1828_v19 = vor.u32 %v2153_v0, %v1827_v63  ;;  %v2198_v33 = vld [vmem:[%s2583_s30 + $0x394] sm:$0xf]  ;;  %v2028_v38 = vor.u32 %v2202_v30, %v2027_v29  ;;  %v1995_v42 = vld [vmem:[%s2583_s30 + $0x350] sm:$0xf] }
  0xd3   : > { %1317 = vmatpush.bf16.msrb.mxu1 %v1924_v36  ;;  %1343 = vmatpush.bf16.msrb.mxu3 %v1928_v40  ;;  %v1832_v25 = vor.u32 %v2149_v13, %v1829_v14  ;;  %v1739_v36 = vld [vmem:[%s2583_s30 + $0x150] sm:$0xf]  ;;  %v2126_v39 = vld [vmem:[%s2583_s30 + $0x154] sm:$0xf]  ;;  %v2032_v41 = vor.u32 %v2198_v33, %v2029_v34 }
  0xd4   : > { %1305 = vmatpush.bf16.msrb.mxu0 %v1636_v43  ;;  %1331 = vmatpush.bf16.msrb.mxu2 %v1640_v46  ;;  %v1741_v40 = vld [vmem:[%s2583_s30 + $0x170] sm:$0xf0]  ;;  %v2194_v43 = vld [vmem:[%s2583_s30 + $0x36c] sm:$0xf0]  ;;  %v1740_v44 = vor.u32 %v2130_v37, %v1739_v36 }
  0xd5   : > { %v2190_v45 = vld [vmem:[%s2583_s30 + $0x354] sm:$0xf]  ;;  %v1744_v47 = vor.u32 %v2126_v39, %v1741_v40  ;;  %v1707_v48 = vld [vmem:[%s2583_s30 + $0x110] sm:$0xf]  ;;  %v1811_v39 = vld [vmem:[%s2583_s30 + $0x1d8] sm:$0xf] }
  0xd6   : > { %v1997_v46 = vld [vmem:[%s2583_s30 + $0x370] sm:$0xf0]  ;;  %v2122_v49 = vld [vmem:[%s2583_s30 + $0x12c] sm:$0xf0]  ;;  %v2067_v40 = vld [vmem:[%s2583_s30 + $0x3d8] sm:$0xf] }
  0xd7   : > { %1318 = vmatpush.bf16.msrb.mxu1 %v1892_v50  ;;  %1344 = vmatpush.bf16.msrb.mxu3 %v1896_v54  ;;  %v1996_v50 = vor.u32 %v2194_v43, %v1995_v42  ;;  %v2118_v51 = vld [vmem:[%s2583_s30 + $0x114] sm:$0xf]  ;;  %v2000_v53 = vor.u32 %v2190_v45, %v1997_v46  ;;  %v1963_v54 = vld [vmem:[%s2583_s30 + $0x310] sm:$0xf]  ;;  %v1708_v56 = vor.u32 %v2122_v49, %v1707_v48  ;;  %v2147_v43 = vld [vmem:[%s2583_s30 + $0x1f4] sm:$0xf0] }
  0xd8   : > { %1306 = vmatpush.bf16.msrb.mxu0 %v1604_v58  ;;  %1332 = vmatpush.bf16.msrb.mxu2 %v1608_v62  ;;  %v1709_v52 = vld [vmem:[%s2583_s30 + $0x130] sm:$0xf0]  ;;  %v2186_v55 = vld [vmem:[%s2583_s30 + $0x32c] sm:$0xf0]  ;;  %v2069_v45 = vld [vmem:[%s2583_s30 + $0x3f8] sm:$0x10] }
  0xd9   : > { %v2182_v57 = vld [vmem:[%s2583_s30 + $0x314] sm:$0xf]  ;;  %v1712_v59 = vor.u32 %v2118_v51, %v1709_v52  ;;  %v1675_v60 = vld [vmem:[%s2583_s30 + $0xd0] sm:$0xf]  ;;  %v1964_v62 = vor.u32 %v2186_v55, %v1963_v54  ;;  %v2143_v48 = vld [vmem:[%s2583_s30 + $0x1dc] sm:$0xf]  ;;  %v1812_v55 = vor.u32 %v2147_v43, %v1811_v39 }
  0xda   : > { %v1965_v58 = vld [vmem:[%s2583_s30 + $0x330] sm:$0xf0]  ;;  %v2114_v61 = vld [vmem:[%s2583_s30 + $0xec] sm:$0xf0]  ;;  %v1813_v49 = vld [vmem:[%s2583_s30 + $0x1f8] sm:$0xf0] }
  0xdb   : > { %1319 = vmatpush.bf16.msrb.mxu1 %v1860_v4  ;;  %1345 = vmatpush.bf16.msrb.mxu3 %v1864_v8  ;;  %v2110_v63 = vld [vmem:[%s2583_s30 + $0xd4] sm:$0xf]  ;;  %v1968_v1 = vor.u32 %v2182_v57, %v1965_v58  ;;  %v1931_v2 = vld [vmem:[%s2583_s30 + $0x2d0] sm:$0xf]  ;;  %v1676_v4 = vor.u32 %v2114_v61, %v1675_v60  ;;  %v1816_v58 = vor.u32 %v2143_v48, %v1813_v49  ;;  %v2139_v60 = vld [vmem:[%s2583_s30 + $0x1b4] sm:$0xf0] }
  0xdc   : > { %1307 = vmatpush.bf16.msrb.mxu0 %v1572_v12  ;;  %1333 = vmatpush.bf16.msrb.mxu2 %v1576_v16  ;;  %v1677_v0 = vld [vmem:[%s2583_s30 + $0xf0] sm:$0xf0]  ;;  %v2178_v3 = vld [vmem:[%s2583_s30 + $0x2ec] sm:$0xf0]  ;;  %v2175_v43 = vld [vmem:[%s2583_s30 + $0x2dc] sm:$0xf] }
  0xdd   : > { %v2174_v5 = vld [vmem:[%s2583_s30 + $0x2d4] sm:$0xf]  ;;  %v1680_v7 = vor.u32 %v2110_v63, %v1677_v0  ;;  %v1643_v8 = vld [vmem:[%s2583_s30 + $0x90] sm:$0xf]  ;;  %v1932_v10 = vor.u32 %v2178_v3, %v1931_v2  ;;  %v1781_v63 = vld [vmem:[%s2583_s30 + $0x1b8] sm:$0xf0] }
  0xde   : > { %v1933_v6 = vld [vmem:[%s2583_s30 + $0x2f0] sm:$0xf0]  ;;  %v2106_v9 = vld [vmem:[%s2583_s30 + $0xac] sm:$0xf0]  ;;  %v2203_v2 = vld [vmem:[%s2583_s30 + $0x3b4] sm:$0xf0] }
  0xdf   : > { %1320 = vmatpush.bf16.msrb.mxu1 %v1828_v19  ;;  %1346 = vmatpush.bf16.msrb.mxu3 %v1832_v25  ;;  %v2102_v11 = vld [vmem:[%s2583_s30 + $0x94] sm:$0xf]  ;;  %v1936_v13 = vor.u32 %v2174_v5, %v1933_v6  ;;  %v1899_v14 = vld [vmem:[%s2583_s30 + $0x290] sm:$0xf]  ;;  %v1644_v16 = vor.u32 %v2106_v9, %v1643_v8  ;;  %v2199_v5 = vld [vmem:[%s2583_s30 + $0x39c] sm:$0xf] }
  0xe0   : > { %1352 = vmatpush.bf16.msra.mxu0 %v1804_v17  ;;  %1378 = vmatpush.bf16.msra.mxu2 %v1808_v20  ;;  %v1645_v12 = vld [vmem:[%s2583_s30 + $0xb0] sm:$0xf0]  ;;  %v2170_v15 = vld [vmem:[%s2583_s30 + $0x2ac] sm:$0xf0]  ;;  %v2037_v6 = vld [vmem:[%s2583_s30 + $0x3b8] sm:$0xf0] }
  0xe1   : > { %1334 = vmatmul.bf16.vlgmr.msrb.gmra.mxu2 %v2689_v21  ;;  %1308 = vmatmul.bf16.vlgmr.msrb.gmra.mxu0 %v2689_v21  ;;  %v2166_v17 = vld [vmem:[%s2583_s30 + $0x294] sm:$0xf]  ;;  %v1648_v19 = vor.u32 %v2102_v11, %v1645_v12  ;;  %v1611_v20 = vld [vmem:[%s2583_s30 + $0x50] sm:$0xf]  ;;  %v1900_v25 = vor.u32 %v2170_v15, %v1899_v14  ;;  %v1747_v8 = vld [vmem:[%s2583_s30 + $0x158] sm:$0xf] }
  0xe2   : > { %2075 = vmatmul.msk.bf16.vlgmr.msrb.gmra.mxu1 %vm1220_vm1, %v2692_v23  ;;  %2076 = vmatmul.msk.bf16.vlgmr.msrb.gmra.mxu3 %vm1220_vm1, %v2692_v23  ;;  %v1901_v18 = vld [vmem:[%s2583_s30 + $0x2b0] sm:$0xf0]  ;;  %v2098_v22 = vld [vmem:[%s2583_s30 + $0x6c] sm:$0xf0]  ;;  %v2131_v9 = vld [vmem:[%s2583_s30 + $0x174] sm:$0xf0] }
  0xe3   : > { %1365 = vmatpush.bf16.msra.mxu1 %v1237_v28  ;;  %1391 = vmatpush.bf16.msra.mxu3 %v1240_v31  ;;  %v2094_v24 = vld [vmem:[%s2583_s30 + $0x54] sm:$0xf]  ;;  %v1867_v27 = vld [vmem:[%s2583_s30 + $0x250] sm:$0xf]  ;;  %v1904_v29 = vor.u32 %v2166_v17, %v1901_v18  ;;  %v1612_v33 = vor.u32 %v2098_v22, %v1611_v20  ;;  %v2127_v11 = vld [vmem:[%s2583_s30 + $0x15c] sm:$0xf] }
  0xe4   : > { %1353 = vmatpush.bf16.msra.mxu0 %v1772_v32  ;;  %1379 = vmatpush.bf16.msra.mxu2 %v1776_v35  ;;  %v1613_v26 = vld [vmem:[%s2583_s30 + $0x70] sm:$0xf0]  ;;  %v2162_v28 = vld [vmem:[%s2583_s30 + $0x26c] sm:$0xf0]  ;;  %v1749_v12 = vld [vmem:[%s2583_s30 + $0x178] sm:$0xf0] }
  0xe5   : > { %v2158_v30 = vld [vmem:[%s2583_s30 + $0x254] sm:$0xf]  ;;  %v1579_v32 = vld [vmem:[%s2583_s30 + $0x10] sm:$0xf]  ;;  %v1616_v37 = vor.u32 %v2094_v24, %v1613_v26  ;;  %v1868_v42 = vor.u32 %v2162_v28, %v1867_v27  ;;  %v2003_v14 = vld [vmem:[%s2583_s30 + $0x358] sm:$0xf] }
  0xe6   : > { %v1869_v31 = vld [vmem:[%s2583_s30 + $0x270] sm:$0xf0]  ;;  %v2090_v34 = vld [vmem:[%s2583_s30 + $0x2c] sm:$0xf0]  ;;  %v2195_v15 = vld [vmem:[%s2583_s30 + $0x374] sm:$0xf0] }
  0xe7   : > { %1366 = vmatpush.bf16.msra.mxu1 %v2028_v38  ;;  %1392 = vmatpush.bf16.msra.mxu3 %v2032_v41  ;;  %v2086_v35 = vld [vmem:[%s2583_s30 + $0x14] sm:$0xf]  ;;  %v1835_v38 = vld [vmem:[%s2583_s30 + $0x210] sm:$0xf]  ;;  %v2211_v41 = vld [vmem:[%s2583_s30 + $0x3f4] sm:$0x10]  ;;  %v1872_v46 = vor.u32 %v2158_v30, %v1869_v31  ;;  %v2004_v24 = vor.u32 %v2195_v15, %v2003_v14 }
  0xe8   : > { %1354 = vmatpush.bf16.msra.mxu0 %v1740_v44  ;;  %1380 = vmatpush.bf16.msra.mxu2 %v1744_v47  ;;  %v1581_v36 = vld [vmem:[%s2583_s30 + $0x30] sm:$0xf0]  ;;  %v2207_v44 = vld [vmem:[%s2583_s30 + $0x3dc] sm:$0xf]  ;;  %v2154_v47 = vld [vmem:[%s2583_s30 + $0x22c] sm:$0xf0] }
  0xe9   : > { %v2150_v51 = vld [vmem:[%s2583_s30 + $0x214] sm:$0xf]  ;;  %v1584_v54 = vor.u32 %v2086_v35, %v1581_v36  ;;  %v1836_v57 = vor.u32 %v2154_v47, %v1835_v38  ;;  %v2191_v17 = vld [vmem:[%s2583_s30 + $0x35c] sm:$0xf]  ;;  %v1715_v20 = vld [vmem:[%s2583_s30 + $0x118] sm:$0xf] }
  0xea   : > { %v1837_v52 = vld [vmem:[%s2583_s30 + $0x230] sm:$0xf0]  ;;  %v2005_v18 = vld [vmem:[%s2583_s30 + $0x378] sm:$0xf0]  ;;  %v2123_v22 = vld [vmem:[%s2583_s30 + $0x134] sm:$0xf0] }
  0xeb   : > { %1367 = vmatpush.bf16.msra.mxu1 %v1996_v50  ;;  %1393 = vmatpush.bf16.msra.mxu3 %v2000_v53  ;;  %v1580_v50 = vor.u32 %v2090_v34, %v1579_v32  ;;  %v2068_v53 = vor.u32 %v2211_v41, %v2067_v40  ;;  %v1840_v61 = vor.u32 %v2150_v51, %v1837_v52  ;;  %v1717_v26 = vld [vmem:[%s2583_s30 + $0x138] sm:$0xf0]  ;;  %v1971_v28 = vld [vmem:[%s2583_s30 + $0x318] sm:$0xf] }
  0xec   : > { %1355 = vmatpush.bf16.msra.mxu0 %v1708_v56  ;;  %1381 = vmatpush.bf16.msra.mxu2 %v1712_v59  ;;  %v2072_v56 = vor.u32 %v2207_v44, %v2069_v45  ;;  %v1779_v59 = vld [vmem:[%s2583_s30 + $0x198] sm:$0xf]  ;;  %v2008_v27 = vor.u32 %v2191_v17, %v2005_v18  ;;  %v1716_v30 = vor.u32 %v2123_v22, %v1715_v20  ;;  %v2183_v31 = vld [vmem:[%s2583_s30 + $0x31c] sm:$0xf] }
  0xed   : > { %v1243_v0 = vsel %vm1223_vm0, %v2068_v53, 0  ;;  %v1973_v32 = vld [vmem:[%s2583_s30 + $0x338] sm:$0xf0]  ;;  %v1683_v34 = vld [vmem:[%s2583_s30 + $0xd8] sm:$0xf] }
  0xee   : > { %v1246_v3 = vsel %vm1223_vm0, %v2072_v56, 0  ;;  %v2115_v35 = vld [vmem:[%s2583_s30 + $0xf4] sm:$0xf0]  ;;  %v1685_v38 = vld [vmem:[%s2583_s30 + $0xf8] sm:$0xf0]  ;;  %v1976_v39 = vor.u32 %v2183_v31, %v1973_v32 }
  0xef   : > { %1368 = vmatpush.bf16.msra.mxu1 %v1964_v62  ;;  %1394 = vmatpush.bf16.msra.mxu3 %v1968_v1  ;;  %v2135_v62 = vld [vmem:[%s2583_s30 + $0x19c] sm:$0xf]  ;;  %v2035_v1 = vld [vmem:[%s2583_s30 + $0x398] sm:$0xf] }
  0xf0   : > { %1356 = vmatpush.bf16.msra.mxu0 %v1676_v4  ;;  %1382 = vmatpush.bf16.msra.mxu2 %v1680_v7  ;;  %v1780_v4 = vor.u32 %v2139_v60, %v1779_v59  ;;  %v1784_v7 = vor.u32 %v2135_v62, %v1781_v63  ;;  %v1939_v40 = vld [vmem:[%s2583_s30 + $0x2d8] sm:$0xf]  ;;  %v1941_v44 = vld [vmem:[%s2583_s30 + $0x2f8] sm:$0xf0] }
  0xf1   : > { %v2179_v41 = vld [vmem:[%s2583_s30 + $0x2f4] sm:$0xf0]  ;;  %v2103_v49 = vld [vmem:[%s2583_s30 + $0x9c] sm:$0xf]  ;;  %v1944_v51 = vor.u32 %v2175_v43, %v1941_v44 }
  0xf2   : > { %v2107_v47 = vld [vmem:[%s2583_s30 + $0xb4] sm:$0xf0]  ;;  %v1940_v48 = vor.u32 %v2179_v41, %v1939_v40  ;;  %v1909_v56 = vld [vmem:[%s2583_s30 + $0x2b8] sm:$0xf0] }
  0xf3   : > { %1369 = vmatpush.bf16.msra.mxu1 %v1932_v10  ;;  %1395 = vmatpush.bf16.msra.mxu3 %v1936_v13  ;;  %v2036_v10 = vor.u32 %v2203_v2, %v2035_v1  ;;  %v2040_v13 = vor.u32 %v2199_v5, %v2037_v6  ;;  %v1907_v52 = vld [vmem:[%s2583_s30 + $0x298] sm:$0xf]  ;;  %v1621_v62 = vld [vmem:[%s2583_s30 + $0x78] sm:$0xf0] }
  0xf4   : > { %1357 = vmatpush.bf16.msra.mxu0 %v1644_v16  ;;  %1383 = vmatpush.bf16.msra.mxu2 %v1648_v19  ;;  %v1748_v16 = vor.u32 %v2131_v9, %v1747_v8  ;;  %v1752_v19 = vor.u32 %v2127_v11, %v1749_v12  ;;  %v2171_v53 = vld [vmem:[%s2583_s30 + $0x2b4] sm:$0xf0]  ;;  %v2087_v9 = vld [vmem:[%s2583_s30 + $0x1c] sm:$0xf] }
  0xf5   : > { %v2099_v59 = vld [vmem:[%s2583_s30 + $0x74] sm:$0xf0]  ;;  %v1908_v60 = vor.u32 %v2171_v53, %v1907_v52  ;;  %v2151_v15 = vld [vmem:[%s2583_s30 + $0x21c] sm:$0xf] }
  0xf6   : > { %v2163_v1 = vld [vmem:[%s2583_s30 + $0x274] sm:$0xf0] }
  0xf7   : > { %1370 = vmatpush.bf16.msra.mxu1 %v1900_v25  ;;  %1396 = vmatpush.bf16.msra.mxu3 %v1904_v29  ;;  %v2119_v25 = vld [vmem:[%s2583_s30 + $0x11c] sm:$0xf]  ;;  %v2187_v29 = vld [vmem:[%s2583_s30 + $0x334] sm:$0xf0] }
  0xf8   : > { %1358 = vmatpush.bf16.msra.mxu0 %v1612_v33  ;;  %1384 = vmatpush.bf16.msra.mxu2 %v1616_v37  ;;  %v1720_v33 = vor.u32 %v2119_v25, %v1717_v26  ;;  %v1972_v36 = vor.u32 %v2187_v29, %v1971_v28  ;;  %v2111_v37 = vld [vmem:[%s2583_s30 + $0xdc] sm:$0xf]  ;;  %v1587_v6 = vld [vmem:[%s2583_s30 + $0x18] sm:$0xf] }
  0xf9   : > { %v1688_v45 = vor.u32 %v2111_v37, %v1685_v38  ;;  %v1843_v12 = vld [vmem:[%s2583_s30 + $0x218] sm:$0xf] }
  0xfb   : > { %1371 = vmatpush.bf16.msra.mxu1 %v1868_v42  ;;  %1397 = vmatpush.bf16.msra.mxu3 %v1872_v46  ;;  %v1684_v42 = vor.u32 %v2115_v35, %v1683_v34  ;;  %v1651_v46 = vld [vmem:[%s2583_s30 + $0x98] sm:$0xf] }
  0xfc   : > { %1359 = vmatpush.bf16.msra.mxu0 %v1580_v50  ;;  %1385 = vmatpush.bf16.msra.mxu2 %v1584_v54  ;;  %v1653_v50 = vld [vmem:[%s2583_s30 + $0xb8] sm:$0xf0]  ;;  %v1652_v54 = vor.u32 %v2107_v47, %v1651_v46 }
  0xff   : > { %1372 = vmatpush.bf16.msra.mxu1 %v1836_v57  ;;  %1398 = vmatpush.bf16.msra.mxu3 %v1840_v61  ;;  %v1656_v57 = vor.u32 %v2103_v49, %v1653_v50  ;;  %v2095_v61 = vld [vmem:[%s2583_s30 + $0x5c] sm:$0xf] }
 0x100   : > { %1404 = vmatpush.bf16.msrb.mxu0 %v1812_v55  ;;  %1430 = vmatpush.bf16.msrb.mxu2 %v1816_v58  ;;  %v2167_v55 = vld [vmem:[%s2583_s30 + $0x29c] sm:$0xf]  ;;  %v1619_v58 = vld [vmem:[%s2583_s30 + $0x58] sm:$0xf]  ;;  %v1624_v5 = vor.u32 %v2095_v61, %v1621_v62 }
 0x101   : > { %1386 = vmatmul.bf16.vlgmr.msra.gmra.mxu2 %v2689_v21  ;;  %1360 = vmatmul.bf16.vlgmr.msra.gmra.mxu0 %v2689_v21  ;;  %v1912_v63 = vor.u32 %v2167_v55, %v1909_v56  ;;  %v1620_v2 = vor.u32 %v2099_v59, %v1619_v58 }
 0x102   : > { %2077 = vmatmul.msk.bf16.vlgmr.msra.gmra.mxu1 %vm1220_vm1, %v2692_v23  ;;  %2078 = vmatmul.msk.bf16.vlgmr.msra.gmra.mxu3 %vm1220_vm1, %v2692_v23 }
 0x103   : > { %1417 = vmatpush.bf16.msrb.mxu1 %v1243_v0  ;;  %1443 = vmatpush.bf16.msrb.mxu3 %v1246_v3  ;;  %v1875_v0 = vld [vmem:[%s2583_s30 + $0x258] sm:$0xf]  ;;  %v2159_v3 = vld [vmem:[%s2583_s30 + $0x25c] sm:$0xf] }
 0x104   : > { %1405 = vmatpush.bf16.msrb.mxu0 %v1780_v4  ;;  %1431 = vmatpush.bf16.msrb.mxu2 %v1784_v7  ;;  %v1877_v4 = vld [vmem:[%s2583_s30 + $0x278] sm:$0xf0]  ;;  %v2091_v7 = vld [vmem:[%s2583_s30 + $0x34] sm:$0xf0]  ;;  %v1876_v8 = vor.u32 %v2163_v1, %v1875_v0 }
 0x105   : > { %v1880_v11 = vor.u32 %v2159_v3, %v1877_v4  ;;  %v1588_v14 = vor.u32 %v2091_v7, %v1587_v6 }
 0x107   : > { %1418 = vmatpush.bf16.msrb.mxu1 %v2036_v10  ;;  %1444 = vmatpush.bf16.msrb.mxu3 %v2040_v13  ;;  %v1589_v10 = vld [vmem:[%s2583_s30 + $0x38] sm:$0xf0]  ;;  %v2155_v13 = vld [vmem:[%s2583_s30 + $0x234] sm:$0xf0] }
 0x108   : > { %1406 = vmatpush.bf16.msrb.mxu0 %v1748_v16  ;;  %1432 = vmatpush.bf16.msrb.mxu2 %v1752_v19  ;;  %v1845_v16 = vld [vmem:[%s2583_s30 + $0x238] sm:$0xf0]  ;;  %v1592_v17 = vor.u32 %v2087_v9, %v1589_v10  ;;  %v1844_v18 = vor.u32 %v2155_v13, %v1843_v12 }
 0x109   : > { %v1848_v19 = vor.u32 %v2151_v15, %v1845_v16 }
 0x10b   : > { %1419 = vmatpush.bf16.msrb.mxu1 %v2004_v24  ;;  %1445 = vmatpush.bf16.msrb.mxu3 %v2008_v27 }
 0x10c   : > { %1407 = vmatpush.bf16.msrb.mxu0 %v1716_v30  ;;  %1433 = vmatpush.bf16.msrb.mxu2 %v1720_v33 }
 0x10f   : > { %1420 = vmatpush.bf16.msrb.mxu1 %v1972_v36  ;;  %1446 = vmatpush.bf16.msrb.mxu3 %v1976_v39 }
 0x110   : > { %1408 = vmatpush.bf16.msrb.mxu0 %v1684_v42  ;;  %1434 = vmatpush.bf16.msrb.mxu2 %v1688_v45 }
 0x113   : > { %1421 = vmatpush.bf16.msrb.mxu1 %v1940_v48  ;;  %1447 = vmatpush.bf16.msrb.mxu3 %v1944_v51 }
 0x114   : > { %1409 = vmatpush.bf16.msrb.mxu0 %v1652_v54  ;;  %1435 = vmatpush.bf16.msrb.mxu2 %v1656_v57 }
 0x117   : > { %1422 = vmatpush.bf16.msrb.mxu1 %v1908_v60  ;;  %1448 = vmatpush.bf16.msrb.mxu3 %v1912_v63 }
 0x118   : > { %1410 = vmatpush.bf16.msrb.mxu0 %v1620_v2  ;;  %1436 = vmatpush.bf16.msrb.mxu2 %v1624_v5 }
 0x11b   : > { %1423 = vmatpush.bf16.msrb.mxu1 %v1876_v8  ;;  %1449 = vmatpush.bf16.msrb.mxu3 %v1880_v11 }
 0x11c   : > { %1411 = vmatpush.bf16.msrb.mxu0 %v1588_v14  ;;  %1437 = vmatpush.bf16.msrb.mxu2 %v1592_v17 }
 0x11f   : > { %1424 = vmatpush.bf16.msrb.mxu1 %v1844_v18  ;;  %1450 = vmatpush.bf16.msrb.mxu3 %v1848_v19 }
 0x120   : > { %1412 = vmatmul.bf16.vlgmr.msrb.gmra.mxu0 %v2689_v21  ;;  %1438 = vmatmul.bf16.vlgmr.msrb.gmra.mxu2 %v2689_v21 }
 0x122   : > { %2079 = vmatmul.msk.bf16.vlgmr.msrb.gmra.mxu1 %vm1220_vm1, %v2692_v23  ;;  %2080 = vmatmul.msk.bf16.vlgmr.msrb.gmra.mxu3 %vm1220_vm1, %v2692_v23 }
 0x13b   : > { %v580_v24 = vpop.permute.xlu0 %579 }
 0x13c   : > { %v582_v25 = vperm.slane %v580_v24, 0 }
 0x142   : > { %v1257_v20 = vpop.f32.mrf.mxu0 }
 0x143   : > { %v1270_v22 = vpop.f32.mrf.mxu1  ;;  %v1258_v27 = vadd.f32 %v1257_v20, %v582_v25 }
 0x145   : > { %v1271_v30 = vadd.f32 %v1270_v22, %v1258_v27 }
 0x147   : > { %v1456_v34 = vmax.f32 %v1271_v30, 0.0 }
 0x148   : > { %v1283_v26 = vpop.f32.mrf.mxu2 }
 0x149   : > { %v1284_v28 = vadd.f32 %v1283_v26, %v582_v25  ;;  %v1296_v29 = vpop.f32.mrf.mxu3 }
 0x14a   : > { %v1259_v31 = vpop.f32.mrf.mxu0 }
 0x14b   : > { %v1297_v32 = vadd.f32 %v1296_v29, %v1284_v28  ;;  %v1272_v33 = vpop.f32.mrf.mxu1 }
 0x14d   : > { %v1457_v21 = vmax.f32 %v1297_v32, 0.0 }
 0x14f   : > { %v1472_v35 = vrot.slane %v1457_v21, 7 }
 0x150   : > { %v1285_v36 = vpop.f32.mrf.mxu2 }
 0x151   : > { %v1480_v37 = vsel %vm1479_vm2, %v1456_v34, %v1472_v35  ;;  %v1298_v38 = vpop.f32.mrf.mxu3 }
 0x15e   : > { %v1309_v39 = vpop.f32.mrf.mxu0 }
 0x15f   : > { %v1322_v23 = vpop.f32.mrf.mxu1  ;;  %v1310_v40 = vadd.f32 %v1309_v39, %v582_v25 }
 0x161   : > { %v1323_v42 = vadd.f32 %v1322_v23, %v1310_v40 }
 0x163   : > { %v1458_v44 = vmax.f32 %v1323_v42, 0.0 }
 0x164   : > { %v1335_v41 = vpop.f32.mrf.mxu2 }
 0x165   : > { %v1336_v43 = vadd.f32 %v1335_v41, %v582_v25  ;;  %v1348_v45 = vpop.f32.mrf.mxu3  ;;  %v1473_v48 = vrot.slane %v1458_v44, 6 }
 0x166   : > { %v1311_v50 = vpop.f32.mrf.mxu0 }
 0x167   : > { %v1349_v46 = vadd.f32 %v1348_v45, %v1336_v43  ;;  %v1324_v47 = vpop.f32.mrf.mxu1 }
 0x169   : > { %v1459_v49 = vmax.f32 %v1349_v46, 0.0 }
 0x16b   : > { %v1474_v51 = vrot.slane %v1459_v49, 5 }
 0x16c   : > { %v1337_v52 = vpop.f32.mrf.mxu2 }
 0x16d   : > { %v1482_v53 = vsel %vm1481_vm3, %v1473_v48, %v1474_v51  ;;  %v1350_v55 = vpop.f32.mrf.mxu3 }
 0x16e   : > { %v1484_v54 = vsel %vm1483_vm4, %v1480_v37, %v1482_v53 }
 0x17e   : > { %v1361_v57 = vpop.f32.mrf.mxu0 }
 0x17f   : > { %v1374_v56 = vpop.f32.mrf.mxu1  ;;  %v1362_v0 = vadd.f32 %v1361_v57, %v582_v25 }
 0x181   : > { %v1375_v5 = vadd.f32 %v1374_v56, %v1362_v0 }
 0x183   : > { %v1460_v9 = vmax.f32 %v1375_v5, 0.0 }
 0x184   : > { %v1387_v58 = vpop.f32.mrf.mxu2 }
 0x185   : > { %v1400_v59 = vpop.f32.mrf.mxu3  ;;  %v1388_v1 = vadd.f32 %v1387_v58, %v582_v25  ;;  %v1475_v17 = vrot.slane %v1460_v9, 4 }
 0x186   : > { %v1363_v61 = vpop.f32.mrf.mxu0 }
 0x187   : > { %v1376_v60 = vpop.f32.mrf.mxu1  ;;  %v1401_v6 = vadd.f32 %v1400_v59, %v1388_v1 }
 0x189   : > { %v1461_v10 = vmax.f32 %v1401_v6, 0.0 }
 0x18b   : > { %v1476_v18 = vrot.slane %v1461_v10, 3 }
 0x18c   : > { %v1389_v62 = vpop.f32.mrf.mxu2 }
 0x18d   : > { %v1402_v63 = vpop.f32.mrf.mxu3  ;;  %v1486_v26 = vsel %vm1485_vm5, %v1475_v17, %v1476_v18 }
 0x19d   : > { %v1413_v2 = vpop.f32.mrf.mxu0 }
 0x19e   : > { %v1414_v3 = vadd.f32 %v1413_v2, %v582_v25 }
 0x19f   : > { %v1426_v4 = vpop.f32.mrf.mxu1 }
 0x1a0   : > { %v1427_v7 = vadd.f32 %v1426_v4, %v1414_v3 }
 0x1a2   : > { %v1462_v11 = vmax.f32 %v1427_v7, 0.0 }
 0x1a3   : > { %v1439_v8 = vpop.f32.mrf.mxu2 }
 0x1a4   : > { %v1440_v12 = vadd.f32 %v1439_v8, %v582_v25  ;;  %v1477_v19 = vrot.slane %v1462_v11, 2 }
 0x1a5   : > { %v1415_v13 = vpop.f32.mrf.mxu0  ;;  %v1452_v14 = vpop.f32.mrf.mxu3 }
 0x1a6   : > { %v1453_v15 = vadd.f32 %v1452_v14, %v1440_v12 }
 0x1a7   : > { %v1428_v16 = vpop.f32.mrf.mxu1 }
 0x1a8   : > { %v1463_v20 = vmax.f32 %v1453_v15, 0.0 }
 0x1aa   : > { %v1478_v22 = vrot.slane %v1463_v20, 1 }
 0x1ab   : > { %v1441_v24 = vpop.f32.mrf.mxu2 }
 0x1ac   : > { %v1488_v25 = vsel %vm1487_vm6, %v1477_v19, %v1478_v22 }
 0x1ad   : > { %v1490_v27 = vsel %vm1489_vm7, %v1486_v26, %v1488_v25  ;;  %v1454_v28 = vpop.f32.mrf.mxu3 }
 0x1ae   : > { %v1492_v29 = vsel %vm1491_vm8, %v1484_v54, %v1490_v27 }
 0x1af   : > { %1494 = vst [vmem:[%s445_s9] sm:$0xff] %v1492_v29 }
 0x1b0 PF: > { %p12_p9 = scmp.ge.s32.totalorder %s2303_s17, 4   ;;  %s2899_s14 = smov %s2256_s15 }
 0x1b1   : > { %s2900_s15 = smov %s2312_s20  ;;  %s2901_s16 = smov %s2303_s17 }
 0x1b2   :  { %14 = sbr.rel (!%p12_p9) target bundleno = 5 (0x5), region = 90 }

</bundles_post_ra>
